<compile_context>
chip_gen: v6e
topology: v6e:2x2x1
jax: 0.10.0
libtpu: 0.0.40
codegen_flags: <defaults>
</compile_context>

<pallas_src>
import jax
import jax.numpy as jnp
from jax import lax
from jax.experimental import pallas as pl
from jax.experimental.pallas import tpu as pltpu

# ----------------------------- tiny config (stand-in for the HF configs) -----------------------
HIDDEN = 32          # encoder.config.hidden_size == decoder hidden size
HEADS = 4
HEAD_DIM = HIDDEN // HEADS
FFN = 64
LATENT = 16          # cfg['latent_dim']
VOCAB = 64
VOCAB_PAD = 128      # lane-dense LM-head output (sliced back to VOCAB outside the kernel)
MAX_POS = 16
ENC_LAYERS = 2
DEC_LAYERS = 2
NUM_LAYERS = ENC_LAYERS + DEC_LAYERS
LN_EPS = 1e-12       # BERT / DistilBERT layer-norm eps
SEQ = 8
BATCH = 2
N_TOK = BATCH * SEQ          # folded (batch*seq) rows   = 16
HN = HEADS * N_TOK           # folded (head*batch*seq)   = 64
NEG_INF = -1e9
_INV_SQRT2 = 0.7071067811865476

# ---------------- bf16 weight slab layout: (W_ROWS, 128), row offsets all multiples of 8 --------
WCOLS = 128
W_L_QKV, W_L_O, W_L_FF1, W_L_FF2 = 0, 32, 64, 96   # per-layer row offsets
W_LAYER_ROWS = 160                                  # 32 + 32 + 32 + 64
W_MR = NUM_LAYERS * W_LAYER_ROWS                    # 640  (HIDDEN rows, mu|rho fused)
W_DIST = W_MR + HIDDEN                              # 672  (LATENT rows)
W_HT = W_DIST + LATENT                              # 688  (HIDDEN rows)
W_VOC = W_HT + HIDDEN                               # 720  (HIDDEN rows, VOCAB_PAD cols)
W_ROWS = W_VOC + HIDDEN                             # 752

# ---------------- f32 bias / LN / pos slab layout: (F_ROWS, 128) --------------------------------
FCOLS = 128
(F_L_BQKV, F_L_BO, F_L_LN1G, F_L_LN1B,
 F_L_BFF1, F_L_BFF2, F_L_LN2G, F_L_LN2B) = range(8)
F_LAYER_ROWS = 8
F_TAIL = NUM_LAYERS * F_LAYER_ROWS                  # 32
F_ENC_LNG, F_ENC_LNB, F_DEC_LNG, F_DEC_LNB = F_TAIL, F_TAIL + 1, F_TAIL + 2, F_TAIL + 3
F_BMR, F_BDIST, F_BHT = F_TAIL + 4, F_TAIL + 5, F_TAIL + 6
F_HLNG, F_HLNB, F_BVOC = F_TAIL + 7, F_TAIL + 8, F_TAIL + 9
F_PAD_ROWS = 6                                      # align decpos block to a sublane boundary
F_DECPOS = F_BVOC + 1 + F_PAD_ROWS                  # 48 (MAX_POS rows)
F_ROWS = F_DECPOS + MAX_POS                         # 64

# ---------------- combined output buffer: rows [0,N_TOK) logits, [N_TOK,N_TOK+B) mu|rho ---------
OUT_TAIL_ROWS = 8
OUT_ROWS = N_TOK + OUT_TAIL_ROWS                    # 24


# --------------------------------- in-kernel math helpers --------------------------------------
def _ln(x, g, b):
    mean = jnp.mean(x, axis=-1, keepdims=True)
    c = x - mean
    var = jnp.mean(c * c, axis=-1, keepdims=True)
    return c * lax.rsqrt(var + LN_EPS) * g + b


def _gelu(x):  # exact erf GELU, matching HF "gelu"
    return 0.5 * x * (1.0 + lax.erf(x * _INV_SQRT2))


def _softmax(s):
    s = s - jnp.max(s, axis=-1, keepdims=True)
    e = jnp.exp(s)
    return e * pl.reciprocal(jnp.sum(e, axis=-1, keepdims=True), approx=True)


# --------------------------------------- fused kernel ------------------------------------------
def _bert_vae_kernel(x_ref, mask_ref, eps_ref, w_ref, f_ref, out_ref):
    f32, bf16 = jnp.float32, jnp.bfloat16
    scale = 1.0 / (HEAD_DIM ** 0.5)

    def w(r0, nr, nc):           # static slice of the bf16 weight slab
        return w_ref[r0:r0 + nr, 0:nc]

    def frow(r, nc):             # single f32 bias / LN row (1, nc)
        return f_ref[r:r + 1, 0:nc]

    def dense(xv, wv, bv):       # bf16 MXU operands, f32 accumulation, f32 bias
        return jnp.dot(xv.astype(bf16), wv, preferred_element_type=f32) + bv

    x = x_ref[...]               # (N_TOK, H) f32 : word_emb + enc pos_emb, batch folded
    mask = mask_ref[...]         # (HN, HN) f32   : block-diag (head, batch) + padding, additive

    def layer(h_in, l):
        wb = l * W_LAYER_ROWS
        fb = l * F_LAYER_ROWS
        # fused QKV projection: one (N,H) @ (H,3H) matmul; cast to bf16 ONCE (hoisted)
        qkv = dense(h_in, w(wb + W_L_QKV, HIDDEN, 3 * HIDDEN), frow(fb + F_L_BQKV, 3 * HIDDEN))
        qkv_b = qkv.astype(bf16)

        def head_major(off):     # lane-major heads -> head-major sublanes (HN, d); aligned concat
            return jnp.concatenate(
                [qkv_b[:, off + hh * HEAD_DIM: off + (hh + 1) * HEAD_DIM] for hh in range(HEADS)],
                axis=0)

        q = head_major(0)
        k = head_major(HIDDEN)
        v = head_major(2 * HIDDEN)
        # ONE score matmul + ONE merged softmax + ONE P@V per layer (mask kills cross-head/
        # cross-batch/padded-key blocks, so this equals per-head per-example attention).
        s = lax.dot_general(q, k, (((1,), (1,)), ((), ())),
                            preferred_element_type=f32) * scale        # (HN, HN)
        p = _softmax(s + mask)
        ctx_hm = jnp.dot(p.astype(bf16), v, preferred_element_type=f32)  # (HN, d)
        ctx = jnp.concatenate(
            [ctx_hm[hh * N_TOK:(hh + 1) * N_TOK, :] for hh in range(HEADS)], axis=1)  # (N, H)

        attn_out = dense(ctx, w(wb + W_L_O, HIDDEN, HIDDEN), frow(fb + F_L_BO, HIDDEN))
        h1 = _ln(h_in + attn_out, frow(fb + F_L_LN1G, HIDDEN), frow(fb + F_L_LN1B, HIDDEN))
        ff = _gelu(dense(h1, w(wb + W_L_FF1, HIDDEN, FFN), frow(fb + F_L_BFF1, FFN)))
        ff = dense(ff, w(wb + W_L_FF2, FFN, HIDDEN), frow(fb + F_L_BFF2, HIDDEN))
        return _ln(h1 + ff, frow(fb + F_L_LN2G, HIDDEN), frow(fb + F_L_LN2B, HIDDEN))

    # -------------------- encoder (DistilBERT: emb LN then layers) --------------------
    h = _ln(x, frow(F_ENC_LNG, HIDDEN), frow(F_ENC_LNB, HIDDEN))
    for l in range(ENC_LAYERS):
        h = layer(h, l)
    enc_out = h                                                          # (N_TOK, H)

    # -------------------- VAE bottleneck (CLS tokens = folded rows b*SEQ) --------------------
    cls = jnp.concatenate([enc_out[b * SEQ:b * SEQ + 1, :] for b in range(BATCH)], axis=0)  # (B,H)
    zmr = dense(cls, w(W_MR, HIDDEN, 2 * LATENT), frow(F_BMR, 2 * LATENT))                  # (B,2L)
    mu = zmr[:, :LATENT]
    rho = zmr[:, LATENT:]
    softplus = jnp.maximum(rho, 0.0) + jnp.log1p(jnp.exp(-jnp.abs(rho)))  # stable softplus
    z = mu + softplus * eps_ref[...]                                      # (B, L)
    dec_first = dense(z, w(W_DIST, LATENT, HIDDEN), frow(F_BDIST, HIDDEN))  # (B, H)

    # decoder input — matches the reference literally: enc_pos is subtracted from ALL rows
    # (including row 0, which never had it added), then the decoder embedding adds
    # dec_pos + token_type(0) before its LayerNorm:  decpos = dec_pos + tok_type0 - enc_pos.
    decpos = f_ref[F_DECPOS:F_DECPOS + SEQ, 0:HIDDEN]                     # (S, H)
    row = lax.broadcasted_iota(jnp.int32, (N_TOK, 1), 0)
    is_first = row == 0
    for b in range(1, BATCH):
        is_first = jnp.logical_or(is_first, row == b * SEQ)
    dec_first_bcast = jnp.concatenate(
        [jnp.broadcast_to(dec_first[b:b + 1, :], (SEQ, HIDDEN)) for b in range(BATCH)], axis=0)
    dec_in = (jnp.where(is_first, dec_first_bcast, enc_out)
              + jnp.concatenate([decpos] * BATCH, axis=0))

    # -------------------- decoder (BERT LM-head model, bidirectional + same mask) --------------
    hd = _ln(dec_in, frow(F_DEC_LNG, HIDDEN), frow(F_DEC_LNB, HIDDEN))
    for l in range(DEC_LAYERS):
        hd = layer(hd, ENC_LAYERS + l)

    # LM head: dense + gelu + LN, then (padded, lane-dense) vocab projection
    t = _gelu(dense(hd, w(W_HT, HIDDEN, HIDDEN), frow(F_BHT, HIDDEN)))
    t = _ln(t, frow(F_HLNG, HIDDEN), frow(F_HLNB, HIDDEN))
    logits = dense(t, w(W_VOC, HIDDEN, VOCAB_PAD), frow(F_BVOC, VOCAB_PAD))  # (N_TOK, 128)

    # combined lane-dense output: two unmasked 128-wide, sublane-aligned stores
    out_ref[0:N_TOK, :] = logits
    zmr_pad = jnp.concatenate([zmr, jnp.zeros((BATCH, VOCAB_PAD - 2 * LATENT), f32)], axis=1)
    tail = jnp.concatenate([zmr_pad, jnp.zeros((OUT_TAIL_ROWS - BATCH, VOCAB_PAD), f32)], axis=0)
    out_ref[N_TOK:OUT_ROWS, :] = tail


# ------------------------------------- BlockSpec helper ----------------------------------------
def _full_spec(shape):
    nd = len(shape)
    return pl.BlockSpec(tuple(shape), lambda i, _n=nd: (0,) * _n)


# ------------------------------------- BERT_VAE forward ----------------------------------------
def bert_vae_forward(packed, input_ids, attention_mask, epsilon):
    B, S = input_ids.shape
    assert B == BATCH and S == SEQ
    N = B * S
    HN_ = HEADS * N

    # JAX glue: embedding gathers (no clean Pallas gather for tiny tables), batch fold, and the
    # block-diagonal additive attention mask (head-block x batch-block x key-padding).
    x = jnp.take(packed["word_emb"], input_ids, axis=0) + packed["enc_pos"][None, :S, :]
    x = x.reshape(N, HIDDEN)

    am = attention_mask.astype(jnp.float32)                         # (B, S)
    eye_b = jnp.eye(B, dtype=jnp.float32)
    valid = eye_b[:, None, :, None] * am[None, None, :, :]          # (B,1,B,S): b==b' & key valid
    valid = jnp.broadcast_to(valid, (B, S, B, S)).reshape(N, N)
    eye_h = jnp.eye(HEADS, dtype=jnp.float32)
    valid = (eye_h[:, None, :, None] * valid[None, :, None, :]).reshape(HN_, HN_)
    mask = (1.0 - valid) * NEG_INF                                  # (HN, HN) additive mask

    out = pl.pallas_call(
        _bert_vae_kernel,
        grid=(1,),
        out_shape=jax.ShapeDtypeStruct((OUT_ROWS, VOCAB_PAD), jnp.float32),
        in_specs=[
            _full_spec(x.shape),
            _full_spec(mask.shape),
            _full_spec(epsilon.shape),
            _full_spec(packed["wslab"].shape),
            _full_spec(packed["fslab"].shape),
        ],
        out_specs=_full_spec((OUT_ROWS, VOCAB_PAD)),
        compiler_params=pltpu.CompilerParams(dimension_semantics=("arbitrary",)),
    )(x, mask, epsilon, packed["wslab"], packed["fslab"])

    logits = out[:N, :VOCAB].reshape(B, S, VOCAB)
    zmr = out[N:N + B, :2 * LATENT]
    return zmr[:, :LATENT], zmr[:, LATENT:], logits


# -------------------------------------- parameter init -----------------------------------------
def init_params(key):
    keys = iter(jax.random.split(key, 256))

    def dense(fi, fo):
        return {"w": jax.random.normal(next(keys), (fi, fo), jnp.float32) * 0.02,
                "b": jax.random.normal(next(keys), (fo,), jnp.float32) * 0.02}

    def ln():
        return {"g": jnp.ones((HIDDEN,), jnp.float32), "b": jnp.zeros((HIDDEN,), jnp.float32)}

    def layer():
        return {"attn": {"q": dense(HIDDEN, HIDDEN), "k": dense(HIDDEN, HIDDEN),
                         "v": dense(HIDDEN, HIDDEN), "o": dense(HIDDEN, HIDDEN)},
                "ln1": ln(), "ff1": dense(HIDDEN, FFN), "ff2": dense(FFN, HIDDEN), "ln2": ln()}

    encoder = {
        "word_emb": jax.random.normal(next(keys), (VOCAB, HIDDEN), jnp.float32) * 0.02,
        "pos_emb": jax.random.normal(next(keys), (MAX_POS, HIDDEN), jnp.float32) * 0.02,
        "emb_ln": ln(),
        "layers": [layer() for _ in range(ENC_LAYERS)],
    }
    decoder = {
        "pos_emb": jax.random.normal(next(keys), (MAX_POS, HIDDEN), jnp.float32) * 0.02,
        "tok_type_emb": jax.random.normal(next(keys), (2, HIDDEN), jnp.float32) * 0.02,
        "emb_ln": ln(),
        "layers": [layer() for _ in range(DEC_LAYERS)],
        "head_transform": dense(HIDDEN, HIDDEN),
        "head_ln": ln(),
        "head_decoder": dense(HIDDEN, VOCAB),
    }
    return {"encoder": encoder, "decoder": decoder,
            "mu": dense(HIDDEN, LATENT), "rho": dense(HIDDEN, LATENT),
            "dist": dense(LATENT, HIDDEN)}


def pack_params(params):
    """Coalesce all weights into one bf16 slab and all biases/LN/pos terms into one f32 slab."""
    enc, dec = params["encoder"], params["decoder"]
    layers = enc["layers"] + dec["layers"]

    def pad_cols(a, width):
        return jnp.pad(a, ((0, 0), (0, width - a.shape[1])))

    # ---- bf16 weight slab (W_ROWS, 128): 4 stacked layers then mu|rho, dist, head, vocab ----
    wpieces = []
    for l in layers:
        wqkv = jnp.concatenate([l["attn"]["q"]["w"], l["attn"]["k"]["w"], l["attn"]["v"]["w"]],
                               axis=1)                                   # (H, 3H)
        wpieces += [pad_cols(wqkv, WCOLS), pad_cols(l["attn"]["o"]["w"], WCOLS),
                    pad_cols(l["ff1"]["w"], WCOLS), pad_cols(l["ff2"]["w"], WCOLS)]
    wmr = jnp.concatenate([params["mu"]["w"], params["rho"]["w"]], axis=1)          # (H, 2L)
    wvoc = jnp.pad(dec["head_decoder"]["w"], ((0, 0), (0, VOCAB_PAD - VOCAB)))      # (H, 128)
    wpieces += [pad_cols(wmr, WCOLS), pad_cols(params["dist"]["w"], WCOLS),
                pad_cols(dec["head_transform"]["w"], WCOLS), pad_cols(wvoc, WCOLS)]
    wslab = jnp.concatenate(wpieces, axis=0).astype(jnp.bfloat16)
    assert wslab.shape == (W_ROWS, WCOLS)

    # ---- f32 bias / LN / decoder-pos slab (F_ROWS, 128) ----
    def row(v):
        v = v.reshape(1, -1)
        return jnp.pad(v, ((0, 0), (0, FCOLS - v.shape[1])))

    frows = []
    for l in layers:
        bqkv = jnp.concatenate([l["attn"]["q"]["b"], l["attn"]["k"]["b"], l["attn"]["v"]["b"]])
        frows += [row(bqkv), row(l["attn"]["o"]["b"]),
                  row(l["ln1"]["g"]), row(l["ln1"]["b"]),
                  row(l["ff1"]["b"]), row(l["ff2"]["b"]),
                  row(l["ln2"]["g"]), row(l["ln2"]["b"])]
    frows += [row(enc["emb_ln"]["g"]), row(enc["emb_ln"]["b"]),
              row(dec["emb_ln"]["g"]), row(dec["emb_ln"]["b"]),
              row(jnp.concatenate([params["mu"]["b"], params["rho"]["b"]])),
              row(params["dist"]["b"]),
              row(dec["head_transform"]["b"]),
              row(dec["head_ln"]["g"]), row(dec["head_ln"]["b"]),
              row(jnp.pad(dec["head_decoder"]["b"], (0, VOCAB_PAD - VOCAB))),
              jnp.zeros((F_PAD_ROWS, FCOLS), jnp.float32)]
    # decoder-input position term (dec_pos + token_type0 - enc_pos), for all MAX_POS positions
    dec_pos_term = dec["pos_emb"] + dec["tok_type_emb"][0][None, :] - enc["pos_emb"]
    frows += [jnp.pad(dec_pos_term, ((0, 0), (0, FCOLS - HIDDEN)))]
    fslab = jnp.concatenate(frows, axis=0).astype(jnp.float32)
    assert fslab.shape == (F_ROWS, FCOLS)

    return {"wslab": wslab, "fslab": fslab,
            "word_emb": enc["word_emb"], "enc_pos": enc["pos_emb"]}


# --------------------------------------------- main --------------------------------------------
if __name__ == "__main__":
    key = jax.random.PRNGKey(0)
    k_param, k_ids, k_eps = jax.random.split(key, 3)

    params = init_params(k_param)
    packed = pack_params(params)

    input_ids = jax.random.randint(k_ids, (BATCH, SEQ), 0, VOCAB, dtype=jnp.int32)
    attention_mask = jnp.ones((BATCH, SEQ), jnp.int32).at[1, SEQ - 1].set(0)
    # torch.normal(0, 1, size=z_mu.shape) -> deterministic normal sample passed in explicitly
    epsilon = jax.random.normal(k_eps, (BATCH, LATENT), jnp.float32)

    fwd = jax.jit(bert_vae_forward)
    z_mu, z_rho, logits = fwd(packed, input_ids, attention_mask, epsilon)
    jax.block_until_ready((z_mu, z_rho, logits))

    assert z_mu.shape == (BATCH, LATENT)
    assert z_rho.shape == (BATCH, LATENT)
    assert logits.shape == (BATCH, SEQ, VOCAB)
    assert bool(jnp.all(jnp.isfinite(logits)))
    assert bool(jnp.all(jnp.isfinite(z_mu))) and bool(jnp.all(jnp.isfinite(z_rho)))

    print("KERNEL_OK")
</pallas_src>

<mosaic_0001>
module attributes {stable_mosaic.version = 11 : i64} {
  func.func @_bert_vae_kernel(%arg0: i32, %arg1: memref<16x32xf32, #tpu.memory_space<vmem>>, %arg2: memref<64x64xf32, #tpu.memory_space<vmem>>, %arg3: memref<2x16xf32, #tpu.memory_space<vmem>>, %arg4: memref<752x128xbf16, #tpu.memory_space<vmem>>, %arg5: memref<64x128xf32, #tpu.memory_space<vmem>>, %arg6: memref<24x128xf32, #tpu.memory_space<vmem>>) attributes {dimension_semantics = [#tpu.dimension_semantics<arbitrary>], iteration_bounds = array<i64: 1>, scalar_prefetch = 0 : i64, scratch_operands = 0 : i64, tpu.core_type = #tpu.core_type<tc>, window_params = [{pipeline_mode = #tpu.pipeline_mode<synchronous>, transform_indices = @transform_0, window_bounds = array<i64: 16, 32>}, {pipeline_mode = #tpu.pipeline_mode<synchronous>, transform_indices = @transform_1, window_bounds = array<i64: 64, 64>}, {pipeline_mode = #tpu.pipeline_mode<synchronous>, transform_indices = @transform_2, window_bounds = array<i64: 2, 16>}, {pipeline_mode = #tpu.pipeline_mode<synchronous>, transform_indices = @transform_3, window_bounds = array<i64: 752, 128>}, {pipeline_mode = #tpu.pipeline_mode<synchronous>, transform_indices = @transform_4, window_bounds = array<i64: 64, 128>}, {pipeline_mode = #tpu.pipeline_mode<synchronous>, transform_indices = @transform_5, window_bounds = array<i64: 24, 128>}]} {
    %c0 = arith.constant 0 : index
    %c0_0 = arith.constant 0 : index
    %0 = vector.load %arg1[%c0, %c0_0] : memref<16x32xf32, #tpu.memory_space<vmem>>, vector<16x32xf32>
    %c0_1 = arith.constant 0 : index
    %c0_2 = arith.constant 0 : index
    %1 = vector.load %arg2[%c0_1, %c0_2] : memref<64x64xf32, #tpu.memory_space<vmem>>, vector<64x64xf32>
    %c32 = arith.constant 32 : index
    %c0_3 = arith.constant 0 : index
    %2 = vector.load %arg5[%c32, %c0_3] : memref<64x128xf32, #tpu.memory_space<vmem>>, vector<1x32xf32>
    %c33 = arith.constant 33 : index
    %c0_4 = arith.constant 0 : index
    %3 = vector.load %arg5[%c33, %c0_4] : memref<64x128xf32, #tpu.memory_space<vmem>>, vector<1x32xf32>
    %cst = arith.constant dense<0.000000e+00> : vector<16xf32>
    %4 = vector.multi_reduction <add>, %0, %cst [1] : vector<16x32xf32> to vector<16xf32>
    %5 = vector.shape_cast %4 : vector<16xf32> to vector<16x1xf32>
    %cst_5 = arith.constant 3.200000e+01 : f32
    %6 = vector.broadcast %cst_5 : f32 to vector<16x1xf32>
    %7 = arith.divf %5, %6 : vector<16x1xf32>
    %8 = vector.broadcast %7 : vector<16x1xf32> to vector<16x32xf32>
    %9 = arith.subf %0, %8 : vector<16x32xf32>
    %10 = arith.mulf %9, %9 : vector<16x32xf32>
    %cst_6 = arith.constant dense<0.000000e+00> : vector<16xf32>
    %11 = vector.multi_reduction <add>, %10, %cst_6 [1] : vector<16x32xf32> to vector<16xf32>
    %12 = vector.shape_cast %11 : vector<16xf32> to vector<16x1xf32>
    %cst_7 = arith.constant 3.200000e+01 : f32
    %13 = vector.broadcast %cst_7 : f32 to vector<16x1xf32>
    %14 = arith.divf %12, %13 : vector<16x1xf32>
    %cst_8 = arith.constant 9.99999996E-13 : f32
    %15 = vector.broadcast %cst_8 : f32 to vector<16x1xf32>
    %16 = arith.addf %14, %15 : vector<16x1xf32>
    %17 = math.rsqrt %16 : vector<16x1xf32>
    %18 = vector.broadcast %17 : vector<16x1xf32> to vector<16x32xf32>
    %19 = arith.mulf %9, %18 : vector<16x32xf32>
    %20 = vector.broadcast %2 : vector<1x32xf32> to vector<16x32xf32>
    %21 = arith.mulf %19, %20 : vector<16x32xf32>
    %22 = vector.broadcast %3 : vector<1x32xf32> to vector<16x32xf32>
    %23 = arith.addf %21, %22 : vector<16x32xf32>
    %c0_9 = arith.constant 0 : index
    %c0_10 = arith.constant 0 : index
    %24 = vector.load %arg4[%c0_9, %c0_10] : memref<752x128xbf16, #tpu.memory_space<vmem>>, vector<32x96xbf16>
    %c0_11 = arith.constant 0 : index
    %c0_12 = arith.constant 0 : index
    %25 = vector.load %arg5[%c0_11, %c0_12] : memref<64x128xf32, #tpu.memory_space<vmem>>, vector<1x96xf32>
    %26 = arith.truncf %23 : vector<16x32xf32> to vector<16x32xbf16>
    %cst_13 = arith.constant dense<0.000000e+00> : vector<16x96xf32>
    %27 = tpu.matmul %26, %24, %cst_13 {dimension_numbers = #tpu.dot_dimension_numbers<[1], [0], [0], [1], [0, 0, 1, 1], [], []>} : vector<16x32xbf16>, vector<32x96xbf16>, vector<16x96xf32> -> vector<16x96xf32>
    %28 = vector.broadcast %25 : vector<1x96xf32> to vector<16x96xf32>
    %29 = arith.addf %27, %28 : vector<16x96xf32>
    %30 = arith.truncf %29 : vector<16x96xf32> to vector<16x96xbf16>
    %31 = vector.extract_strided_slice %30 {offsets = [0, 0], sizes = [16, 8], strides = [1, 1]} : vector<16x96xbf16> to vector<16x8xbf16>
    %32 = vector.extract_strided_slice %30 {offsets = [0, 8], sizes = [16, 8], strides = [1, 1]} : vector<16x96xbf16> to vector<16x8xbf16>
    %33 = vector.extract_strided_slice %30 {offsets = [0, 16], sizes = [16, 8], strides = [1, 1]} : vector<16x96xbf16> to vector<16x8xbf16>
    %34 = vector.extract_strided_slice %30 {offsets = [0, 24], sizes = [16, 8], strides = [1, 1]} : vector<16x96xbf16> to vector<16x8xbf16>
    %35 = tpu.concatenate %31, %32, %33, %34 in 0 : vector<16x8xbf16>, vector<16x8xbf16>, vector<16x8xbf16>, vector<16x8xbf16> -> vector<64x8xbf16>
    %36 = vector.extract_strided_slice %30 {offsets = [0, 32], sizes = [16, 8], strides = [1, 1]} : vector<16x96xbf16> to vector<16x8xbf16>
    %37 = vector.extract_strided_slice %30 {offsets = [0, 40], sizes = [16, 8], strides = [1, 1]} : vector<16x96xbf16> to vector<16x8xbf16>
    %38 = vector.extract_strided_slice %30 {offsets = [0, 48], sizes = [16, 8], strides = [1, 1]} : vector<16x96xbf16> to vector<16x8xbf16>
    %39 = vector.extract_strided_slice %30 {offsets = [0, 56], sizes = [16, 8], strides = [1, 1]} : vector<16x96xbf16> to vector<16x8xbf16>
    %40 = tpu.concatenate %36, %37, %38, %39 in 0 : vector<16x8xbf16>, vector<16x8xbf16>, vector<16x8xbf16>, vector<16x8xbf16> -> vector<64x8xbf16>
    %41 = vector.extract_strided_slice %30 {offsets = [0, 64], sizes = [16, 8], strides = [1, 1]} : vector<16x96xbf16> to vector<16x8xbf16>
    %42 = vector.extract_strided_slice %30 {offsets = [0, 72], sizes = [16, 8], strides = [1, 1]} : vector<16x96xbf16> to vector<16x8xbf16>
    %43 = vector.extract_strided_slice %30 {offsets = [0, 80], sizes = [16, 8], strides = [1, 1]} : vector<16x96xbf16> to vector<16x8xbf16>
    %44 = vector.extract_strided_slice %30 {offsets = [0, 88], sizes = [16, 8], strides = [1, 1]} : vector<16x96xbf16> to vector<16x8xbf16>
    %45 = tpu.concatenate %41, %42, %43, %44 in 0 : vector<16x8xbf16>, vector<16x8xbf16>, vector<16x8xbf16>, vector<16x8xbf16> -> vector<64x8xbf16>
    %cst_14 = arith.constant dense<0.000000e+00> : vector<64x64xf32>
    %46 = tpu.matmul %35, %40, %cst_14 {dimension_numbers = #tpu.dot_dimension_numbers<[1], [1], [0], [0], [0, 0, 1, 0], [], []>} : vector<64x8xbf16>, vector<64x8xbf16>, vector<64x64xf32> -> vector<64x64xf32>
    %cst_15 = arith.constant 0.353553385 : f32
    %47 = vector.broadcast %cst_15 : f32 to vector<64x64xf32>
    %48 = arith.mulf %46, %47 : vector<64x64xf32>
    %49 = arith.addf %48, %1 : vector<64x64xf32>
    %cst_16 = arith.constant dense<0xFF800000> : vector<64xf32>
    %50 = vector.multi_reduction <maximumf>, %49, %cst_16 [1] : vector<64x64xf32> to vector<64xf32>
    %51 = vector.shape_cast %50 : vector<64xf32> to vector<64x1xf32>
    %52 = vector.broadcast %51 : vector<64x1xf32> to vector<64x64xf32>
    %53 = arith.subf %49, %52 : vector<64x64xf32>
    %54 = math.exp %53 : vector<64x64xf32>
    %cst_17 = arith.constant dense<0.000000e+00> : vector<64xf32>
    %55 = vector.multi_reduction <add>, %54, %cst_17 [1] : vector<64x64xf32> to vector<64xf32>
    %56 = vector.shape_cast %55 : vector<64xf32> to vector<64x1xf32>
    %57 = tpu.reciprocal %56 {approx = true} : vector<64x1xf32> -> vector<64x1xf32>
    %58 = vector.broadcast %57 : vector<64x1xf32> to vector<64x64xf32>
    %59 = arith.mulf %54, %58 : vector<64x64xf32>
    %60 = arith.truncf %59 : vector<64x64xf32> to vector<64x64xbf16>
    %cst_18 = arith.constant dense<0.000000e+00> : vector<64x8xf32>
    %61 = tpu.matmul %60, %45, %cst_18 {dimension_numbers = #tpu.dot_dimension_numbers<[1], [0], [0], [1], [0, 0, 1, 1], [], []>} : vector<64x64xbf16>, vector<64x8xbf16>, vector<64x8xf32> -> vector<64x8xf32>
    %62 = vector.extract_strided_slice %61 {offsets = [0, 0], sizes = [16, 8], strides = [1, 1]} : vector<64x8xf32> to vector<16x8xf32>
    %63 = vector.extract_strided_slice %61 {offsets = [16, 0], sizes = [16, 8], strides = [1, 1]} : vector<64x8xf32> to vector<16x8xf32>
    %64 = vector.extract_strided_slice %61 {offsets = [32, 0], sizes = [16, 8], strides = [1, 1]} : vector<64x8xf32> to vector<16x8xf32>
    %65 = vector.extract_strided_slice %61 {offsets = [48, 0], sizes = [16, 8], strides = [1, 1]} : vector<64x8xf32> to vector<16x8xf32>
    %66 = tpu.concatenate %62, %63, %64, %65 in 1 : vector<16x8xf32>, vector<16x8xf32>, vector<16x8xf32>, vector<16x8xf32> -> vector<16x32xf32>
    %c32_19 = arith.constant 32 : index
    %c0_20 = arith.constant 0 : index
    %67 = vector.load %arg4[%c32_19, %c0_20] : memref<752x128xbf16, #tpu.memory_space<vmem>>, vector<32x32xbf16>
    %c1 = arith.constant 1 : index
    %c0_21 = arith.constant 0 : index
    %68 = vector.load %arg5[%c1, %c0_21] : memref<64x128xf32, #tpu.memory_space<vmem>>, vector<1x32xf32>
    %69 = arith.truncf %66 : vector<16x32xf32> to vector<16x32xbf16>
    %cst_22 = arith.constant dense<0.000000e+00> : vector<16x32xf32>
    %70 = tpu.matmul %69, %67, %cst_22 {dimension_numbers = #tpu.dot_dimension_numbers<[1], [0], [0], [1], [0, 0, 1, 1], [], []>} : vector<16x32xbf16>, vector<32x32xbf16>, vector<16x32xf32> -> vector<16x32xf32>
    %71 = vector.broadcast %68 : vector<1x32xf32> to vector<16x32xf32>
    %72 = arith.addf %70, %71 : vector<16x32xf32>
    %73 = arith.addf %23, %72 : vector<16x32xf32>
    %c2 = arith.constant 2 : index
    %c0_23 = arith.constant 0 : index
    %74 = vector.load %arg5[%c2, %c0_23] : memref<64x128xf32, #tpu.memory_space<vmem>>, vector<1x32xf32>
    %c3 = arith.constant 3 : index
    %c0_24 = arith.constant 0 : index
    %75 = vector.load %arg5[%c3, %c0_24] : memref<64x128xf32, #tpu.memory_space<vmem>>, vector<1x32xf32>
    %cst_25 = arith.constant dense<0.000000e+00> : vector<16xf32>
    %76 = vector.multi_reduction <add>, %73, %cst_25 [1] : vector<16x32xf32> to vector<16xf32>
    %77 = vector.shape_cast %76 : vector<16xf32> to vector<16x1xf32>
    %cst_26 = arith.constant 3.200000e+01 : f32
    %78 = vector.broadcast %cst_26 : f32 to vector<16x1xf32>
    %79 = arith.divf %77, %78 : vector<16x1xf32>
    %80 = vector.broadcast %79 : vector<16x1xf32> to vector<16x32xf32>
    %81 = arith.subf %73, %80 : vector<16x32xf32>
    %82 = arith.mulf %81, %81 : vector<16x32xf32>
    %cst_27 = arith.constant dense<0.000000e+00> : vector<16xf32>
    %83 = vector.multi_reduction <add>, %82, %cst_27 [1] : vector<16x32xf32> to vector<16xf32>
    %84 = vector.shape_cast %83 : vector<16xf32> to vector<16x1xf32>
    %cst_28 = arith.constant 3.200000e+01 : f32
    %85 = vector.broadcast %cst_28 : f32 to vector<16x1xf32>
    %86 = arith.divf %84, %85 : vector<16x1xf32>
    %cst_29 = arith.constant 9.99999996E-13 : f32
    %87 = vector.broadcast %cst_29 : f32 to vector<16x1xf32>
    %88 = arith.addf %86, %87 : vector<16x1xf32>
    %89 = math.rsqrt %88 : vector<16x1xf32>
    %90 = vector.broadcast %89 : vector<16x1xf32> to vector<16x32xf32>
    %91 = arith.mulf %81, %90 : vector<16x32xf32>
    %92 = vector.broadcast %74 : vector<1x32xf32> to vector<16x32xf32>
    %93 = arith.mulf %91, %92 : vector<16x32xf32>
    %94 = vector.broadcast %75 : vector<1x32xf32> to vector<16x32xf32>
    %95 = arith.addf %93, %94 : vector<16x32xf32>
    %c64 = arith.constant 64 : index
    %c0_30 = arith.constant 0 : index
    %96 = vector.load %arg4[%c64, %c0_30] : memref<752x128xbf16, #tpu.memory_space<vmem>>, vector<32x64xbf16>
    %c4 = arith.constant 4 : index
    %c0_31 = arith.constant 0 : index
    %97 = vector.load %arg5[%c4, %c0_31] : memref<64x128xf32, #tpu.memory_space<vmem>>, vector<1x64xf32>
    %98 = arith.truncf %95 : vector<16x32xf32> to vector<16x32xbf16>
    %cst_32 = arith.constant dense<0.000000e+00> : vector<16x64xf32>
    %99 = tpu.matmul %98, %96, %cst_32 {dimension_numbers = #tpu.dot_dimension_numbers<[1], [0], [0], [1], [0, 0, 1, 1], [], []>} : vector<16x32xbf16>, vector<32x64xbf16>, vector<16x64xf32> -> vector<16x64xf32>
    %100 = vector.broadcast %97 : vector<1x64xf32> to vector<16x64xf32>
    %101 = arith.addf %99, %100 : vector<16x64xf32>
    %cst_33 = arith.constant 5.000000e-01 : f32
    %102 = vector.broadcast %cst_33 : f32 to vector<16x64xf32>
    %103 = arith.mulf %102, %101 : vector<16x64xf32>
    %cst_34 = arith.constant 0.707106769 : f32
    %104 = vector.broadcast %cst_34 : f32 to vector<16x64xf32>
    %105 = arith.mulf %101, %104 : vector<16x64xf32>
    %106 = math.erf %105 : vector<16x64xf32>
    %cst_35 = arith.constant 1.000000e+00 : f32
    %107 = vector.broadcast %cst_35 : f32 to vector<16x64xf32>
    %108 = arith.addf %107, %106 : vector<16x64xf32>
    %109 = arith.mulf %103, %108 : vector<16x64xf32>
    %c96 = arith.constant 96 : index
    %c0_36 = arith.constant 0 : index
    %110 = vector.load %arg4[%c96, %c0_36] : memref<752x128xbf16, #tpu.memory_space<vmem>>, vector<64x32xbf16>
    %c5 = arith.constant 5 : index
    %c0_37 = arith.constant 0 : index
    %111 = vector.load %arg5[%c5, %c0_37] : memref<64x128xf32, #tpu.memory_space<vmem>>, vector<1x32xf32>
    %112 = arith.truncf %109 : vector<16x64xf32> to vector<16x64xbf16>
    %cst_38 = arith.constant dense<0.000000e+00> : vector<16x32xf32>
    %113 = tpu.matmul %112, %110, %cst_38 {dimension_numbers = #tpu.dot_dimension_numbers<[1], [0], [0], [1], [0, 0, 1, 1], [], []>} : vector<16x64xbf16>, vector<64x32xbf16>, vector<16x32xf32> -> vector<16x32xf32>
    %114 = vector.broadcast %111 : vector<1x32xf32> to vector<16x32xf32>
    %115 = arith.addf %113, %114 : vector<16x32xf32>
    %116 = arith.addf %95, %115 : vector<16x32xf32>
    %c6 = arith.constant 6 : index
    %c0_39 = arith.constant 0 : index
    %117 = vector.load %arg5[%c6, %c0_39] : memref<64x128xf32, #tpu.memory_space<vmem>>, vector<1x32xf32>
    %c7 = arith.constant 7 : index
    %c0_40 = arith.constant 0 : index
    %118 = vector.load %arg5[%c7, %c0_40] : memref<64x128xf32, #tpu.memory_space<vmem>>, vector<1x32xf32>
    %cst_41 = arith.constant dense<0.000000e+00> : vector<16xf32>
    %119 = vector.multi_reduction <add>, %116, %cst_41 [1] : vector<16x32xf32> to vector<16xf32>
    %120 = vector.shape_cast %119 : vector<16xf32> to vector<16x1xf32>
    %cst_42 = arith.constant 3.200000e+01 : f32
    %121 = vector.broadcast %cst_42 : f32 to vector<16x1xf32>
    %122 = arith.divf %120, %121 : vector<16x1xf32>
    %123 = vector.broadcast %122 : vector<16x1xf32> to vector<16x32xf32>
    %124 = arith.subf %116, %123 : vector<16x32xf32>
    %125 = arith.mulf %124, %124 : vector<16x32xf32>
    %cst_43 = arith.constant dense<0.000000e+00> : vector<16xf32>
    %126 = vector.multi_reduction <add>, %125, %cst_43 [1] : vector<16x32xf32> to vector<16xf32>
    %127 = vector.shape_cast %126 : vector<16xf32> to vector<16x1xf32>
    %cst_44 = arith.constant 3.200000e+01 : f32
    %128 = vector.broadcast %cst_44 : f32 to vector<16x1xf32>
    %129 = arith.divf %127, %128 : vector<16x1xf32>
    %cst_45 = arith.constant 9.99999996E-13 : f32
    %130 = vector.broadcast %cst_45 : f32 to vector<16x1xf32>
    %131 = arith.addf %129, %130 : vector<16x1xf32>
    %132 = math.rsqrt %131 : vector<16x1xf32>
    %133 = vector.broadcast %132 : vector<16x1xf32> to vector<16x32xf32>
    %134 = arith.mulf %124, %133 : vector<16x32xf32>
    %135 = vector.broadcast %117 : vector<1x32xf32> to vector<16x32xf32>
    %136 = arith.mulf %134, %135 : vector<16x32xf32>
    %137 = vector.broadcast %118 : vector<1x32xf32> to vector<16x32xf32>
    %138 = arith.addf %136, %137 : vector<16x32xf32>
    %c160 = arith.constant 160 : index
    %c0_46 = arith.constant 0 : index
    %139 = vector.load %arg4[%c160, %c0_46] : memref<752x128xbf16, #tpu.memory_space<vmem>>, vector<32x96xbf16>
    %c8 = arith.constant 8 : index
    %c0_47 = arith.constant 0 : index
    %140 = vector.load %arg5[%c8, %c0_47] : memref<64x128xf32, #tpu.memory_space<vmem>>, vector<1x96xf32>
    %141 = arith.truncf %138 : vector<16x32xf32> to vector<16x32xbf16>
    %cst_48 = arith.constant dense<0.000000e+00> : vector<16x96xf32>
    %142 = tpu.matmul %141, %139, %cst_48 {dimension_numbers = #tpu.dot_dimension_numbers<[1], [0], [0], [1], [0, 0, 1, 1], [], []>} : vector<16x32xbf16>, vector<32x96xbf16>, vector<16x96xf32> -> vector<16x96xf32>
    %143 = vector.broadcast %140 : vector<1x96xf32> to vector<16x96xf32>
    %144 = arith.addf %142, %143 : vector<16x96xf32>
    %145 = arith.truncf %144 : vector<16x96xf32> to vector<16x96xbf16>
    %146 = vector.extract_strided_slice %145 {offsets = [0, 0], sizes = [16, 8], strides = [1, 1]} : vector<16x96xbf16> to vector<16x8xbf16>
    %147 = vector.extract_strided_slice %145 {offsets = [0, 8], sizes = [16, 8], strides = [1, 1]} : vector<16x96xbf16> to vector<16x8xbf16>
    %148 = vector.extract_strided_slice %145 {offsets = [0, 16], sizes = [16, 8], strides = [1, 1]} : vector<16x96xbf16> to vector<16x8xbf16>
    %149 = vector.extract_strided_slice %145 {offsets = [0, 24], sizes = [16, 8], strides = [1, 1]} : vector<16x96xbf16> to vector<16x8xbf16>
    %150 = tpu.concatenate %146, %147, %148, %149 in 0 : vector<16x8xbf16>, vector<16x8xbf16>, vector<16x8xbf16>, vector<16x8xbf16> -> vector<64x8xbf16>
    %151 = vector.extract_strided_slice %145 {offsets = [0, 32], sizes = [16, 8], strides = [1, 1]} : vector<16x96xbf16> to vector<16x8xbf16>
    %152 = vector.extract_strided_slice %145 {offsets = [0, 40], sizes = [16, 8], strides = [1, 1]} : vector<16x96xbf16> to vector<16x8xbf16>
    %153 = vector.extract_strided_slice %145 {offsets = [0, 48], sizes = [16, 8], strides = [1, 1]} : vector<16x96xbf16> to vector<16x8xbf16>
    %154 = vector.extract_strided_slice %145 {offsets = [0, 56], sizes = [16, 8], strides = [1, 1]} : vector<16x96xbf16> to vector<16x8xbf16>
    %155 = tpu.concatenate %151, %152, %153, %154 in 0 : vector<16x8xbf16>, vector<16x8xbf16>, vector<16x8xbf16>, vector<16x8xbf16> -> vector<64x8xbf16>
    %156 = vector.extract_strided_slice %145 {offsets = [0, 64], sizes = [16, 8], strides = [1, 1]} : vector<16x96xbf16> to vector<16x8xbf16>
    %157 = vector.extract_strided_slice %145 {offsets = [0, 72], sizes = [16, 8], strides = [1, 1]} : vector<16x96xbf16> to vector<16x8xbf16>
    %158 = vector.extract_strided_slice %145 {offsets = [0, 80], sizes = [16, 8], strides = [1, 1]} : vector<16x96xbf16> to vector<16x8xbf16>
    %159 = vector.extract_strided_slice %145 {offsets = [0, 88], sizes = [16, 8], strides = [1, 1]} : vector<16x96xbf16> to vector<16x8xbf16>
    %160 = tpu.concatenate %156, %157, %158, %159 in 0 : vector<16x8xbf16>, vector<16x8xbf16>, vector<16x8xbf16>, vector<16x8xbf16> -> vector<64x8xbf16>
    %cst_49 = arith.constant dense<0.000000e+00> : vector<64x64xf32>
    %161 = tpu.matmul %150, %155, %cst_49 {dimension_numbers = #tpu.dot_dimension_numbers<[1], [1], [0], [0], [0, 0, 1, 0], [], []>} : vector<64x8xbf16>, vector<64x8xbf16>, vector<64x64xf32> -> vector<64x64xf32>
    %cst_50 = arith.constant 0.353553385 : f32
    %162 = vector.broadcast %cst_50 : f32 to vector<64x64xf32>
    %163 = arith.mulf %161, %162 : vector<64x64xf32>
    %164 = arith.addf %163, %1 : vector<64x64xf32>
    %cst_51 = arith.constant dense<0xFF800000> : vector<64xf32>
    %165 = vector.multi_reduction <maximumf>, %164, %cst_51 [1] : vector<64x64xf32> to vector<64xf32>
    %166 = vector.shape_cast %165 : vector<64xf32> to vector<64x1xf32>
    %167 = vector.broadcast %166 : vector<64x1xf32> to vector<64x64xf32>
    %168 = arith.subf %164, %167 : vector<64x64xf32>
    %169 = math.exp %168 : vector<64x64xf32>
    %cst_52 = arith.constant dense<0.000000e+00> : vector<64xf32>
    %170 = vector.multi_reduction <add>, %169, %cst_52 [1] : vector<64x64xf32> to vector<64xf32>
    %171 = vector.shape_cast %170 : vector<64xf32> to vector<64x1xf32>
    %172 = tpu.reciprocal %171 {approx = true} : vector<64x1xf32> -> vector<64x1xf32>
    %173 = vector.broadcast %172 : vector<64x1xf32> to vector<64x64xf32>
    %174 = arith.mulf %169, %173 : vector<64x64xf32>
    %175 = arith.truncf %174 : vector<64x64xf32> to vector<64x64xbf16>
    %cst_53 = arith.constant dense<0.000000e+00> : vector<64x8xf32>
    %176 = tpu.matmul %175, %160, %cst_53 {dimension_numbers = #tpu.dot_dimension_numbers<[1], [0], [0], [1], [0, 0, 1, 1], [], []>} : vector<64x64xbf16>, vector<64x8xbf16>, vector<64x8xf32> -> vector<64x8xf32>
    %177 = vector.extract_strided_slice %176 {offsets = [0, 0], sizes = [16, 8], strides = [1, 1]} : vector<64x8xf32> to vector<16x8xf32>
    %178 = vector.extract_strided_slice %176 {offsets = [16, 0], sizes = [16, 8], strides = [1, 1]} : vector<64x8xf32> to vector<16x8xf32>
    %179 = vector.extract_strided_slice %176 {offsets = [32, 0], sizes = [16, 8], strides = [1, 1]} : vector<64x8xf32> to vector<16x8xf32>
    %180 = vector.extract_strided_slice %176 {offsets = [48, 0], sizes = [16, 8], strides = [1, 1]} : vector<64x8xf32> to vector<16x8xf32>
    %181 = tpu.concatenate %177, %178, %179, %180 in 1 : vector<16x8xf32>, vector<16x8xf32>, vector<16x8xf32>, vector<16x8xf32> -> vector<16x32xf32>
    %c192 = arith.constant 192 : index
    %c0_54 = arith.constant 0 : index
    %182 = vector.load %arg4[%c192, %c0_54] : memref<752x128xbf16, #tpu.memory_space<vmem>>, vector<32x32xbf16>
    %c9 = arith.constant 9 : index
    %c0_55 = arith.constant 0 : index
    %183 = vector.load %arg5[%c9, %c0_55] : memref<64x128xf32, #tpu.memory_space<vmem>>, vector<1x32xf32>
    %184 = arith.truncf %181 : vector<16x32xf32> to vector<16x32xbf16>
    %cst_56 = arith.constant dense<0.000000e+00> : vector<16x32xf32>
    %185 = tpu.matmul %184, %182, %cst_56 {dimension_numbers = #tpu.dot_dimension_numbers<[1], [0], [0], [1], [0, 0, 1, 1], [], []>} : vector<16x32xbf16>, vector<32x32xbf16>, vector<16x32xf32> -> vector<16x32xf32>
    %186 = vector.broadcast %183 : vector<1x32xf32> to vector<16x32xf32>
    %187 = arith.addf %185, %186 : vector<16x32xf32>
    %188 = arith.addf %138, %187 : vector<16x32xf32>
    %c10 = arith.constant 10 : index
    %c0_57 = arith.constant 0 : index
    %189 = vector.load %arg5[%c10, %c0_57] : memref<64x128xf32, #tpu.memory_space<vmem>>, vector<1x32xf32>
    %c11 = arith.constant 11 : index
    %c0_58 = arith.constant 0 : index
    %190 = vector.load %arg5[%c11, %c0_58] : memref<64x128xf32, #tpu.memory_space<vmem>>, vector<1x32xf32>
    %cst_59 = arith.constant dense<0.000000e+00> : vector<16xf32>
    %191 = vector.multi_reduction <add>, %188, %cst_59 [1] : vector<16x32xf32> to vector<16xf32>
    %192 = vector.shape_cast %191 : vector<16xf32> to vector<16x1xf32>
    %cst_60 = arith.constant 3.200000e+01 : f32
    %193 = vector.broadcast %cst_60 : f32 to vector<16x1xf32>
    %194 = arith.divf %192, %193 : vector<16x1xf32>
    %195 = vector.broadcast %194 : vector<16x1xf32> to vector<16x32xf32>
    %196 = arith.subf %188, %195 : vector<16x32xf32>
    %197 = arith.mulf %196, %196 : vector<16x32xf32>
    %cst_61 = arith.constant dense<0.000000e+00> : vector<16xf32>
    %198 = vector.multi_reduction <add>, %197, %cst_61 [1] : vector<16x32xf32> to vector<16xf32>
    %199 = vector.shape_cast %198 : vector<16xf32> to vector<16x1xf32>
    %cst_62 = arith.constant 3.200000e+01 : f32
    %200 = vector.broadcast %cst_62 : f32 to vector<16x1xf32>
    %201 = arith.divf %199, %200 : vector<16x1xf32>
    %cst_63 = arith.constant 9.99999996E-13 : f32
    %202 = vector.broadcast %cst_63 : f32 to vector<16x1xf32>
    %203 = arith.addf %201, %202 : vector<16x1xf32>
    %204 = math.rsqrt %203 : vector<16x1xf32>
    %205 = vector.broadcast %204 : vector<16x1xf32> to vector<16x32xf32>
    %206 = arith.mulf %196, %205 : vector<16x32xf32>
    %207 = vector.broadcast %189 : vector<1x32xf32> to vector<16x32xf32>
    %208 = arith.mulf %206, %207 : vector<16x32xf32>
    %209 = vector.broadcast %190 : vector<1x32xf32> to vector<16x32xf32>
    %210 = arith.addf %208, %209 : vector<16x32xf32>
    %c224 = arith.constant 224 : index
    %c0_64 = arith.constant 0 : index
    %211 = vector.load %arg4[%c224, %c0_64] : memref<752x128xbf16, #tpu.memory_space<vmem>>, vector<32x64xbf16>
    %c12 = arith.constant 12 : index
    %c0_65 = arith.constant 0 : index
    %212 = vector.load %arg5[%c12, %c0_65] : memref<64x128xf32, #tpu.memory_space<vmem>>, vector<1x64xf32>
    %213 = arith.truncf %210 : vector<16x32xf32> to vector<16x32xbf16>
    %cst_66 = arith.constant dense<0.000000e+00> : vector<16x64xf32>
    %214 = tpu.matmul %213, %211, %cst_66 {dimension_numbers = #tpu.dot_dimension_numbers<[1], [0], [0], [1], [0, 0, 1, 1], [], []>} : vector<16x32xbf16>, vector<32x64xbf16>, vector<16x64xf32> -> vector<16x64xf32>
    %215 = vector.broadcast %212 : vector<1x64xf32> to vector<16x64xf32>
    %216 = arith.addf %214, %215 : vector<16x64xf32>
    %cst_67 = arith.constant 5.000000e-01 : f32
    %217 = vector.broadcast %cst_67 : f32 to vector<16x64xf32>
    %218 = arith.mulf %217, %216 : vector<16x64xf32>
    %cst_68 = arith.constant 0.707106769 : f32
    %219 = vector.broadcast %cst_68 : f32 to vector<16x64xf32>
    %220 = arith.mulf %216, %219 : vector<16x64xf32>
    %221 = math.erf %220 : vector<16x64xf32>
    %cst_69 = arith.constant 1.000000e+00 : f32
    %222 = vector.broadcast %cst_69 : f32 to vector<16x64xf32>
    %223 = arith.addf %222, %221 : vector<16x64xf32>
    %224 = arith.mulf %218, %223 : vector<16x64xf32>
    %c256 = arith.constant 256 : index
    %c0_70 = arith.constant 0 : index
    %225 = vector.load %arg4[%c256, %c0_70] : memref<752x128xbf16, #tpu.memory_space<vmem>>, vector<64x32xbf16>
    %c13 = arith.constant 13 : index
    %c0_71 = arith.constant 0 : index
    %226 = vector.load %arg5[%c13, %c0_71] : memref<64x128xf32, #tpu.memory_space<vmem>>, vector<1x32xf32>
    %227 = arith.truncf %224 : vector<16x64xf32> to vector<16x64xbf16>
    %cst_72 = arith.constant dense<0.000000e+00> : vector<16x32xf32>
    %228 = tpu.matmul %227, %225, %cst_72 {dimension_numbers = #tpu.dot_dimension_numbers<[1], [0], [0], [1], [0, 0, 1, 1], [], []>} : vector<16x64xbf16>, vector<64x32xbf16>, vector<16x32xf32> -> vector<16x32xf32>
    %229 = vector.broadcast %226 : vector<1x32xf32> to vector<16x32xf32>
    %230 = arith.addf %228, %229 : vector<16x32xf32>
    %231 = arith.addf %210, %230 : vector<16x32xf32>
    %c14 = arith.constant 14 : index
    %c0_73 = arith.constant 0 : index
    %232 = vector.load %arg5[%c14, %c0_73] : memref<64x128xf32, #tpu.memory_space<vmem>>, vector<1x32xf32>
    %c15 = arith.constant 15 : index
    %c0_74 = arith.constant 0 : index
    %233 = vector.load %arg5[%c15, %c0_74] : memref<64x128xf32, #tpu.memory_space<vmem>>, vector<1x32xf32>
    %cst_75 = arith.constant dense<0.000000e+00> : vector<16xf32>
    %234 = vector.multi_reduction <add>, %231, %cst_75 [1] : vector<16x32xf32> to vector<16xf32>
    %235 = vector.shape_cast %234 : vector<16xf32> to vector<16x1xf32>
    %cst_76 = arith.constant 3.200000e+01 : f32
    %236 = vector.broadcast %cst_76 : f32 to vector<16x1xf32>
    %237 = arith.divf %235, %236 : vector<16x1xf32>
    %238 = vector.broadcast %237 : vector<16x1xf32> to vector<16x32xf32>
    %239 = arith.subf %231, %238 : vector<16x32xf32>
    %240 = arith.mulf %239, %239 : vector<16x32xf32>
    %cst_77 = arith.constant dense<0.000000e+00> : vector<16xf32>
    %241 = vector.multi_reduction <add>, %240, %cst_77 [1] : vector<16x32xf32> to vector<16xf32>
    %242 = vector.shape_cast %241 : vector<16xf32> to vector<16x1xf32>
    %cst_78 = arith.constant 3.200000e+01 : f32
    %243 = vector.broadcast %cst_78 : f32 to vector<16x1xf32>
    %244 = arith.divf %242, %243 : vector<16x1xf32>
    %cst_79 = arith.constant 9.99999996E-13 : f32
    %245 = vector.broadcast %cst_79 : f32 to vector<16x1xf32>
    %246 = arith.addf %244, %245 : vector<16x1xf32>
    %247 = math.rsqrt %246 : vector<16x1xf32>
    %248 = vector.broadcast %247 : vector<16x1xf32> to vector<16x32xf32>
    %249 = arith.mulf %239, %248 : vector<16x32xf32>
    %250 = vector.broadcast %232 : vector<1x32xf32> to vector<16x32xf32>
    %251 = arith.mulf %249, %250 : vector<16x32xf32>
    %252 = vector.broadcast %233 : vector<1x32xf32> to vector<16x32xf32>
    %253 = arith.addf %251, %252 : vector<16x32xf32>
    %254 = vector.extract_strided_slice %253 {offsets = [0, 0], sizes = [1, 32], strides = [1, 1]} : vector<16x32xf32> to vector<1x32xf32>
    %255 = vector.extract_strided_slice %253 {offsets = [8, 0], sizes = [1, 32], strides = [1, 1]} : vector<16x32xf32> to vector<1x32xf32>
    %256 = tpu.concatenate %254, %255 in 0 : vector<1x32xf32>, vector<1x32xf32> -> vector<2x32xf32>
    %c640 = arith.constant 640 : index
    %c0_80 = arith.constant 0 : index
    %257 = vector.load %arg4[%c640, %c0_80] : memref<752x128xbf16, #tpu.memory_space<vmem>>, vector<32x32xbf16>
    %c36 = arith.constant 36 : index
    %c0_81 = arith.constant 0 : index
    %258 = vector.load %arg5[%c36, %c0_81] : memref<64x128xf32, #tpu.memory_space<vmem>>, vector<1x32xf32>
    %259 = arith.truncf %256 : vector<2x32xf32> to vector<2x32xbf16>
    %cst_82 = arith.constant dense<0.000000e+00> : vector<2x32xf32>
    %260 = tpu.matmul %259, %257, %cst_82 {dimension_numbers = #tpu.dot_dimension_numbers<[1], [0], [0], [1], [0, 0, 1, 1], [], []>} : vector<2x32xbf16>, vector<32x32xbf16>, vector<2x32xf32> -> vector<2x32xf32>
    %261 = vector.broadcast %258 : vector<1x32xf32> to vector<2x32xf32>
    %262 = arith.addf %260, %261 : vector<2x32xf32>
    %263 = vector.extract_strided_slice %262 {offsets = [0, 0], sizes = [2, 16], strides = [1, 1]} : vector<2x32xf32> to vector<2x16xf32>
    %264 = vector.extract_strided_slice %262 {offsets = [0, 16], sizes = [2, 16], strides = [1, 1]} : vector<2x32xf32> to vector<2x16xf32>
    %cst_83 = arith.constant 0.000000e+00 : f32
    %265 = vector.broadcast %cst_83 : f32 to vector<2x16xf32>
    %266 = arith.maximumf %264, %265 : vector<2x16xf32>
    %267 = math.absf %264 : vector<2x16xf32>
    %cst_84 = arith.constant 0.000000e+00 : f32
    %268 = vector.broadcast %cst_84 : f32 to vector<2x16xf32>
    %269 = arith.subf %268, %267 : vector<2x16xf32>
    %270 = math.exp %269 : vector<2x16xf32>
    %271 = math.log1p %270 : vector<2x16xf32>
    %272 = arith.addf %266, %271 : vector<2x16xf32>
    %c0_85 = arith.constant 0 : index
    %c0_86 = arith.constant 0 : index
    %273 = vector.load %arg3[%c0_85, %c0_86] : memref<2x16xf32, #tpu.memory_space<vmem>>, vector<2x16xf32>
    %274 = arith.mulf %272, %273 : vector<2x16xf32>
    %275 = arith.addf %263, %274 : vector<2x16xf32>
    %c672 = arith.constant 672 : index
    %c0_87 = arith.constant 0 : index
    %276 = vector.load %arg4[%c672, %c0_87] : memref<752x128xbf16, #tpu.memory_space<vmem>>, vector<16x32xbf16>
    %c37 = arith.constant 37 : index
    %c0_88 = arith.constant 0 : index
    %277 = vector.load %arg5[%c37, %c0_88] : memref<64x128xf32, #tpu.memory_space<vmem>>, vector<1x32xf32>
    %278 = arith.truncf %275 : vector<2x16xf32> to vector<2x16xbf16>
    %cst_89 = arith.constant dense<0.000000e+00> : vector<2x32xf32>
    %279 = tpu.matmul %278, %276, %cst_89 {dimension_numbers = #tpu.dot_dimension_numbers<[1], [0], [0], [1], [0, 0, 1, 1], [], []>} : vector<2x16xbf16>, vector<16x32xbf16>, vector<2x32xf32> -> vector<2x32xf32>
    %280 = vector.broadcast %277 : vector<1x32xf32> to vector<2x32xf32>
    %281 = arith.addf %279, %280 : vector<2x32xf32>
    %c48 = arith.constant 48 : index
    %c0_90 = arith.constant 0 : index
    %282 = vector.load %arg5[%c48, %c0_90] : memref<64x128xf32, #tpu.memory_space<vmem>>, vector<8x32xf32>
    %283 = tpu.iota {dimensions = array<i32: 0>} : vector<16x1xi32>
    %c0_i32 = arith.constant 0 : i32
    %284 = vector.broadcast %c0_i32 : i32 to vector<16x1xi32>
    %285 = arith.cmpi eq, %283, %284 : vector<16x1xi32>
    %c8_i32 = arith.constant 8 : i32
    %286 = vector.broadcast %c8_i32 : i32 to vector<16x1xi32>
    %287 = arith.cmpi eq, %283, %286 : vector<16x1xi32>
    %288 = arith.ori %285, %287 : vector<16x1xi1>
    %289 = vector.extract_strided_slice %281 {offsets = [0, 0], sizes = [1, 32], strides = [1, 1]} : vector<2x32xf32> to vector<1x32xf32>
    %290 = vector.shape_cast %289 : vector<1x32xf32> to vector<1x32xf32>
    %291 = vector.broadcast %290 : vector<1x32xf32> to vector<8x32xf32>
    %292 = vector.extract_strided_slice %281 {offsets = [1, 0], sizes = [1, 32], strides = [1, 1]} : vector<2x32xf32> to vector<1x32xf32>
    %293 = vector.shape_cast %292 : vector<1x32xf32> to vector<1x32xf32>
    %294 = vector.broadcast %293 : vector<1x32xf32> to vector<8x32xf32>
    %295 = tpu.concatenate %291, %294 in 0 : vector<8x32xf32>, vector<8x32xf32> -> vector<16x32xf32>
    %296 = vector.shape_cast %288 : vector<16x1xi1> to vector<16x1xi1>
    %297 = vector.broadcast %296 : vector<16x1xi1> to vector<16x32xi1>
    %298 = arith.select %297, %295, %253 : vector<16x32xi1>, vector<16x32xf32>
    %299 = tpu.concatenate %282, %282 in 0 : vector<8x32xf32>, vector<8x32xf32> -> vector<16x32xf32>
    %300 = arith.addf %298, %299 : vector<16x32xf32>
    %c34 = arith.constant 34 : index
    %c0_91 = arith.constant 0 : index
    %301 = vector.load %arg5[%c34, %c0_91] : memref<64x128xf32, #tpu.memory_space<vmem>>, vector<1x32xf32>
    %c35 = arith.constant 35 : index
    %c0_92 = arith.constant 0 : index
    %302 = vector.load %arg5[%c35, %c0_92] : memref<64x128xf32, #tpu.memory_space<vmem>>, vector<1x32xf32>
    %cst_93 = arith.constant dense<0.000000e+00> : vector<16xf32>
    %303 = vector.multi_reduction <add>, %300, %cst_93 [1] : vector<16x32xf32> to vector<16xf32>
    %304 = vector.shape_cast %303 : vector<16xf32> to vector<16x1xf32>
    %cst_94 = arith.constant 3.200000e+01 : f32
    %305 = vector.broadcast %cst_94 : f32 to vector<16x1xf32>
    %306 = arith.divf %304, %305 : vector<16x1xf32>
    %307 = vector.broadcast %306 : vector<16x1xf32> to vector<16x32xf32>
    %308 = arith.subf %300, %307 : vector<16x32xf32>
    %309 = arith.mulf %308, %308 : vector<16x32xf32>
    %cst_95 = arith.constant dense<0.000000e+00> : vector<16xf32>
    %310 = vector.multi_reduction <add>, %309, %cst_95 [1] : vector<16x32xf32> to vector<16xf32>
    %311 = vector.shape_cast %310 : vector<16xf32> to vector<16x1xf32>
    %cst_96 = arith.constant 3.200000e+01 : f32
    %312 = vector.broadcast %cst_96 : f32 to vector<16x1xf32>
    %313 = arith.divf %311, %312 : vector<16x1xf32>
    %cst_97 = arith.constant 9.99999996E-13 : f32
    %314 = vector.broadcast %cst_97 : f32 to vector<16x1xf32>
    %315 = arith.addf %313, %314 : vector<16x1xf32>
    %316 = math.rsqrt %315 : vector<16x1xf32>
    %317 = vector.broadcast %316 : vector<16x1xf32> to vector<16x32xf32>
    %318 = arith.mulf %308, %317 : vector<16x32xf32>
    %319 = vector.broadcast %301 : vector<1x32xf32> to vector<16x32xf32>
    %320 = arith.mulf %318, %319 : vector<16x32xf32>
    %321 = vector.broadcast %302 : vector<1x32xf32> to vector<16x32xf32>
    %322 = arith.addf %320, %321 : vector<16x32xf32>
    %c320 = arith.constant 320 : index
    %c0_98 = arith.constant 0 : index
    %323 = vector.load %arg4[%c320, %c0_98] : memref<752x128xbf16, #tpu.memory_space<vmem>>, vector<32x96xbf16>
    %c16 = arith.constant 16 : index
    %c0_99 = arith.constant 0 : index
    %324 = vector.load %arg5[%c16, %c0_99] : memref<64x128xf32, #tpu.memory_space<vmem>>, vector<1x96xf32>
    %325 = arith.truncf %322 : vector<16x32xf32> to vector<16x32xbf16>
    %cst_100 = arith.constant dense<0.000000e+00> : vector<16x96xf32>
    %326 = tpu.matmul %325, %323, %cst_100 {dimension_numbers = #tpu.dot_dimension_numbers<[1], [0], [0], [1], [0, 0, 1, 1], [], []>} : vector<16x32xbf16>, vector<32x96xbf16>, vector<16x96xf32> -> vector<16x96xf32>
    %327 = vector.broadcast %324 : vector<1x96xf32> to vector<16x96xf32>
    %328 = arith.addf %326, %327 : vector<16x96xf32>
    %329 = arith.truncf %328 : vector<16x96xf32> to vector<16x96xbf16>
    %330 = vector.extract_strided_slice %329 {offsets = [0, 0], sizes = [16, 8], strides = [1, 1]} : vector<16x96xbf16> to vector<16x8xbf16>
    %331 = vector.extract_strided_slice %329 {offsets = [0, 8], sizes = [16, 8], strides = [1, 1]} : vector<16x96xbf16> to vector<16x8xbf16>
    %332 = vector.extract_strided_slice %329 {offsets = [0, 16], sizes = [16, 8], strides = [1, 1]} : vector<16x96xbf16> to vector<16x8xbf16>
    %333 = vector.extract_strided_slice %329 {offsets = [0, 24], sizes = [16, 8], strides = [1, 1]} : vector<16x96xbf16> to vector<16x8xbf16>
    %334 = tpu.concatenate %330, %331, %332, %333 in 0 : vector<16x8xbf16>, vector<16x8xbf16>, vector<16x8xbf16>, vector<16x8xbf16> -> vector<64x8xbf16>
    %335 = vector.extract_strided_slice %329 {offsets = [0, 32], sizes = [16, 8], strides = [1, 1]} : vector<16x96xbf16> to vector<16x8xbf16>
    %336 = vector.extract_strided_slice %329 {offsets = [0, 40], sizes = [16, 8], strides = [1, 1]} : vector<16x96xbf16> to vector<16x8xbf16>
    %337 = vector.extract_strided_slice %329 {offsets = [0, 48], sizes = [16, 8], strides = [1, 1]} : vector<16x96xbf16> to vector<16x8xbf16>
    %338 = vector.extract_strided_slice %329 {offsets = [0, 56], sizes = [16, 8], strides = [1, 1]} : vector<16x96xbf16> to vector<16x8xbf16>
    %339 = tpu.concatenate %335, %336, %337, %338 in 0 : vector<16x8xbf16>, vector<16x8xbf16>, vector<16x8xbf16>, vector<16x8xbf16> -> vector<64x8xbf16>
    %340 = vector.extract_strided_slice %329 {offsets = [0, 64], sizes = [16, 8], strides = [1, 1]} : vector<16x96xbf16> to vector<16x8xbf16>
    %341 = vector.extract_strided_slice %329 {offsets = [0, 72], sizes = [16, 8], strides = [1, 1]} : vector<16x96xbf16> to vector<16x8xbf16>
    %342 = vector.extract_strided_slice %329 {offsets = [0, 80], sizes = [16, 8], strides = [1, 1]} : vector<16x96xbf16> to vector<16x8xbf16>
    %343 = vector.extract_strided_slice %329 {offsets = [0, 88], sizes = [16, 8], strides = [1, 1]} : vector<16x96xbf16> to vector<16x8xbf16>
    %344 = tpu.concatenate %340, %341, %342, %343 in 0 : vector<16x8xbf16>, vector<16x8xbf16>, vector<16x8xbf16>, vector<16x8xbf16> -> vector<64x8xbf16>
    %cst_101 = arith.constant dense<0.000000e+00> : vector<64x64xf32>
    %345 = tpu.matmul %334, %339, %cst_101 {dimension_numbers = #tpu.dot_dimension_numbers<[1], [1], [0], [0], [0, 0, 1, 0], [], []>} : vector<64x8xbf16>, vector<64x8xbf16>, vector<64x64xf32> -> vector<64x64xf32>
    %cst_102 = arith.constant 0.353553385 : f32
    %346 = vector.broadcast %cst_102 : f32 to vector<64x64xf32>
    %347 = arith.mulf %345, %346 : vector<64x64xf32>
    %348 = arith.addf %347, %1 : vector<64x64xf32>
    %cst_103 = arith.constant dense<0xFF800000> : vector<64xf32>
    %349 = vector.multi_reduction <maximumf>, %348, %cst_103 [1] : vector<64x64xf32> to vector<64xf32>
    %350 = vector.shape_cast %349 : vector<64xf32> to vector<64x1xf32>
    %351 = vector.broadcast %350 : vector<64x1xf32> to vector<64x64xf32>
    %352 = arith.subf %348, %351 : vector<64x64xf32>
    %353 = math.exp %352 : vector<64x64xf32>
    %cst_104 = arith.constant dense<0.000000e+00> : vector<64xf32>
    %354 = vector.multi_reduction <add>, %353, %cst_104 [1] : vector<64x64xf32> to vector<64xf32>
    %355 = vector.shape_cast %354 : vector<64xf32> to vector<64x1xf32>
    %356 = tpu.reciprocal %355 {approx = true} : vector<64x1xf32> -> vector<64x1xf32>
    %357 = vector.broadcast %356 : vector<64x1xf32> to vector<64x64xf32>
    %358 = arith.mulf %353, %357 : vector<64x64xf32>
    %359 = arith.truncf %358 : vector<64x64xf32> to vector<64x64xbf16>
    %cst_105 = arith.constant dense<0.000000e+00> : vector<64x8xf32>
    %360 = tpu.matmul %359, %344, %cst_105 {dimension_numbers = #tpu.dot_dimension_numbers<[1], [0], [0], [1], [0, 0, 1, 1], [], []>} : vector<64x64xbf16>, vector<64x8xbf16>, vector<64x8xf32> -> vector<64x8xf32>
    %361 = vector.extract_strided_slice %360 {offsets = [0, 0], sizes = [16, 8], strides = [1, 1]} : vector<64x8xf32> to vector<16x8xf32>
    %362 = vector.extract_strided_slice %360 {offsets = [16, 0], sizes = [16, 8], strides = [1, 1]} : vector<64x8xf32> to vector<16x8xf32>
    %363 = vector.extract_strided_slice %360 {offsets = [32, 0], sizes = [16, 8], strides = [1, 1]} : vector<64x8xf32> to vector<16x8xf32>
    %364 = vector.extract_strided_slice %360 {offsets = [48, 0], sizes = [16, 8], strides = [1, 1]} : vector<64x8xf32> to vector<16x8xf32>
    %365 = tpu.concatenate %361, %362, %363, %364 in 1 : vector<16x8xf32>, vector<16x8xf32>, vector<16x8xf32>, vector<16x8xf32> -> vector<16x32xf32>
    %c352 = arith.constant 352 : index
    %c0_106 = arith.constant 0 : index
    %366 = vector.load %arg4[%c352, %c0_106] : memref<752x128xbf16, #tpu.memory_space<vmem>>, vector<32x32xbf16>
    %c17 = arith.constant 17 : index
    %c0_107 = arith.constant 0 : index
    %367 = vector.load %arg5[%c17, %c0_107] : memref<64x128xf32, #tpu.memory_space<vmem>>, vector<1x32xf32>
    %368 = arith.truncf %365 : vector<16x32xf32> to vector<16x32xbf16>
    %cst_108 = arith.constant dense<0.000000e+00> : vector<16x32xf32>
    %369 = tpu.matmul %368, %366, %cst_108 {dimension_numbers = #tpu.dot_dimension_numbers<[1], [0], [0], [1], [0, 0, 1, 1], [], []>} : vector<16x32xbf16>, vector<32x32xbf16>, vector<16x32xf32> -> vector<16x32xf32>
    %370 = vector.broadcast %367 : vector<1x32xf32> to vector<16x32xf32>
    %371 = arith.addf %369, %370 : vector<16x32xf32>
    %372 = arith.addf %322, %371 : vector<16x32xf32>
    %c18 = arith.constant 18 : index
    %c0_109 = arith.constant 0 : index
    %373 = vector.load %arg5[%c18, %c0_109] : memref<64x128xf32, #tpu.memory_space<vmem>>, vector<1x32xf32>
    %c19 = arith.constant 19 : index
    %c0_110 = arith.constant 0 : index
    %374 = vector.load %arg5[%c19, %c0_110] : memref<64x128xf32, #tpu.memory_space<vmem>>, vector<1x32xf32>
    %cst_111 = arith.constant dense<0.000000e+00> : vector<16xf32>
    %375 = vector.multi_reduction <add>, %372, %cst_111 [1] : vector<16x32xf32> to vector<16xf32>
    %376 = vector.shape_cast %375 : vector<16xf32> to vector<16x1xf32>
    %cst_112 = arith.constant 3.200000e+01 : f32
    %377 = vector.broadcast %cst_112 : f32 to vector<16x1xf32>
    %378 = arith.divf %376, %377 : vector<16x1xf32>
    %379 = vector.broadcast %378 : vector<16x1xf32> to vector<16x32xf32>
    %380 = arith.subf %372, %379 : vector<16x32xf32>
    %381 = arith.mulf %380, %380 : vector<16x32xf32>
    %cst_113 = arith.constant dense<0.000000e+00> : vector<16xf32>
    %382 = vector.multi_reduction <add>, %381, %cst_113 [1] : vector<16x32xf32> to vector<16xf32>
    %383 = vector.shape_cast %382 : vector<16xf32> to vector<16x1xf32>
    %cst_114 = arith.constant 3.200000e+01 : f32
    %384 = vector.broadcast %cst_114 : f32 to vector<16x1xf32>
    %385 = arith.divf %383, %384 : vector<16x1xf32>
    %cst_115 = arith.constant 9.99999996E-13 : f32
    %386 = vector.broadcast %cst_115 : f32 to vector<16x1xf32>
    %387 = arith.addf %385, %386 : vector<16x1xf32>
    %388 = math.rsqrt %387 : vector<16x1xf32>
    %389 = vector.broadcast %388 : vector<16x1xf32> to vector<16x32xf32>
    %390 = arith.mulf %380, %389 : vector<16x32xf32>
    %391 = vector.broadcast %373 : vector<1x32xf32> to vector<16x32xf32>
    %392 = arith.mulf %390, %391 : vector<16x32xf32>
    %393 = vector.broadcast %374 : vector<1x32xf32> to vector<16x32xf32>
    %394 = arith.addf %392, %393 : vector<16x32xf32>
    %c384 = arith.constant 384 : index
    %c0_116 = arith.constant 0 : index
    %395 = vector.load %arg4[%c384, %c0_116] : memref<752x128xbf16, #tpu.memory_space<vmem>>, vector<32x64xbf16>
    %c20 = arith.constant 20 : index
    %c0_117 = arith.constant 0 : index
    %396 = vector.load %arg5[%c20, %c0_117] : memref<64x128xf32, #tpu.memory_space<vmem>>, vector<1x64xf32>
    %397 = arith.truncf %394 : vector<16x32xf32> to vector<16x32xbf16>
    %cst_118 = arith.constant dense<0.000000e+00> : vector<16x64xf32>
    %398 = tpu.matmul %397, %395, %cst_118 {dimension_numbers = #tpu.dot_dimension_numbers<[1], [0], [0], [1], [0, 0, 1, 1], [], []>} : vector<16x32xbf16>, vector<32x64xbf16>, vector<16x64xf32> -> vector<16x64xf32>
    %399 = vector.broadcast %396 : vector<1x64xf32> to vector<16x64xf32>
    %400 = arith.addf %398, %399 : vector<16x64xf32>
    %cst_119 = arith.constant 5.000000e-01 : f32
    %401 = vector.broadcast %cst_119 : f32 to vector<16x64xf32>
    %402 = arith.mulf %401, %400 : vector<16x64xf32>
    %cst_120 = arith.constant 0.707106769 : f32
    %403 = vector.broadcast %cst_120 : f32 to vector<16x64xf32>
    %404 = arith.mulf %400, %403 : vector<16x64xf32>
    %405 = math.erf %404 : vector<16x64xf32>
    %cst_121 = arith.constant 1.000000e+00 : f32
    %406 = vector.broadcast %cst_121 : f32 to vector<16x64xf32>
    %407 = arith.addf %406, %405 : vector<16x64xf32>
    %408 = arith.mulf %402, %407 : vector<16x64xf32>
    %c416 = arith.constant 416 : index
    %c0_122 = arith.constant 0 : index
    %409 = vector.load %arg4[%c416, %c0_122] : memref<752x128xbf16, #tpu.memory_space<vmem>>, vector<64x32xbf16>
    %c21 = arith.constant 21 : index
    %c0_123 = arith.constant 0 : index
    %410 = vector.load %arg5[%c21, %c0_123] : memref<64x128xf32, #tpu.memory_space<vmem>>, vector<1x32xf32>
    %411 = arith.truncf %408 : vector<16x64xf32> to vector<16x64xbf16>
    %cst_124 = arith.constant dense<0.000000e+00> : vector<16x32xf32>
    %412 = tpu.matmul %411, %409, %cst_124 {dimension_numbers = #tpu.dot_dimension_numbers<[1], [0], [0], [1], [0, 0, 1, 1], [], []>} : vector<16x64xbf16>, vector<64x32xbf16>, vector<16x32xf32> -> vector<16x32xf32>
    %413 = vector.broadcast %410 : vector<1x32xf32> to vector<16x32xf32>
    %414 = arith.addf %412, %413 : vector<16x32xf32>
    %415 = arith.addf %394, %414 : vector<16x32xf32>
    %c22 = arith.constant 22 : index
    %c0_125 = arith.constant 0 : index
    %416 = vector.load %arg5[%c22, %c0_125] : memref<64x128xf32, #tpu.memory_space<vmem>>, vector<1x32xf32>
    %c23 = arith.constant 23 : index
    %c0_126 = arith.constant 0 : index
    %417 = vector.load %arg5[%c23, %c0_126] : memref<64x128xf32, #tpu.memory_space<vmem>>, vector<1x32xf32>
    %cst_127 = arith.constant dense<0.000000e+00> : vector<16xf32>
    %418 = vector.multi_reduction <add>, %415, %cst_127 [1] : vector<16x32xf32> to vector<16xf32>
    %419 = vector.shape_cast %418 : vector<16xf32> to vector<16x1xf32>
    %cst_128 = arith.constant 3.200000e+01 : f32
    %420 = vector.broadcast %cst_128 : f32 to vector<16x1xf32>
    %421 = arith.divf %419, %420 : vector<16x1xf32>
    %422 = vector.broadcast %421 : vector<16x1xf32> to vector<16x32xf32>
    %423 = arith.subf %415, %422 : vector<16x32xf32>
    %424 = arith.mulf %423, %423 : vector<16x32xf32>
    %cst_129 = arith.constant dense<0.000000e+00> : vector<16xf32>
    %425 = vector.multi_reduction <add>, %424, %cst_129 [1] : vector<16x32xf32> to vector<16xf32>
    %426 = vector.shape_cast %425 : vector<16xf32> to vector<16x1xf32>
    %cst_130 = arith.constant 3.200000e+01 : f32
    %427 = vector.broadcast %cst_130 : f32 to vector<16x1xf32>
    %428 = arith.divf %426, %427 : vector<16x1xf32>
    %cst_131 = arith.constant 9.99999996E-13 : f32
    %429 = vector.broadcast %cst_131 : f32 to vector<16x1xf32>
    %430 = arith.addf %428, %429 : vector<16x1xf32>
    %431 = math.rsqrt %430 : vector<16x1xf32>
    %432 = vector.broadcast %431 : vector<16x1xf32> to vector<16x32xf32>
    %433 = arith.mulf %423, %432 : vector<16x32xf32>
    %434 = vector.broadcast %416 : vector<1x32xf32> to vector<16x32xf32>
    %435 = arith.mulf %433, %434 : vector<16x32xf32>
    %436 = vector.broadcast %417 : vector<1x32xf32> to vector<16x32xf32>
    %437 = arith.addf %435, %436 : vector<16x32xf32>
    %c480 = arith.constant 480 : index
    %c0_132 = arith.constant 0 : index
    %438 = vector.load %arg4[%c480, %c0_132] : memref<752x128xbf16, #tpu.memory_space<vmem>>, vector<32x96xbf16>
    %c24 = arith.constant 24 : index
    %c0_133 = arith.constant 0 : index
    %439 = vector.load %arg5[%c24, %c0_133] : memref<64x128xf32, #tpu.memory_space<vmem>>, vector<1x96xf32>
    %440 = arith.truncf %437 : vector<16x32xf32> to vector<16x32xbf16>
    %cst_134 = arith.constant dense<0.000000e+00> : vector<16x96xf32>
    %441 = tpu.matmul %440, %438, %cst_134 {dimension_numbers = #tpu.dot_dimension_numbers<[1], [0], [0], [1], [0, 0, 1, 1], [], []>} : vector<16x32xbf16>, vector<32x96xbf16>, vector<16x96xf32> -> vector<16x96xf32>
    %442 = vector.broadcast %439 : vector<1x96xf32> to vector<16x96xf32>
    %443 = arith.addf %441, %442 : vector<16x96xf32>
    %444 = arith.truncf %443 : vector<16x96xf32> to vector<16x96xbf16>
    %445 = vector.extract_strided_slice %444 {offsets = [0, 0], sizes = [16, 8], strides = [1, 1]} : vector<16x96xbf16> to vector<16x8xbf16>
    %446 = vector.extract_strided_slice %444 {offsets = [0, 8], sizes = [16, 8], strides = [1, 1]} : vector<16x96xbf16> to vector<16x8xbf16>
    %447 = vector.extract_strided_slice %444 {offsets = [0, 16], sizes = [16, 8], strides = [1, 1]} : vector<16x96xbf16> to vector<16x8xbf16>
    %448 = vector.extract_strided_slice %444 {offsets = [0, 24], sizes = [16, 8], strides = [1, 1]} : vector<16x96xbf16> to vector<16x8xbf16>
    %449 = tpu.concatenate %445, %446, %447, %448 in 0 : vector<16x8xbf16>, vector<16x8xbf16>, vector<16x8xbf16>, vector<16x8xbf16> -> vector<64x8xbf16>
    %450 = vector.extract_strided_slice %444 {offsets = [0, 32], sizes = [16, 8], strides = [1, 1]} : vector<16x96xbf16> to vector<16x8xbf16>
    %451 = vector.extract_strided_slice %444 {offsets = [0, 40], sizes = [16, 8], strides = [1, 1]} : vector<16x96xbf16> to vector<16x8xbf16>
    %452 = vector.extract_strided_slice %444 {offsets = [0, 48], sizes = [16, 8], strides = [1, 1]} : vector<16x96xbf16> to vector<16x8xbf16>
    %453 = vector.extract_strided_slice %444 {offsets = [0, 56], sizes = [16, 8], strides = [1, 1]} : vector<16x96xbf16> to vector<16x8xbf16>
    %454 = tpu.concatenate %450, %451, %452, %453 in 0 : vector<16x8xbf16>, vector<16x8xbf16>, vector<16x8xbf16>, vector<16x8xbf16> -> vector<64x8xbf16>
    %455 = vector.extract_strided_slice %444 {offsets = [0, 64], sizes = [16, 8], strides = [1, 1]} : vector<16x96xbf16> to vector<16x8xbf16>
    %456 = vector.extract_strided_slice %444 {offsets = [0, 72], sizes = [16, 8], strides = [1, 1]} : vector<16x96xbf16> to vector<16x8xbf16>
    %457 = vector.extract_strided_slice %444 {offsets = [0, 80], sizes = [16, 8], strides = [1, 1]} : vector<16x96xbf16> to vector<16x8xbf16>
    %458 = vector.extract_strided_slice %444 {offsets = [0, 88], sizes = [16, 8], strides = [1, 1]} : vector<16x96xbf16> to vector<16x8xbf16>
    %459 = tpu.concatenate %455, %456, %457, %458 in 0 : vector<16x8xbf16>, vector<16x8xbf16>, vector<16x8xbf16>, vector<16x8xbf16> -> vector<64x8xbf16>
    %cst_135 = arith.constant dense<0.000000e+00> : vector<64x64xf32>
    %460 = tpu.matmul %449, %454, %cst_135 {dimension_numbers = #tpu.dot_dimension_numbers<[1], [1], [0], [0], [0, 0, 1, 0], [], []>} : vector<64x8xbf16>, vector<64x8xbf16>, vector<64x64xf32> -> vector<64x64xf32>
    %cst_136 = arith.constant 0.353553385 : f32
    %461 = vector.broadcast %cst_136 : f32 to vector<64x64xf32>
    %462 = arith.mulf %460, %461 : vector<64x64xf32>
    %463 = arith.addf %462, %1 : vector<64x64xf32>
    %cst_137 = arith.constant dense<0xFF800000> : vector<64xf32>
    %464 = vector.multi_reduction <maximumf>, %463, %cst_137 [1] : vector<64x64xf32> to vector<64xf32>
    %465 = vector.shape_cast %464 : vector<64xf32> to vector<64x1xf32>
    %466 = vector.broadcast %465 : vector<64x1xf32> to vector<64x64xf32>
    %467 = arith.subf %463, %466 : vector<64x64xf32>
    %468 = math.exp %467 : vector<64x64xf32>
    %cst_138 = arith.constant dense<0.000000e+00> : vector<64xf32>
    %469 = vector.multi_reduction <add>, %468, %cst_138 [1] : vector<64x64xf32> to vector<64xf32>
    %470 = vector.shape_cast %469 : vector<64xf32> to vector<64x1xf32>
    %471 = tpu.reciprocal %470 {approx = true} : vector<64x1xf32> -> vector<64x1xf32>
    %472 = vector.broadcast %471 : vector<64x1xf32> to vector<64x64xf32>
    %473 = arith.mulf %468, %472 : vector<64x64xf32>
    %474 = arith.truncf %473 : vector<64x64xf32> to vector<64x64xbf16>
    %cst_139 = arith.constant dense<0.000000e+00> : vector<64x8xf32>
    %475 = tpu.matmul %474, %459, %cst_139 {dimension_numbers = #tpu.dot_dimension_numbers<[1], [0], [0], [1], [0, 0, 1, 1], [], []>} : vector<64x64xbf16>, vector<64x8xbf16>, vector<64x8xf32> -> vector<64x8xf32>
    %476 = vector.extract_strided_slice %475 {offsets = [0, 0], sizes = [16, 8], strides = [1, 1]} : vector<64x8xf32> to vector<16x8xf32>
    %477 = vector.extract_strided_slice %475 {offsets = [16, 0], sizes = [16, 8], strides = [1, 1]} : vector<64x8xf32> to vector<16x8xf32>
    %478 = vector.extract_strided_slice %475 {offsets = [32, 0], sizes = [16, 8], strides = [1, 1]} : vector<64x8xf32> to vector<16x8xf32>
    %479 = vector.extract_strided_slice %475 {offsets = [48, 0], sizes = [16, 8], strides = [1, 1]} : vector<64x8xf32> to vector<16x8xf32>
    %480 = tpu.concatenate %476, %477, %478, %479 in 1 : vector<16x8xf32>, vector<16x8xf32>, vector<16x8xf32>, vector<16x8xf32> -> vector<16x32xf32>
    %c512 = arith.constant 512 : index
    %c0_140 = arith.constant 0 : index
    %481 = vector.load %arg4[%c512, %c0_140] : memref<752x128xbf16, #tpu.memory_space<vmem>>, vector<32x32xbf16>
    %c25 = arith.constant 25 : index
    %c0_141 = arith.constant 0 : index
    %482 = vector.load %arg5[%c25, %c0_141] : memref<64x128xf32, #tpu.memory_space<vmem>>, vector<1x32xf32>
    %483 = arith.truncf %480 : vector<16x32xf32> to vector<16x32xbf16>
    %cst_142 = arith.constant dense<0.000000e+00> : vector<16x32xf32>
    %484 = tpu.matmul %483, %481, %cst_142 {dimension_numbers = #tpu.dot_dimension_numbers<[1], [0], [0], [1], [0, 0, 1, 1], [], []>} : vector<16x32xbf16>, vector<32x32xbf16>, vector<16x32xf32> -> vector<16x32xf32>
    %485 = vector.broadcast %482 : vector<1x32xf32> to vector<16x32xf32>
    %486 = arith.addf %484, %485 : vector<16x32xf32>
    %487 = arith.addf %437, %486 : vector<16x32xf32>
    %c26 = arith.constant 26 : index
    %c0_143 = arith.constant 0 : index
    %488 = vector.load %arg5[%c26, %c0_143] : memref<64x128xf32, #tpu.memory_space<vmem>>, vector<1x32xf32>
    %c27 = arith.constant 27 : index
    %c0_144 = arith.constant 0 : index
    %489 = vector.load %arg5[%c27, %c0_144] : memref<64x128xf32, #tpu.memory_space<vmem>>, vector<1x32xf32>
    %cst_145 = arith.constant dense<0.000000e+00> : vector<16xf32>
    %490 = vector.multi_reduction <add>, %487, %cst_145 [1] : vector<16x32xf32> to vector<16xf32>
    %491 = vector.shape_cast %490 : vector<16xf32> to vector<16x1xf32>
    %cst_146 = arith.constant 3.200000e+01 : f32
    %492 = vector.broadcast %cst_146 : f32 to vector<16x1xf32>
    %493 = arith.divf %491, %492 : vector<16x1xf32>
    %494 = vector.broadcast %493 : vector<16x1xf32> to vector<16x32xf32>
    %495 = arith.subf %487, %494 : vector<16x32xf32>
    %496 = arith.mulf %495, %495 : vector<16x32xf32>
    %cst_147 = arith.constant dense<0.000000e+00> : vector<16xf32>
    %497 = vector.multi_reduction <add>, %496, %cst_147 [1] : vector<16x32xf32> to vector<16xf32>
    %498 = vector.shape_cast %497 : vector<16xf32> to vector<16x1xf32>
    %cst_148 = arith.constant 3.200000e+01 : f32
    %499 = vector.broadcast %cst_148 : f32 to vector<16x1xf32>
    %500 = arith.divf %498, %499 : vector<16x1xf32>
    %cst_149 = arith.constant 9.99999996E-13 : f32
    %501 = vector.broadcast %cst_149 : f32 to vector<16x1xf32>
    %502 = arith.addf %500, %501 : vector<16x1xf32>
    %503 = math.rsqrt %502 : vector<16x1xf32>
    %504 = vector.broadcast %503 : vector<16x1xf32> to vector<16x32xf32>
    %505 = arith.mulf %495, %504 : vector<16x32xf32>
    %506 = vector.broadcast %488 : vector<1x32xf32> to vector<16x32xf32>
    %507 = arith.mulf %505, %506 : vector<16x32xf32>
    %508 = vector.broadcast %489 : vector<1x32xf32> to vector<16x32xf32>
    %509 = arith.addf %507, %508 : vector<16x32xf32>
    %c544 = arith.constant 544 : index
    %c0_150 = arith.constant 0 : index
    %510 = vector.load %arg4[%c544, %c0_150] : memref<752x128xbf16, #tpu.memory_space<vmem>>, vector<32x64xbf16>
    %c28 = arith.constant 28 : index
    %c0_151 = arith.constant 0 : index
    %511 = vector.load %arg5[%c28, %c0_151] : memref<64x128xf32, #tpu.memory_space<vmem>>, vector<1x64xf32>
    %512 = arith.truncf %509 : vector<16x32xf32> to vector<16x32xbf16>
    %cst_152 = arith.constant dense<0.000000e+00> : vector<16x64xf32>
    %513 = tpu.matmul %512, %510, %cst_152 {dimension_numbers = #tpu.dot_dimension_numbers<[1], [0], [0], [1], [0, 0, 1, 1], [], []>} : vector<16x32xbf16>, vector<32x64xbf16>, vector<16x64xf32> -> vector<16x64xf32>
    %514 = vector.broadcast %511 : vector<1x64xf32> to vector<16x64xf32>
    %515 = arith.addf %513, %514 : vector<16x64xf32>
    %cst_153 = arith.constant 5.000000e-01 : f32
    %516 = vector.broadcast %cst_153 : f32 to vector<16x64xf32>
    %517 = arith.mulf %516, %515 : vector<16x64xf32>
    %cst_154 = arith.constant 0.707106769 : f32
    %518 = vector.broadcast %cst_154 : f32 to vector<16x64xf32>
    %519 = arith.mulf %515, %518 : vector<16x64xf32>
    %520 = math.erf %519 : vector<16x64xf32>
    %cst_155 = arith.constant 1.000000e+00 : f32
    %521 = vector.broadcast %cst_155 : f32 to vector<16x64xf32>
    %522 = arith.addf %521, %520 : vector<16x64xf32>
    %523 = arith.mulf %517, %522 : vector<16x64xf32>
    %c576 = arith.constant 576 : index
    %c0_156 = arith.constant 0 : index
    %524 = vector.load %arg4[%c576, %c0_156] : memref<752x128xbf16, #tpu.memory_space<vmem>>, vector<64x32xbf16>
    %c29 = arith.constant 29 : index
    %c0_157 = arith.constant 0 : index
    %525 = vector.load %arg5[%c29, %c0_157] : memref<64x128xf32, #tpu.memory_space<vmem>>, vector<1x32xf32>
    %526 = arith.truncf %523 : vector<16x64xf32> to vector<16x64xbf16>
    %cst_158 = arith.constant dense<0.000000e+00> : vector<16x32xf32>
    %527 = tpu.matmul %526, %524, %cst_158 {dimension_numbers = #tpu.dot_dimension_numbers<[1], [0], [0], [1], [0, 0, 1, 1], [], []>} : vector<16x64xbf16>, vector<64x32xbf16>, vector<16x32xf32> -> vector<16x32xf32>
    %528 = vector.broadcast %525 : vector<1x32xf32> to vector<16x32xf32>
    %529 = arith.addf %527, %528 : vector<16x32xf32>
    %530 = arith.addf %509, %529 : vector<16x32xf32>
    %c30 = arith.constant 30 : index
    %c0_159 = arith.constant 0 : index
    %531 = vector.load %arg5[%c30, %c0_159] : memref<64x128xf32, #tpu.memory_space<vmem>>, vector<1x32xf32>
    %c31 = arith.constant 31 : index
    %c0_160 = arith.constant 0 : index
    %532 = vector.load %arg5[%c31, %c0_160] : memref<64x128xf32, #tpu.memory_space<vmem>>, vector<1x32xf32>
    %cst_161 = arith.constant dense<0.000000e+00> : vector<16xf32>
    %533 = vector.multi_reduction <add>, %530, %cst_161 [1] : vector<16x32xf32> to vector<16xf32>
    %534 = vector.shape_cast %533 : vector<16xf32> to vector<16x1xf32>
    %cst_162 = arith.constant 3.200000e+01 : f32
    %535 = vector.broadcast %cst_162 : f32 to vector<16x1xf32>
    %536 = arith.divf %534, %535 : vector<16x1xf32>
    %537 = vector.broadcast %536 : vector<16x1xf32> to vector<16x32xf32>
    %538 = arith.subf %530, %537 : vector<16x32xf32>
    %539 = arith.mulf %538, %538 : vector<16x32xf32>
    %cst_163 = arith.constant dense<0.000000e+00> : vector<16xf32>
    %540 = vector.multi_reduction <add>, %539, %cst_163 [1] : vector<16x32xf32> to vector<16xf32>
    %541 = vector.shape_cast %540 : vector<16xf32> to vector<16x1xf32>
    %cst_164 = arith.constant 3.200000e+01 : f32
    %542 = vector.broadcast %cst_164 : f32 to vector<16x1xf32>
    %543 = arith.divf %541, %542 : vector<16x1xf32>
    %cst_165 = arith.constant 9.99999996E-13 : f32
    %544 = vector.broadcast %cst_165 : f32 to vector<16x1xf32>
    %545 = arith.addf %543, %544 : vector<16x1xf32>
    %546 = math.rsqrt %545 : vector<16x1xf32>
    %547 = vector.broadcast %546 : vector<16x1xf32> to vector<16x32xf32>
    %548 = arith.mulf %538, %547 : vector<16x32xf32>
    %549 = vector.broadcast %531 : vector<1x32xf32> to vector<16x32xf32>
    %550 = arith.mulf %548, %549 : vector<16x32xf32>
    %551 = vector.broadcast %532 : vector<1x32xf32> to vector<16x32xf32>
    %552 = arith.addf %550, %551 : vector<16x32xf32>
    %c688 = arith.constant 688 : index
    %c0_166 = arith.constant 0 : index
    %553 = vector.load %arg4[%c688, %c0_166] : memref<752x128xbf16, #tpu.memory_space<vmem>>, vector<32x32xbf16>
    %c38 = arith.constant 38 : index
    %c0_167 = arith.constant 0 : index
    %554 = vector.load %arg5[%c38, %c0_167] : memref<64x128xf32, #tpu.memory_space<vmem>>, vector<1x32xf32>
    %555 = arith.truncf %552 : vector<16x32xf32> to vector<16x32xbf16>
    %cst_168 = arith.constant dense<0.000000e+00> : vector<16x32xf32>
    %556 = tpu.matmul %555, %553, %cst_168 {dimension_numbers = #tpu.dot_dimension_numbers<[1], [0], [0], [1], [0, 0, 1, 1], [], []>} : vector<16x32xbf16>, vector<32x32xbf16>, vector<16x32xf32> -> vector<16x32xf32>
    %557 = vector.broadcast %554 : vector<1x32xf32> to vector<16x32xf32>
    %558 = arith.addf %556, %557 : vector<16x32xf32>
    %cst_169 = arith.constant 5.000000e-01 : f32
    %559 = vector.broadcast %cst_169 : f32 to vector<16x32xf32>
    %560 = arith.mulf %559, %558 : vector<16x32xf32>
    %cst_170 = arith.constant 0.707106769 : f32
    %561 = vector.broadcast %cst_170 : f32 to vector<16x32xf32>
    %562 = arith.mulf %558, %561 : vector<16x32xf32>
    %563 = math.erf %562 : vector<16x32xf32>
    %cst_171 = arith.constant 1.000000e+00 : f32
    %564 = vector.broadcast %cst_171 : f32 to vector<16x32xf32>
    %565 = arith.addf %564, %563 : vector<16x32xf32>
    %566 = arith.mulf %560, %565 : vector<16x32xf32>
    %c39 = arith.constant 39 : index
    %c0_172 = arith.constant 0 : index
    %567 = vector.load %arg5[%c39, %c0_172] : memref<64x128xf32, #tpu.memory_space<vmem>>, vector<1x32xf32>
    %c40 = arith.constant 40 : index
    %c0_173 = arith.constant 0 : index
    %568 = vector.load %arg5[%c40, %c0_173] : memref<64x128xf32, #tpu.memory_space<vmem>>, vector<1x32xf32>
    %cst_174 = arith.constant dense<0.000000e+00> : vector<16xf32>
    %569 = vector.multi_reduction <add>, %566, %cst_174 [1] : vector<16x32xf32> to vector<16xf32>
    %570 = vector.shape_cast %569 : vector<16xf32> to vector<16x1xf32>
    %cst_175 = arith.constant 3.200000e+01 : f32
    %571 = vector.broadcast %cst_175 : f32 to vector<16x1xf32>
    %572 = arith.divf %570, %571 : vector<16x1xf32>
    %573 = vector.broadcast %572 : vector<16x1xf32> to vector<16x32xf32>
    %574 = arith.subf %566, %573 : vector<16x32xf32>
    %575 = arith.mulf %574, %574 : vector<16x32xf32>
    %cst_176 = arith.constant dense<0.000000e+00> : vector<16xf32>
    %576 = vector.multi_reduction <add>, %575, %cst_176 [1] : vector<16x32xf32> to vector<16xf32>
    %577 = vector.shape_cast %576 : vector<16xf32> to vector<16x1xf32>
    %cst_177 = arith.constant 3.200000e+01 : f32
    %578 = vector.broadcast %cst_177 : f32 to vector<16x1xf32>
    %579 = arith.divf %577, %578 : vector<16x1xf32>
    %cst_178 = arith.constant 9.99999996E-13 : f32
    %580 = vector.broadcast %cst_178 : f32 to vector<16x1xf32>
    %581 = arith.addf %579, %580 : vector<16x1xf32>
    %582 = math.rsqrt %581 : vector<16x1xf32>
    %583 = vector.broadcast %582 : vector<16x1xf32> to vector<16x32xf32>
    %584 = arith.mulf %574, %583 : vector<16x32xf32>
    %585 = vector.broadcast %567 : vector<1x32xf32> to vector<16x32xf32>
    %586 = arith.mulf %584, %585 : vector<16x32xf32>
    %587 = vector.broadcast %568 : vector<1x32xf32> to vector<16x32xf32>
    %588 = arith.addf %586, %587 : vector<16x32xf32>
    %c720 = arith.constant 720 : index
    %c0_179 = arith.constant 0 : index
    %589 = vector.load %arg4[%c720, %c0_179] : memref<752x128xbf16, #tpu.memory_space<vmem>>, vector<32x128xbf16>
    %c41 = arith.constant 41 : index
    %c0_180 = arith.constant 0 : index
    %590 = vector.load %arg5[%c41, %c0_180] : memref<64x128xf32, #tpu.memory_space<vmem>>, vector<1x128xf32>
    %591 = arith.truncf %588 : vector<16x32xf32> to vector<16x32xbf16>
    %cst_181 = arith.constant dense<0.000000e+00> : vector<16x128xf32>
    %592 = tpu.matmul %591, %589, %cst_181 {dimension_numbers = #tpu.dot_dimension_numbers<[1], [0], [0], [1], [0, 0, 1, 1], [], []>} : vector<16x32xbf16>, vector<32x128xbf16>, vector<16x128xf32> -> vector<16x128xf32>
    %593 = vector.broadcast %590 : vector<1x128xf32> to vector<16x128xf32>
    %594 = arith.addf %592, %593 : vector<16x128xf32>
    %c0_182 = arith.constant 0 : index
    %c0_183 = arith.constant 0 : index
    %595 = vector.load %arg6[%c0_182, %c0_183] : memref<24x128xf32, #tpu.memory_space<vmem>>, vector<16x128xf32>
    tpu.vector_store %arg6[%c0_182, %c0_183], %594 {strides = array<i32>} : memref<24x128xf32, #tpu.memory_space<vmem>>, vector<16x128xf32>,
    %cst_184 = arith.constant 0.000000e+00 : f32
    %596 = vector.broadcast %cst_184 : f32 to vector<2x96xf32>
    %597 = tpu.concatenate %262, %596 in 1 : vector<2x32xf32>, vector<2x96xf32> -> vector<2x128xf32>
    %cst_185 = arith.constant 0.000000e+00 : f32
    %598 = vector.broadcast %cst_185 : f32 to vector<6x128xf32>
    %599 = tpu.concatenate %597, %598 in 0 : vector<2x128xf32>, vector<6x128xf32> -> vector<8x128xf32>
    %c16_186 = arith.constant 16 : index
    %c0_187 = arith.constant 0 : index
    %600 = vector.load %arg6[%c16_186, %c0_187] : memref<24x128xf32, #tpu.memory_space<vmem>>, vector<8x128xf32>
    tpu.vector_store %arg6[%c16_186, %c0_187], %599 {strides = array<i32>} : memref<24x128xf32, #tpu.memory_space<vmem>>, vector<8x128xf32>,
    return
  }
  func.func @transform_0(%arg0: i32) -> (i32, i32) {
    %c0_i32 = arith.constant 0 : i32
    %c0_i32_0 = arith.constant 0 : i32
    %c0_i32_1 = arith.constant 0 : i32
    return %c0_i32, %c0_i32_0 : i32, i32
  }
  func.func @transform_1(%arg0: i32) -> (i32, i32) {
    %c0_i32 = arith.constant 0 : i32
    %c0_i32_0 = arith.constant 0 : i32
    %c0_i32_1 = arith.constant 0 : i32
    return %c0_i32, %c0_i32_0 : i32, i32
  }
  func.func @transform_2(%arg0: i32) -> (i32, i32) {
    %c0_i32 = arith.constant 0 : i32
    %c0_i32_0 = arith.constant 0 : i32
    %c0_i32_1 = arith.constant 0 : i32
    return %c0_i32, %c0_i32_0 : i32, i32
  }
  func.func @transform_3(%arg0: i32) -> (i32, i32) {
    %c0_i32 = arith.constant 0 : i32
    %c0_i32_0 = arith.constant 0 : i32
    %c0_i32_1 = arith.constant 0 : i32
    return %c0_i32, %c0_i32_0 : i32, i32
  }
  func.func @transform_4(%arg0: i32) -> (i32, i32) {
    %c0_i32 = arith.constant 0 : i32
    %c0_i32_0 = arith.constant 0 : i32
    %c0_i32_1 = arith.constant 0 : i32
    return %c0_i32, %c0_i32_0 : i32, i32
  }
  func.func @transform_5(%arg0: i32) -> (i32, i32) {
    %c0_i32 = arith.constant 0 : i32
    %c0_i32_0 = arith.constant 0 : i32
    %c0_i32_1 = arith.constant 0 : i32
    return %c0_i32, %c0_i32_0 : i32, i32
  }
}

</mosaic_0001>

<bundles_post_ra>
// kernel: mul.28
= control target key start
LH: loop header
LB: loop body
LE: loop exit
PB: predicated region body
PF: predicated region fallthrough
CT: control target
= control target key end

     0   :  { %vm83_vm0 = vcmask 1047556   ;;  %vm85_vm1 = vcmask 64512   ;;  %vm104_vm2 = vcmask 130112   ;;  %s226_s0 = inlined_call_operand.vmem [shape: f32[2,8,2,8], index: 0, kind: input, shape index: {}]   ;;  %s227_s1 = inlined_call_operand.vmem [shape: f32[16,16], index: 1, kind: output, shape index: {}]  }
   0x1   :  { %v139_v0 = vld [vmem:[%s226_s0 + $0xe] sm:$0x3]  ;;  %v140_v1 = vld [vmem:[%s226_s0 + $0xc] sm:$0x3]  ;;  %v141_v2 = vld [vmem:[%s226_s0 + $0xa] sm:$0x3] }
   0x2   :  { %49 = vst [vmem:[#allocation0 + $0x38] sm:$0x3] %v139_v0  ;;  %54 = vst [vmem:[#allocation0 + $0x30] sm:$0x3] %v140_v1  ;;  %v142_v3 = vld [vmem:[%s226_s0 + $0x8] sm:$0x3] }
   0x3   :  { %59 = vst [vmem:[#allocation0 + $0x28] sm:$0x3] %v141_v2  ;;  %v143_v4 = vld [vmem:[%s226_s0 + $0x6] sm:$0x3]  ;;  %v144_v5 = vld [vmem:[%s226_s0 + $0x4] sm:$0x3] }
   0x4   :  { %64 = vst [vmem:[#allocation0 + $0x20] sm:$0x3] %v142_v3  ;;  %69 = vst [vmem:[#allocation0 + $0x18] sm:$0x3] %v143_v4  ;;  %v145_v6 = vld [vmem:[%s226_s0 + $0x2] sm:$0x3] }
   0x5   :  { %74 = vst [vmem:[#allocation0 + $0x10] sm:$0x3] %v144_v5  ;;  %v79_v7 = vld [vmem:[%s226_s0] sm:$0x3]  ;;  %78 = vst [vmem:[#allocation0 + $0x8] sm:$0x3] %v145_v6 }
   0x6   :  { %80 = vst [vmem:[#allocation0] sm:$0x3] %v79_v7  ;;  %v131_v8 = vld [vmem:[%s226_s0 + $0x1e] sm:$0x3]  ;;  %v132_v9 = vld [vmem:[%s226_s0 + $0x1c] sm:$0x3] }
   0x7   :  { %v133_v10 = vld [vmem:[%s226_s0 + $0x1a] sm:$0x3]  ;;  %9 = vst [vmem:[#allocation0 + $0x78] sm:$0x3] %v131_v8  ;;  %14 = vst [vmem:[#allocation0 + $0x70] sm:$0x3] %v132_v9 }
   0x8   :  { %19 = vst [vmem:[#allocation0 + $0x68] sm:$0x3] %v133_v10  ;;  %v134_v11 = vld [vmem:[%s226_s0 + $0x18] sm:$0x3]  ;;  %v135_v12 = vld [vmem:[%s226_s0 + $0x16] sm:$0x3] }
   0x9   :  { %v136_v13 = vld [vmem:[%s226_s0 + $0x14] sm:$0x3]  ;;  %24 = vst [vmem:[#allocation0 + $0x60] sm:$0x3] %v134_v11  ;;  %29 = vst [vmem:[#allocation0 + $0x58] sm:$0x3] %v135_v12 }
   0xa   :  { %34 = vst [vmem:[#allocation0 + $0x50] sm:$0x3] %v136_v13  ;;  %v137_v14 = vld [vmem:[%s226_s0 + $0x12] sm:$0x3]  ;;  %v138_v15 = vld [vmem:[%s226_s0 + $0x10] sm:$0x3] }
   0xb   :  { %39 = vst [vmem:[#allocation0 + $0x48] sm:$0x3] %v137_v14  ;;  %44 = vst [vmem:[#allocation0 + $0x40] sm:$0x3] %v138_v15  ;;  %s149_s0 = smov 8  }
   0xc   :  { %v99_v16 = vld [vmem:[#allocation0 + $0x1] ss:$8 sm:$0xf0]   ;;  %v82_v17 = vld [vmem:[#allocation0] ss:$8 sm:$0xf0]  }
   0xd   :  { %v97_v18 = vld [vmem:[#allocation0 + $0x1] ss:$8 sm:$0xf]   ;;  %v81_v19 = vld [vmem:[#allocation0] ss:$8 sm:$0xf]  }
   0xe   :  { %v101_v20 = vsel %vm83_vm0, %v99_v16, %v97_v18  ;;  %v84_v21 = vsel %vm83_vm0, %v82_v17, %v81_v19 }
   0xf   :  { %102 = vrot.lane.b32.xlu0 %v101_v20, %s149_s0  ;;  %86 = vst.msk [vmem:[%s227_s1] sm:$0xff] %vm85_vm1, %v84_v21  }
  0x10   :  { %v109_v22 = vld [vmem:[#allocation0 + $0x41] ss:$8 sm:$0xf0]   ;;  %v90_v23 = vld [vmem:[#allocation0 + $0x40] ss:$8 sm:$0xf0]  }
  0x12   :  { %v107_v24 = vld [vmem:[#allocation0 + $0x41] ss:$8 sm:$0xf]   ;;  %v88_v25 = vld [vmem:[#allocation0 + $0x40] ss:$8 sm:$0xf]  }
  0x13   :  { %v111_v26 = vsel %vm83_vm0, %v109_v22, %v107_v24  ;;  %v92_v27 = vsel %vm83_vm0, %v90_v23, %v88_v25 }
  0x14   :  { %146 = vst.msk [vmem:[%s227_s1 + $0x8] sm:$0xff] %vm85_vm1, %v92_v27   ;;  %112 = vrot.lane.b32.xlu0 %v111_v26, %s149_s0 }
  0x81   :  { %v103_v28 = vpop.permute.xlu0 %102  }
  0x82   :  { %105 = vst.msk [vmem:[%s227_s1] sm:$0xff] %vm104_vm2, %v103_v28  }
  0x86   :  { %v113_v29 = vpop.permute.xlu0 %112  }
  0x87   :  { %147 = vst.msk [vmem:[%s227_s1 + $0x8] sm:$0xff] %vm104_vm2, %v113_v29  }

// kernel: bert_vae_forward.1
= control target key start
LH: loop header
LB: loop body
LE: loop exit
PB: predicated region body
PF: predicated region fallthrough
CT: control target
= control target key end

     0   :  { %vm33_vm0 = vcmask 261120   ;;  %v4223_v14 = vmov 0.0   ;;  %vm4224_vm1 = vmmov 0   ;;  %vm155_vm2 = vcmask 64512   ;;  %s4225_s6 = smov 112   ;;  %s4226_s7 = smov 104   ;;  %s5181_s0 = inlined_call_operand.vmem [shape: f32[16,32], index: 0, kind: input, shape index: {}]   ;;  %s5182_s3 = inlined_call_operand.vmem [shape: bf16[752,128], index: 3, kind: input, shape index: {}]   ;;  %s5183_s4 = inlined_call_operand.vmem [shape: f32[64,128], index: 4, kind: input, shape index: {}]   ;;  %s5184_s1 = inlined_call_operand.vmem [shape: f32[64,64], index: 1, kind: input, shape index: {}]   ;;  %s5185_s2 = inlined_call_operand.vmem [shape: f32[2,16], index: 2, kind: input, shape index: {}]   ;;  %s5186_s5 = inlined_call_operand.vmem [shape: f32[24,128], index: 5, kind: output, shape index: {}]  }
   0x1   :  { %v21_v0 = vld [vmem:[%s5181_s0] sm:$0xff]  ;;  %v22_v1 = vld [vmem:[%s5181_s0 + $0x8] sm:$0xff]  ;;  %3584 = vmatprep.subr.bf16.mxu0 %v4223_v14  ;;  %3588 = vmatprep.mubr.msk.bf16.mxu0 %vm4224_vm1, %v4223_v14  ;;  %s4227_s8 = smov 120   ;;  %s4228_s9 = smov 96   ;;  %v4343_v54 = vld [vmem:[%s5184_s1 + $0x10] sm:$0xff]  ;;  %vm261_vm3 = vcmask 523264  }
   0x2   :  { %v34_v2 = vsel %vm33_vm0, %v21_v0, 0.0  ;;  %v37_v3 = vsel %vm33_vm0, %v22_v1, 0.0  ;;  %v3972_v15 = vld [vmem:[%s5182_s3 + $0x8] sm:$0xff]   ;;  %v3973_v16 = vld [vmem:[%s5182_s3] sm:$0xff]   ;;  %s4229_s25 = smov 64   ;;  %s4230_s30 = smov 8  }
   0x3   :  { %35 = vadd.xlane.f32.xlu0 %v34_v2  ;;  %3585 = vmatpush3.bf16.msra.mxu0 %v3972_v15  ;;  %v3312_v25 = vld [vmem:[%s5183_s4 + $0x20] ss:$0 sm:$0xff]  ;;  %v3313_v29 = vld [vmem:[%s5183_s4 + $0x21] ss:$0 sm:$0xff]  ;;  %v4375_v15 = vld [vmem:[%s5184_s1 + $0x30] sm:$0xff]  ;;  %s4231_s10 = smov 24  }
   0x4   :  { %3586 = vmatprep.subr.bf16.mxu0 %v4223_v14  ;;  %v3314_v35 = vld [vmem:[%s5183_s4] ss:$0 sm:$0xff]  ;;  %s4232_s11 = smov 16   ;;  %vm469_vm4 = vcmask 130048   ;;  %vm472_vm5 = vcmask 195584   ;;  %vm1492_vm6 = vcmask 1040384  }
   0x5   :  { %v4348_v57 = vld [vmem:[%s5184_s1] sm:$0xff]  ;;  %vm3305_vm7 = vcmask 1041408  }
   0x7   :  { %38 = vadd.xlane.f32.xlu0 %v37_v3  ;;  %3587 = vmatpush3.bf16.msra.mxu0 %v3973_v16 }
  0x8c   :  { %v36_v4 = vpop.xlane.xlu0 %35 }
  0x8d   :  { %v41_v5 = vmul.f32 0.03125, %v36_v4  ;;  %v4362_v4 = vld [vmem:[%s5184_s1 + $0x18] sm:$0xff] }
  0x8f   :  { %v43_v6 = vsub.f32 %v21_v0, %v41_v5 }
  0x90   :  { %v39_v7 = vpop.xlane.xlu0 %38 }
  0x91   :  { %v42_v8 = vmul.f32 0.03125, %v39_v7  ;;  %v45_v9 = vmul.f32 %v43_v6, %v43_v6 }
  0x93   :  { %v44_v10 = vsub.f32 %v22_v1, %v42_v8  ;;  %v47_v11 = vsel %vm33_vm0, %v45_v9, 0.0  ;;  %v4356_v1 = vld [vmem:[%s5184_s1 + $0x8] sm:$0xff]  ;;  %v4369_v9 = vld [vmem:[%s5184_s1 + $0x20] sm:$0xff] }
  0x94   :  { %48 = vadd.xlane.f32.xlu1 %v47_v11 }
  0x95   :  { %v46_v12 = vmul.f32 %v44_v10, %v44_v10 }
  0x97   :  { %v50_v13 = vsel %vm33_vm0, %v46_v12, 0.0 }
  0x98   :  { %51 = vadd.xlane.f32.xlu1 %v50_v13 }
 0x11d   :  { %v49_v17 = vpop.xlane.xlu1 %48 }
 0x11e   :  { %v53_v18 = vmul.f32 0.03125, %v49_v17 }
 0x120   :  { %v55_v19 = vadd.f32 1e-12, %v53_v18 }
 0x121   :  { %v52_v20 = vpop.xlane.xlu1 %51 }
 0x122   :  { %4019 = vrsqrt.f32 %v55_v19  ;;  %v54_v21 = vmul.f32 0.03125, %v52_v20  ;;  %v4382_v19 = vld [vmem:[%s5184_s1 + $0x28] sm:$0xff] }
 0x124   :  { %v56_v22 = vadd.f32 1e-12, %v54_v21 }
 0x126   :  { %4021 = vrsqrt.f32 %v56_v22 }
 0x12f   :  { %v4020_v23 = vpop.eup %4019 }
 0x130   :  { %v59_v24 = vmul.f32 %v4020_v23, %v43_v6 }
 0x132   :  { %v65_v28 = vmul.f32 %v3312_v25, %v59_v24  ;;  %v4389_v24 = vld [vmem:[%s5184_s1 + $0x38] sm:$0xff] }
 0x133   :  { %v4022_v26 = vpop.eup %4021 }
 0x134   :  { %v60_v27 = vmul.f32 %v4022_v26, %v44_v10  ;;  %v4289_v31 = vadd.f32 %v3313_v29, %v65_v28 }
 0x136   :  { %v66_v30 = vmul.f32 %v3312_v25, %v60_v27 }
 0x138   :  { %v4291_v32 = vadd.f32 %v3313_v29, %v66_v30 }
 0x13a   :  { %v78_v33 = vpack.c.bf16 %v4291_v32, %v4289_v31 }
 0x13c   :  { %3589 = vmatmul.mubr.msk.bf16.vlgmr.msra.gmra.mxu0 %vm33_vm0, %v78_v33 }
 0x1fc   :  { %v132_v34 = vpop.f32.mrf.mxu0 }
 0x1fd   :  { %v133_v38 = vadd.f32 %v3314_v35, %v132_v34 }
 0x1fe   :  { %v3590_v36 = vpop.f32.mrf.mxu0 }
 0x200   :  { %v135_v37 = vpop.f32.mrf.mxu0 }
 0x201   :  { %v136_v39 = vadd.f32 %v3314_v35, %v135_v37 }
 0x202   :  { %v3591_v40 = vpop.f32.mrf.mxu0 }
 0x203   :  { %v4299_v41 = vpack.c.bf16 %v136_v39, %v133_v38 }
 0x205   :  { %143 = vrot.lane.b32.xlu1 %v4299_v41, %s4225_s6  ;;  %145 = vrot.lane.b32.xlu0 %v4299_v41, %s4226_s7 }
 0x206   :  { %3600 = vmatprep.mubr.msk.bf16.mxu1 %vm155_vm2, %v4299_v41 }
 0x209   :  { %141 = vrot.lane.b32.xlu1 %v4299_v41, %s4227_s8 }
 0x277   :  { %v4309_v42 = vpop.permute.xlu1 %143  ;;  %v4311_v43 = vpop.permute.xlu0 %145 }
 0x278   :  { %151 = vrot.lane.b32.xlu0 %v4309_v42, %s4228_s9  ;;  %153 = vrot.lane.b32.xlu1 %v4311_v43, %s4228_s9 }
 0x27b   :  { %v4317_v44 = vpop.permute.xlu1 %141 }
 0x27c   :  { %147 = vrot.lane.b32.xlu0 %v4299_v41, %s4228_s9  ;;  %149 = vrot.lane.b32.xlu1 %v4317_v44, %s4228_s9 }
 0x2ea   :  { %v154_v45 = vpop.permute.xlu1 %153  ;;  %v152_v47 = vpop.permute.xlu0 %151 }
 0x2eb   :  { %3886 = vmatprep.subr.msk.bf16.mxu1 %vm155_vm2, %v154_v45  ;;  %v178_v46 = vsel %vm155_vm2, %v154_v45, 0  ;;  %v175_v48 = vsel %vm155_vm2, %v152_v47, 0 }
 0x2ec   :  { %3593 = vmatpush3.bf16.xpose.msra.mxu1 %v178_v46 }
 0x2ed   :  { %3887 = vmatprep.subr.msk.bf16.mxu1 %vm155_vm2, %v152_v47 }
 0x2ee   :  { %v150_v49 = vpop.permute.xlu1 %149  ;;  %v148_v51 = vpop.permute.xlu0 %147 }
 0x2ef   :  { %v172_v50 = vsel %vm155_vm2, %v150_v49, 0  ;;  %v169_v52 = vsel %vm155_vm2, %v148_v51, 0 }
 0x2f4   :  { %3595 = vmatpush3.bf16.xpose.msra.mxu1 %v175_v48 }
 0x2f5   :  { %3888 = vmatprep.subr.msk.bf16.mxu1 %vm155_vm2, %v150_v49 }
 0x2fc   :  { %3597 = vmatpush3.bf16.xpose.msra.mxu1 %v172_v50 }
 0x2fd   :  { %3889 = vmatprep.subr.msk.bf16.mxu1 %vm155_vm2, %v148_v51 }
 0x304   :  { %3599 = vmatpush3.bf16.xpose.msra.mxu1 %v169_v52 }
 0x305   :  { %3640 = vmatprep.subr.bf16.mxu1 %v4223_v14 }
 0x30b   :  { %3601 = vmatmul.mubr.msk.bf16.vlgmr.msra.gmra.mxu1 %vm155_vm2, %v4317_v44 }
 0x30c   :  { %3604 = vmatprep.mubr.msk.bf16.mxu1 %vm155_vm2, %v4309_v42 }
 0x313   :  { %3605 = vmatmul.mubr.msk.bf16.gmra.mxu1 %vm155_vm2, %v4311_v43 }
 0x314   :  { %3648 = vmatprep.mubr.msk.bf16.mxu1 %vm4224_vm1, %v4223_v14 }
 0x3cb   :  { %v3602_v53 = vpop.f32.mrf.mxu1 }
 0x3cc   :  { %v247_v55 = vmul.f32 0.35355338, %v3602_v53 }
 0x3cd   :  { %v214_v56 = vpop.f32.mrf.mxu1 }
 0x3ce   :  { %v245_v58 = vmul.f32 0.35355338, %v214_v56  ;;  %v255_v59 = vadd.f32 %v247_v55, %v4343_v54 }
 0x3cf   :  { %v3603_v60 = vpop.f32.mrf.mxu1 }
 0x3d0   :  { %v268_v61 = vsel %vm261_vm3, %v255_v59, -inf  ;;  %v253_v62 = vadd.f32 %v245_v58, %v4348_v57  ;;  %v248_v63 = vmul.f32 0.35355338, %v3603_v60 }
 0x3d1   :  { %269 = vmax.xlane.f32.xlu0 %v268_v61  ;;  %v217_v0 = vpop.f32.mrf.mxu1 }
 0x3d2   :  { %v246_v2 = vmul.f32 0.35355338, %v217_v0  ;;  %v262_v3 = vsel %vm261_vm3, %v253_v62, -inf  ;;  %v256_v8 = vadd.f32 %v248_v63, %v4362_v4 }
 0x3d3   :  { %263 = vmax.xlane.f32.xlu1 %v262_v3  ;;  %v3606_v5 = vpop.f32.mrf.mxu1 }
 0x3d4   :  { %v254_v6 = vadd.f32 %v246_v2, %v4356_v1  ;;  %v251_v10 = vmul.f32 0.35355338, %v3606_v5  ;;  %v271_v18 = vsel %vm261_vm3, %v256_v8, -inf }
 0x3d5   :  { %v230_v7 = vpop.f32.mrf.mxu1 }
 0x3d6   :  { %v249_v11 = vmul.f32 0.35355338, %v230_v7  ;;  %v265_v12 = vsel %vm261_vm3, %v254_v6, -inf  ;;  %v259_v23 = vadd.f32 %v251_v10, %v4375_v15 }
 0x3d7   :  { %266 = vmax.xlane.f32.xlu0 %v265_v12  ;;  %v3607_v13 = vpop.f32.mrf.mxu1 }
 0x3d8   :  { %v257_v16 = vadd.f32 %v249_v11, %v4369_v9  ;;  %v252_v20 = vmul.f32 0.35355338, %v3607_v13  ;;  %v280_v26 = vsel %vm261_vm3, %v259_v23, -inf }
 0x3d9   :  { %v233_v17 = vpop.f32.mrf.mxu1 }
 0x3da   :  { %v250_v21 = vmul.f32 0.35355338, %v233_v17  ;;  %v274_v22 = vsel %vm261_vm3, %v257_v16, -inf  ;;  %v260_v28 = vadd.f32 %v252_v20, %v4389_v24 }
 0x3db   :  { %272 = vmax.xlane.f32.xlu0 %v271_v18  ;;  %275 = vmax.xlane.f32.xlu1 %v274_v22 }
 0x3dc   :  { %v258_v25 = vadd.f32 %v250_v21, %v4382_v19  ;;  %v283_v29 = vsel %vm261_vm3, %v260_v28, -inf }
 0x3de   :  { %v277_v27 = vsel %vm261_vm3, %v258_v25, -inf }
 0x3df   :  { %281 = vmax.xlane.f32.xlu1 %v280_v26  ;;  %278 = vmax.xlane.f32.xlu0 %v277_v27 }
 0x3e3   :  { %284 = vmax.xlane.f32.xlu0 %v283_v29 }
 0x3f0   :  { %360 = vrot.lane.b32.xlu1 %v4311_v43, %s4229_s25 }
 0x45a   :  { %v270_v30 = vpop.xlane.xlu0 %269 }
 0x45b   :  { %v288_v33 = vsub.f32 %v255_v59, %v270_v30 }
 0x45c   :  { %v264_v34 = vpop.xlane.xlu1 %263 }
 0x45d   :  { %v298_v35 = vmul.f32 1.442695, %v288_v33  ;;  %v286_v36 = vsub.f32 %v253_v62, %v264_v34 }
 0x45f   :  { %4023 = vpow2.f32 %v298_v35  ;;  %v294_v37 = vmul.f32 1.442695, %v286_v36 }
 0x460   :  { %v267_v38 = vpop.xlane.xlu0 %266 }
 0x461   :  { %4025 = vpow2.f32 %v294_v37  ;;  %v287_v39 = vsub.f32 %v254_v6, %v267_v38 }
 0x463   :  { %v296_v47 = vmul.f32 1.442695, %v287_v39 }
 0x464   :  { %v273_v40 = vpop.xlane.xlu0 %272  ;;  %v276_v45 = vpop.xlane.xlu1 %275 }
 0x465   :  { %v289_v46 = vsub.f32 %v256_v8, %v273_v40  ;;  %v290_v49 = vsub.f32 %v257_v16, %v276_v45 }
 0x467   :  { %v300_v48 = vmul.f32 1.442695, %v289_v46  ;;  %v302_v52 = vmul.f32 1.442695, %v290_v49 }
 0x468   :  { %v282_v50 = vpop.xlane.xlu1 %281  ;;  %v279_v51 = vpop.xlane.xlu0 %278 }
 0x469   :  { %4027 = vpow2.f32 %v300_v48  ;;  %v292_v43 = vsub.f32 %v259_v23, %v282_v50  ;;  %v291_v55 = vsub.f32 %v258_v25, %v279_v51 }
 0x46a   :  { %4029 = vpow2.f32 %v296_v47 }
 0x46b   :  { %v306_v53 = vmul.f32 1.442695, %v292_v43  ;;  %v304_v63 = vmul.f32 1.442695, %v291_v55  ;;  %v3974_v55 = vld [vmem:[%s5182_s3 + $0x18] sm:$0xff]  }
 0x46c   :  { %v4398_v56 = vpop.eup %4023  ;;  %v361_v58 = vpop.permute.xlu1 %360 }
 0x46d   :  { %v285_v59 = vpop.xlane.xlu0 %284  ;;  %4031 = vpow2.f32 %v306_v53  ;;  %3608 = vmatprep.subr.bf16.mxu0 %v361_v58  ;;  %v316_v61 = vsel %vm261_vm3, %v4398_v56, 0.0 }
 0x46e   :  { %v293_v60 = vsub.f32 %v260_v28, %v285_v59  ;;  %v4026_v62 = vpop.eup %4025  ;;  %317 = vadd.xlane.f32.xlu1 %v316_v61  ;;  %3609 = vmatpush3.bf16.msra.mxu0 %v361_v58  ;;  %4033 = vpow2.f32 %v302_v52  ;;  %v3975_v59 = vld [vmem:[%s5182_s3 + $0x10] sm:$0xff]  }
 0x46f   :  { %v310_v2 = vsel %vm261_vm3, %v4026_v62, 0.0 }
 0x470   :  { %v308_v0 = vmul.f32 1.442695, %v293_v60 }
 0x472   :  { %4035 = vpow2.f32 %v308_v0  ;;  %311 = vadd.xlane.f32.xlu1 %v310_v2 }
 0x473   :  { %4037 = vpow2.f32 %v304_v63 }
 0x476   :  { %v4028_v3 = vpop.eup %4027 }
 0x477   :  { %v319_v5 = vsel %vm261_vm3, %v4028_v3, 0.0  ;;  %v4030_v6 = vpop.eup %4029 }
 0x478   :  { %320 = vadd.xlane.f32.xlu0 %v319_v5  ;;  %v313_v10 = vsel %vm261_vm3, %v4030_v6, 0.0 }
 0x47a   :  { %v4404_v7 = vpop.eup %4031 }
 0x47b   :  { %v328_v8 = vsel %vm261_vm3, %v4404_v7, 0.0  ;;  %v4034_v11 = vpop.eup %4033 }
 0x47c   :  { %329 = vadd.xlane.f32.xlu1 %v328_v8  ;;  %314 = vadd.xlane.f32.xlu0 %v313_v10  ;;  %v322_v13 = vsel %vm261_vm3, %v4034_v11, 0.0 }
 0x47f   :  { %v4036_v12 = vpop.eup %4035 }
 0x480   :  { %v331_v16 = vsel %vm261_vm3, %v4036_v12, 0.0  ;;  %v4038_v17 = vpop.eup %4037  ;;  %323 = vadd.xlane.f32.xlu1 %v322_v13 }
 0x481   :  { %332 = vadd.xlane.f32.xlu0 %v331_v16  ;;  %v325_v18 = vsel %vm261_vm3, %v4038_v17, 0.0 }
 0x485   :  { %326 = vadd.xlane.f32.xlu0 %v325_v18 }
 0x491   :  { %356 = vrot.lane.b32.xlu1 %v4317_v44, %s4229_s25 }
 0x495   :  { %354 = vrot.lane.b32.xlu1 %v4299_v41, %s4229_s25 }
 0x49b   :  { %358 = vrot.lane.b32.xlu0 %v4309_v42, %s4229_s25 }
 0x4f7   :  { %v318_v20 = vpop.xlane.xlu1 %317 }
 0x4fb   :  { %v312_v21 = vpop.xlane.xlu1 %311 }
 0x4fc   :  { %4039 = vrcp.f32 %v312_v21 }
 0x501   :  { %v321_v22 = vpop.xlane.xlu0 %320 }
 0x505   :  { %v330_v23 = vpop.xlane.xlu1 %329  ;;  %v315_v25 = vpop.xlane.xlu0 %314 }
 0x506   :  { %4041 = vrcp.f32 %v315_v25 }
 0x507   :  { %4043 = vrcp.f32 %v321_v22 }
 0x508   :  { %4045 = vrcp.f32 %v318_v20 }
 0x509   :  { %v324_v26 = vpop.xlane.xlu1 %323  ;;  %v4040_v29 = vpop.eup %4039 }
 0x50a   :  { %v333_v27 = vpop.xlane.xlu0 %332  ;;  %4047 = vrcp.f32 %v324_v26  ;;  %v342_v33 = vmul.f32 %v4040_v29, %v4026_v62 }
 0x50d   :  { %v357_v44 = vpop.permute.xlu1 %356 }
 0x50e   :  { %v327_v28 = vpop.xlane.xlu0 %326 }
 0x50f   :  { %4049 = vrcp.f32 %v327_v28  ;;  %v3326_v28 = vld [vmem:[%s5183_s4 + $0x1] ss:$0 sm:$0xff] }
 0x510   :  { %4051 = vrcp.f32 %v333_v27 }
 0x511   :  { %4053 = vrcp.f32 %v330_v23  ;;  %v355_v36 = vpop.permute.xlu1 %354 }
 0x512   :  { %v359_v41 = vpop.permute.xlu0 %358 }
 0x513   :  { %3610 = vmatprep.subr.bf16.mxu0 %v359_v41  ;;  %v4042_v42 = vpop.eup %4041 }
 0x514   :  { %3611 = vmatpush3.bf16.msra.mxu0 %v359_v41  ;;  %v4044_v30 = vpop.eup %4043  ;;  %v343_v34 = vmul.f32 %v4042_v42, %v4030_v6 }
 0x515   :  { %3612 = vmatprep.subr.bf16.mxu0 %v357_v44  ;;  %v4046_v35 = vpop.eup %4045  ;;  %v345_v38 = vmul.f32 %v4044_v30, %v4028_v3 }
 0x516   :  { %v350_v37 = vpack.c.bf16 %v343_v34, %v342_v33  ;;  %v344_v40 = vmul.f32 %v4046_v35, %v4398_v56 }
 0x517   :  { %v4048_v39 = vpop.eup %4047 }
 0x518   :  { %3613 = vmatpush3.bf16.msra.mxu0 %v357_v44  ;;  %3616 = vmatprep.mubr.msk.bf16.mxu0 %vm261_vm3, %v350_v37  ;;  %v351_v46 = vpack.c.bf16 %v345_v38, %v344_v40  ;;  %v346_v47 = vmul.f32 %v4048_v39, %v4034_v11 }
 0x519   :  { %3614 = vmatprep.subr.bf16.mxu0 %v355_v36 }
 0x51c   :  { %v4050_v45 = vpop.eup %4049  ;;  %3615 = vmatpush3.bf16.msra.mxu0 %v355_v36 }
 0x51d   :  { %v347_v48 = vmul.f32 %v4050_v45, %v4038_v17  ;;  %3624 = vmatprep.subr.bf16.mxu0 %v4223_v14  ;;  %v4052_v49 = vpop.eup %4051 }
 0x51e   :  { %v4054_v51 = vpop.eup %4053  ;;  %v349_v43 = vmul.f32 %v4052_v49, %v4036_v12 }
 0x51f   :  { %3617 = vmatmul.mubr.msk.bf16.vlgmr.msra.gmra.mxu0 %vm261_vm3, %v351_v46  ;;  %v352_v50 = vpack.c.bf16 %v347_v48, %v346_v47  ;;  %v348_v52 = vmul.f32 %v4054_v51, %v4404_v7  ;;  %v3977_v51 = vld [vmem:[%s5182_s3 + $0x20] sm:$0xff]  }
 0x520   :  { %3625 = vmatpush3.bf16.msra.mxu0 %v3974_v55 }
 0x521   :  { %3620 = vmatprep.mubr.msk.bf16.mxu0 %vm261_vm3, %v352_v50  ;;  %v353_v53 = vpack.c.bf16 %v349_v43, %v348_v52  ;;  %3626 = vmatprep.subr.bf16.mxu0 %v4223_v14 }
 0x524   :  { %3627 = vmatpush3.bf16.msra.mxu0 %v3975_v59 }
 0x525   :  { %3632 = vmatprep.subr.bf16.mxu0 %v4223_v14 }
 0x527   :  { %3621 = vmatmul.mubr.msk.bf16.gmra.mxu0 %vm261_vm3, %v353_v53 }
 0x528   :  { %3628 = vmatprep.mubr.msk.bf16.mxu0 %vm4224_vm1, %v4223_v14 }
 0x5df   :  { %v3618_v56 = vpop.f32.mrf.mxu0 }
 0x5e1   :  { %v412_v58 = vpop.f32.mrf.mxu0 }
 0x5e3   :  { %v3619_v60 = vpop.f32.mrf.mxu0 }
 0x5e4   :  { %v3912_v61 = vpack.i.bf16 %v3619_v60, %v3618_v56 }
 0x5e5   :  { %v415_v62 = vpop.f32.mrf.mxu0 }
 0x5e6   :  { %3913 = vrot.lane.b32.xlu1 %v3912_v61, %s4230_s30  ;;  %v3330_v61 = vld [vmem:[%s5183_s4 + $0x2] ss:$0 sm:$0xff] }
 0x5e7   :  { %v3622_v63 = vpop.f32.mrf.mxu0 }
 0x5e9   :  { %v428_v0 = vpop.f32.mrf.mxu0 }
 0x5eb   :  { %v3623_v2 = vpop.f32.mrf.mxu0 }
 0x5ec   :  { %v3922_v3 = vpack.i.bf16 %v3623_v2, %v3622_v63  ;;  %v3331_v2 = vld [vmem:[%s5183_s4 + $0x3] ss:$0 sm:$0xff] }
 0x5ed   :  { %v431_v5 = vpop.f32.mrf.mxu0 }
 0x5ee   :  { %v3917_v6 = vpack.i.bf16 %v431_v5, %v428_v0  ;;  %3923 = vrot.lane.b32.xlu1 %v3922_v3, %s4231_s10 }
 0x5f0   :  { %3918 = vrot.lane.b32.xlu0 %v3917_v6, %s4232_s11 }
 0x658   :  { %v3914_v7 = vpop.permute.xlu1 %3913 }
 0x659   :  { %v3916_v8 = vunpack.i.h.bf16 %v3914_v7  ;;  %v3915_v10 = vunpack.i.l.bf16 %v3914_v7 }
 0x65b   :  { %v467_v17 = vsel %vm155_vm2, %v412_v58, %v3915_v10  ;;  %v468_v18 = vsel %vm155_vm2, %v415_v62, %v3916_v8  ;;  %v3978_v8 = vld [vmem:[%s5182_s3 + $0x48] sm:$0xff]   ;;  %v3979_v10 = vld [vmem:[%s5182_s3 + $0x40] sm:$0xff]  }
 0x65c   :  { %3641 = vmatpush3.bf16.msra.mxu1 %v3978_v8 }
 0x65d   :  { %3642 = vmatprep.subr.bf16.mxu1 %v4223_v14 }
 0x660   :  { %v3924_v11 = vpop.permute.xlu1 %3923  ;;  %3643 = vmatpush3.bf16.msra.mxu1 %v3979_v10 }
 0x661   :  { %v3926_v20 = vunpack.i.h.bf16 %v3924_v11  ;;  %v3925_v21 = vunpack.i.l.bf16 %v3924_v11  ;;  %3644 = vmatprep.subr.bf16.mxu1 %v4223_v14  ;;  %v3980_v11 = vld [vmem:[%s5182_s3 + $0x38] sm:$0xff]  }
 0x662   :  { %v3919_v12 = vpop.permute.xlu0 %3918 }
 0x663   :  { %v3921_v13 = vunpack.i.h.bf16 %v3919_v12  ;;  %v3920_v16 = vunpack.i.l.bf16 %v3919_v12  ;;  %v3981_v12 = vld [vmem:[%s5182_s3 + $0x30] sm:$0xff]  }
 0x664   :  { %3645 = vmatpush3.bf16.msra.mxu1 %v3980_v11  ;;  %v3343_v11 = vld [vmem:[%s5183_s4 + $0x7] ss:$0 sm:$0xff] }
 0x665   :  { %v471_v22 = vsel %vm469_vm4, %v468_v18, %v3921_v13  ;;  %v470_v23 = vsel %vm469_vm4, %v467_v17, %v3920_v16  ;;  %3646 = vmatprep.subr.bf16.mxu1 %v4223_v14  ;;  %v3332_v13 = vld [vmem:[%s5183_s4 + $0x4] ss:$0 sm:$0xff] }
 0x666   :  { %v474_v25 = vsel %vm472_vm5, %v471_v22, %v3926_v20  ;;  %v473_v26 = vsel %vm472_vm5, %v470_v23, %v3925_v21 }
 0x667   :  { %v480_v27 = vpack.c.bf16 %v474_v25, %v473_v26 }
 0x668   :  { %3647 = vmatpush3.bf16.msra.mxu1 %v3981_v12 }
 0x669   :  { %3629 = vmatmul.mubr.msk.bf16.vlgmr.msra.gmra.mxu0 %vm33_vm0, %v480_v27 }
 0x66a   :  { %3636 = vmatprep.mubr.msk.bf16.mxu0 %vm4224_vm1, %v4223_v14 }
 0x729   :  { %v534_v44 = vpop.f32.mrf.mxu0 }
 0x72a   :  { %v535_v41 = vadd.f32 %v3326_v28, %v534_v44 }
 0x72b   :  { %v3630_v29 = vpop.f32.mrf.mxu0 }
 0x72c   :  { %v541_v42 = vadd.f32 %v535_v41, %v4289_v31 }
 0x72d   :  { %v537_v30 = vpop.f32.mrf.mxu0 }
 0x72e   :  { %v538_v33 = vadd.f32 %v3326_v28, %v537_v30  ;;  %v545_v34 = vsel %vm33_vm0, %v541_v42, 0.0 }
 0x72f   :  { %546 = vadd.xlane.f32.xlu0 %v545_v34  ;;  %v3631_v35 = vpop.f32.mrf.mxu0  ;;  %v3336_v34 = vld [vmem:[%s5183_s4 + $0x5] ss:$0 sm:$0xff] }
 0x730   :  { %v542_v36 = vadd.f32 %v538_v33, %v4291_v32  ;;  %v3976_v32 = vld [vmem:[%s5182_s3 + $0x28] sm:$0xff]  }
 0x731   :  { %3633 = vmatpush3.bf16.msra.mxu0 %v3976_v32 }
 0x732   :  { %v548_v37 = vsel %vm33_vm0, %v542_v36, 0.0  ;;  %3634 = vmatprep.subr.bf16.mxu0 %v4223_v14 }
 0x733   :  { %549 = vadd.xlane.f32.xlu1 %v548_v37 }
 0x735   :  { %3635 = vmatpush3.bf16.msra.mxu0 %v3977_v51 }
 0x736   :  { %3652 = vmatprep.subr.bf16.mxu0 %v4223_v14 }
 0x7b8   :  { %v547_v38 = vpop.xlane.xlu0 %546 }
 0x7b9   :  { %v551_v39 = vmul.f32 0.03125, %v547_v38 }
 0x7bb   :  { %v553_v40 = vsub.f32 %v541_v42, %v551_v39 }
 0x7bc   :  { %v550_v45 = vpop.xlane.xlu1 %549 }
 0x7bd   :  { %v552_v46 = vmul.f32 0.03125, %v550_v45  ;;  %v555_v47 = vmul.f32 %v553_v40, %v553_v40 }
 0x7bf   :  { %v554_v48 = vsub.f32 %v542_v36, %v552_v46  ;;  %v557_v31 = vsel %vm33_vm0, %v555_v47, 0.0 }
 0x7c0   :  { %558 = vadd.xlane.f32.xlu0 %v557_v31 }
 0x7c1   :  { %v556_v49 = vmul.f32 %v554_v48, %v554_v48 }
 0x7c3   :  { %v560_v50 = vsel %vm33_vm0, %v556_v49, 0.0 }
 0x7c4   :  { %561 = vadd.xlane.f32.xlu0 %v560_v50 }
 0x849   :  { %v559_v43 = vpop.xlane.xlu0 %558 }
 0x84a   :  { %v563_v52 = vmul.f32 0.03125, %v559_v43 }
 0x84c   :  { %v565_v53 = vadd.f32 1e-12, %v563_v52 }
 0x84d   :  { %v562_v55 = vpop.xlane.xlu0 %561 }
 0x84e   :  { %4055 = vrsqrt.f32 %v565_v53  ;;  %v564_v56 = vmul.f32 0.03125, %v562_v55 }
 0x850   :  { %v566_v58 = vadd.f32 1e-12, %v564_v56 }
 0x852   :  { %4057 = vrsqrt.f32 %v566_v58  ;;  %v3982_v58 = vld [vmem:[%s5182_s3 + $0x58] sm:$0xff]  }
 0x85b   :  { %v4056_v59 = vpop.eup %4055 }
 0x85c   :  { %v569_v60 = vmul.f32 %v4056_v59, %v553_v40  ;;  %v3983_v59 = vld [vmem:[%s5182_s3 + $0x50] sm:$0xff]  }
 0x85e   :  { %v575_v0 = vmul.f32 %v3330_v61, %v569_v60 }
 0x85f   :  { %v4058_v62 = vpop.eup %4057 }
 0x860   :  { %v570_v63 = vmul.f32 %v4058_v62, %v554_v48  ;;  %v581_v5 = vadd.f32 %v3331_v2, %v575_v0 }
 0x862   :  { %v576_v3 = vmul.f32 %v3330_v61, %v570_v63 }
 0x864   :  { %v582_v6 = vadd.f32 %v3331_v2, %v576_v3 }
 0x866   :  { %v588_v7 = vpack.c.bf16 %v582_v6, %v581_v5 }
 0x868   :  { %3637 = vmatmul.mubr.msk.bf16.vlgmr.msra.gmra.mxu0 %vm33_vm0, %v588_v7 }
 0x869   :  { %3656 = vmatprep.mubr.msk.bf16.mxu0 %vm4224_vm1, %v4223_v14  ;;  %3653 = vmatpush3.bf16.msra.mxu0 %v3982_v58 }
 0x86a   :  { %3654 = vmatprep.subr.bf16.mxu0 %v4223_v14 }
 0x86d   :  { %3655 = vmatpush3.bf16.msra.mxu0 %v3983_v59 }
 0x928   :  { %v642_v16 = vpop.f32.mrf.mxu0 }
 0x929   :  { %v643_v17 = vadd.f32 %v3332_v13, %v642_v16 }
 0x92a   :  { %v3638_v18 = vpop.f32.mrf.mxu0 }
 0x92b   :  { %v651_v20 = vmul.f32 0.70710677, %v643_v17  ;;  %v649_v44 = vmul.f32 0.5, %v643_v17 }
 0x92c   :  { %v645_v21 = vpop.f32.mrf.mxu0 }
 0x92d   :  { %4059 = verf.f32 %v651_v20  ;;  %v646_v22 = vadd.f32 %v3332_v13, %v645_v21  ;;  %v3344_v20 = vld [vmem:[%s5183_s4 + $0x8] ss:$0 sm:$0xff] }
 0x92e   :  { %v3639_v23 = vpop.f32.mrf.mxu0 }
 0x92f   :  { %v652_v25 = vmul.f32 0.70710677, %v646_v22  ;;  %v650_v41 = vmul.f32 0.5, %v646_v22 }
 0x931   :  { %4061 = verf.f32 %v652_v25 }
 0x93a   :  { %v4060_v26 = vpop.eup %4059 }
 0x93b   :  { %v655_v27 = vadd.f32 1.0, %v4060_v26 }
 0x93d   :  { %v657_v42 = vmul.f32 %v655_v27, %v649_v44 }
 0x93e   :  { %v4062_v28 = vpop.eup %4061 }
 0x93f   :  { %v656_v29 = vadd.f32 1.0, %v4062_v28 }
 0x941   :  { %v658_v30 = vmul.f32 %v656_v29, %v650_v41 }
 0x943   :  { %v668_v33 = vpack.c.bf16 %v658_v30, %v657_v42 }
 0x945   :  { %3649 = vmatmul.mubr.msk.bf16.vlgmr.msra.gmra.mxu1 %vm261_vm3, %v668_v33 }
 0xa05   :  { %v734_v35 = vpop.f32.mrf.mxu1 }
 0xa06   :  { %v735_v36 = vadd.f32 %v3336_v34, %v734_v35 }
 0xa07   :  { %v3650_v37 = vpop.f32.mrf.mxu1 }
 0xa08   :  { %v741_v38 = vadd.f32 %v735_v36, %v581_v5 }
 0xa09   :  { %v737_v39 = vpop.f32.mrf.mxu1 }
 0xa0a   :  { %v738_v40 = vadd.f32 %v3336_v34, %v737_v39  ;;  %v745_v45 = vsel %vm33_vm0, %v741_v38, 0.0 }
 0xa0b   :  { %746 = vadd.xlane.f32.xlu0 %v745_v45  ;;  %v3651_v46 = vpop.f32.mrf.mxu1 }
 0xa0c   :  { %v742_v47 = vadd.f32 %v738_v40, %v582_v6  ;;  %v3342_v6 = vld [vmem:[%s5183_s4 + $0x6] ss:$0 sm:$0xff] }
 0xa0e   :  { %v748_v48 = vsel %vm33_vm0, %v742_v47, 0.0 }
 0xa0f   :  { %749 = vadd.xlane.f32.xlu1 %v748_v48 }
 0xa94   :  { %v747_v31 = vpop.xlane.xlu0 %746 }
 0xa95   :  { %v751_v49 = vmul.f32 0.03125, %v747_v31 }
 0xa97   :  { %v753_v50 = vsub.f32 %v741_v38, %v751_v49 }
 0xa98   :  { %v750_v32 = vpop.xlane.xlu1 %749 }
 0xa99   :  { %v752_v51 = vmul.f32 0.03125, %v750_v32  ;;  %v755_v43 = vmul.f32 %v753_v50, %v753_v50 }
 0xa9b   :  { %v754_v52 = vsub.f32 %v742_v47, %v752_v51  ;;  %v757_v53 = vsel %vm33_vm0, %v755_v43, 0.0 }
 0xa9c   :  { %758 = vadd.xlane.f32.xlu0 %v757_v53 }
 0xa9d   :  { %v756_v55 = vmul.f32 %v754_v52, %v754_v52 }
 0xa9f   :  { %v760_v56 = vsel %vm33_vm0, %v756_v55, 0.0 }
 0xaa0   :  { %761 = vadd.xlane.f32.xlu1 %v760_v56 }
 0xb25   :  { %v759_v60 = vpop.xlane.xlu0 %758 }
 0xb26   :  { %v763_v61 = vmul.f32 0.03125, %v759_v60 }
 0xb28   :  { %v765_v62 = vadd.f32 1e-12, %v763_v61 }
 0xb29   :  { %v762_v63 = vpop.xlane.xlu1 %761 }
 0xb2a   :  { %4063 = vrsqrt.f32 %v765_v62  ;;  %v764_v0 = vmul.f32 0.03125, %v762_v63 }
 0xb2c   :  { %v766_v2 = vadd.f32 1e-12, %v764_v0 }
 0xb2e   :  { %4065 = vrsqrt.f32 %v766_v2 }
 0xb37   :  { %v4064_v3 = vpop.eup %4063 }
 0xb38   :  { %v769_v5 = vmul.f32 %v4064_v3, %v753_v50 }
 0xb3a   :  { %v775_v10 = vmul.f32 %v3342_v6, %v769_v5 }
 0xb3b   :  { %v4066_v7 = vpop.eup %4065 }
 0xb3c   :  { %v770_v8 = vmul.f32 %v4066_v7, %v754_v52  ;;  %v4512_v13 = vadd.f32 %v3343_v11, %v775_v10 }
 0xb3e   :  { %v776_v12 = vmul.f32 %v3342_v6, %v770_v8 }
 0xb40   :  { %v4514_v16 = vadd.f32 %v3343_v11, %v776_v12 }
 0xb42   :  { %v788_v17 = vpack.c.bf16 %v4514_v16, %v4512_v13 }
 0xb44   :  { %3657 = vmatmul.mubr.msk.bf16.vlgmr.msra.gmra.mxu0 %vm33_vm0, %v788_v17 }
 0xc04   :  { %v842_v18 = vpop.f32.mrf.mxu0 }
 0xc05   :  { %v843_v23 = vadd.f32 %v3344_v20, %v842_v18 }
 0xc06   :  { %v3658_v21 = vpop.f32.mrf.mxu0 }
 0xc08   :  { %v845_v22 = vpop.f32.mrf.mxu0 }
 0xc09   :  { %v846_v25 = vadd.f32 %v3344_v20, %v845_v22 }
 0xc0a   :  { %v3659_v26 = vpop.f32.mrf.mxu0 }
 0xc0b   :  { %v4522_v27 = vpack.c.bf16 %v846_v25, %v843_v23 }
 0xc0d   :  { %853 = vrot.lane.b32.xlu1 %v4522_v27, %s4225_s6  ;;  %855 = vrot.lane.b32.xlu0 %v4522_v27, %s4226_s7 }
 0xc0e   :  { %3668 = vmatprep.mubr.msk.bf16.mxu1 %vm155_vm2, %v4522_v27 }
 0xc11   :  { %851 = vrot.lane.b32.xlu1 %v4522_v27, %s4227_s8 }
 0xc7f   :  { %v4532_v28 = vpop.permute.xlu1 %853  ;;  %v4534_v44 = vpop.permute.xlu0 %855 }
 0xc80   :  { %861 = vrot.lane.b32.xlu0 %v4532_v28, %s4228_s9  ;;  %863 = vrot.lane.b32.xlu1 %v4534_v44, %s4228_s9 }
 0xc83   :  { %v4540_v41 = vpop.permute.xlu1 %851 }
 0xc84   :  { %857 = vrot.lane.b32.xlu0 %v4522_v27, %s4228_s9  ;;  %859 = vrot.lane.b32.xlu1 %v4540_v41, %s4228_s9 }
 0xcf2   :  { %v864_v29 = vpop.permute.xlu1 %863  ;;  %v862_v30 = vpop.permute.xlu0 %861 }
 0xcf3   :  { %3890 = vmatprep.subr.msk.bf16.mxu1 %vm155_vm2, %v864_v29  ;;  %v887_v42 = vsel %vm155_vm2, %v864_v29, 0  ;;  %v884_v33 = vsel %vm155_vm2, %v862_v30, 0 }
 0xcf4   :  { %3661 = vmatpush3.bf16.xpose.msra.mxu1 %v887_v42 }
 0xcf5   :  { %3891 = vmatprep.subr.msk.bf16.mxu1 %vm155_vm2, %v862_v30 }
 0xcf6   :  { %v860_v34 = vpop.permute.xlu1 %859  ;;  %v858_v36 = vpop.permute.xlu0 %857 }
 0xcf7   :  { %v881_v35 = vsel %vm155_vm2, %v860_v34, 0  ;;  %v878_v37 = vsel %vm155_vm2, %v858_v36, 0 }
 0xcfc   :  { %3663 = vmatpush3.bf16.xpose.msra.mxu1 %v884_v33 }
 0xcfd   :  { %3892 = vmatprep.subr.msk.bf16.mxu1 %vm155_vm2, %v860_v34 }
 0xd04   :  { %3665 = vmatpush3.bf16.xpose.msra.mxu1 %v881_v35 }
 0xd05   :  { %3893 = vmatprep.subr.msk.bf16.mxu1 %vm155_vm2, %v858_v36 }
 0xd0c   :  { %3667 = vmatpush3.bf16.xpose.msra.mxu1 %v878_v37 }
 0xd0d   :  { %3708 = vmatprep.subr.bf16.mxu1 %v4223_v14 }
 0xd13   :  { %3669 = vmatmul.mubr.msk.bf16.vlgmr.msra.gmra.mxu1 %vm155_vm2, %v4540_v41 }
 0xd14   :  { %3672 = vmatprep.mubr.msk.bf16.mxu1 %vm155_vm2, %v4532_v28 }
 0xd1b   :  { %3673 = vmatmul.mubr.msk.bf16.gmra.mxu1 %vm155_vm2, %v4534_v44 }
 0xd1c   :  { %3716 = vmatprep.mubr.msk.bf16.mxu1 %vm4224_vm1, %v4223_v14 }
 0xdd3   :  { %v3670_v38 = vpop.f32.mrf.mxu1 }
 0xdd4   :  { %v956_v39 = vmul.f32 0.35355338, %v3670_v38 }
 0xdd5   :  { %v923_v40 = vpop.f32.mrf.mxu1 }
 0xdd6   :  { %v954_v45 = vmul.f32 0.35355338, %v923_v40  ;;  %v964_v46 = vadd.f32 %v956_v39, %v4343_v54 }
 0xdd7   :  { %v3671_v47 = vpop.f32.mrf.mxu1 }
 0xdd8   :  { %v976_v48 = vsel %vm261_vm3, %v964_v46, -inf  ;;  %v962_v31 = vadd.f32 %v954_v45, %v4348_v57  ;;  %v957_v49 = vmul.f32 0.35355338, %v3671_v47 }
 0xdd9   :  { %977 = vmax.xlane.f32.xlu0 %v976_v48  ;;  %v926_v50 = vpop.f32.mrf.mxu1 }
 0xdda   :  { %v955_v32 = vmul.f32 0.35355338, %v926_v50  ;;  %v970_v51 = vsel %vm261_vm3, %v962_v31, -inf  ;;  %v965_v55 = vadd.f32 %v957_v49, %v4362_v4 }
 0xddb   :  { %971 = vmax.xlane.f32.xlu1 %v970_v51  ;;  %v3674_v43 = vpop.f32.mrf.mxu1 }
 0xddc   :  { %v963_v52 = vadd.f32 %v955_v32, %v4356_v1  ;;  %v960_v56 = vmul.f32 0.35355338, %v3674_v43  ;;  %v979_v61 = vsel %vm261_vm3, %v965_v55, -inf }
 0xddd   :  { %v939_v53 = vpop.f32.mrf.mxu1 }
 0xdde   :  { %v958_v54 = vmul.f32 0.35355338, %v939_v53  ;;  %v973_v58 = vsel %vm261_vm3, %v963_v52, -inf  ;;  %v968_v1 = vadd.f32 %v960_v56, %v4375_v15 }
 0xddf   :  { %974 = vmax.xlane.f32.xlu0 %v973_v58  ;;  %v3675_v59 = vpop.f32.mrf.mxu1 }
 0xde0   :  { %v966_v57 = vadd.f32 %v958_v54, %v4369_v9  ;;  %v961_v62 = vmul.f32 0.35355338, %v3675_v59  ;;  %v988_v2 = vsel %vm261_vm3, %v968_v1, -inf }
 0xde1   :  { %v942_v60 = vpop.f32.mrf.mxu1 }
 0xde2   :  { %v959_v63 = vmul.f32 0.35355338, %v942_v60  ;;  %v982_v0 = vsel %vm261_vm3, %v966_v57, -inf  ;;  %v969_v5 = vadd.f32 %v961_v62, %v4389_v24 }
 0xde3   :  { %980 = vmax.xlane.f32.xlu0 %v979_v61  ;;  %983 = vmax.xlane.f32.xlu1 %v982_v0 }
 0xde4   :  { %v967_v4 = vadd.f32 %v959_v63, %v4382_v19  ;;  %v991_v9 = vsel %vm261_vm3, %v969_v5, -inf }
 0xde6   :  { %v985_v3 = vsel %vm261_vm3, %v967_v4, -inf }
 0xde7   :  { %989 = vmax.xlane.f32.xlu1 %v988_v2  ;;  %986 = vmax.xlane.f32.xlu0 %v985_v3 }
 0xdeb   :  { %992 = vmax.xlane.f32.xlu0 %v991_v9 }
 0xdf8   :  { %1068 = vrot.lane.b32.xlu1 %v4534_v44, %s4229_s25 }
 0xe62   :  { %v978_v6 = vpop.xlane.xlu0 %977 }
 0xe63   :  { %v996_v15 = vsub.f32 %v964_v46, %v978_v6 }
 0xe64   :  { %v972_v7 = vpop.xlane.xlu1 %971 }
 0xe65   :  { %v1006_v8 = vmul.f32 1.442695, %v996_v15  ;;  %v994_v10 = vsub.f32 %v962_v31, %v972_v7 }
 0xe67   :  { %4067 = vpow2.f32 %v1006_v8  ;;  %v1002_v19 = vmul.f32 1.442695, %v994_v10 }
 0xe68   :  { %v975_v11 = vpop.xlane.xlu0 %974 }
 0xe69   :  { %4069 = vpow2.f32 %v1002_v19  ;;  %v995_v12 = vsub.f32 %v963_v52, %v975_v11 }
 0xe6b   :  { %v1004_v20 = vmul.f32 1.442695, %v995_v12 }
 0xe6c   :  { %v981_v17 = vpop.xlane.xlu0 %980  ;;  %v984_v24 = vpop.xlane.xlu1 %983 }
 0xe6d   :  { %v997_v18 = vsub.f32 %v965_v55, %v981_v17  ;;  %v998_v22 = vsub.f32 %v966_v57, %v984_v24 }
 0xe6f   :  { %v1008_v21 = vmul.f32 1.442695, %v997_v18  ;;  %v1010_v44 = vmul.f32 1.442695, %v998_v22 }
 0xe70   :  { %v990_v23 = vpop.xlane.xlu1 %989  ;;  %v987_v25 = vpop.xlane.xlu0 %986 }
 0xe71   :  { %4071 = vpow2.f32 %v1008_v21  ;;  %v1000_v26 = vsub.f32 %v968_v1, %v990_v23  ;;  %v999_v42 = vsub.f32 %v967_v4, %v987_v25  ;;  %v3985_v23 = vld [vmem:[%s5182_s3 + $0x60] sm:$0xff]  }
 0xe72   :  { %4073 = vpow2.f32 %v1004_v20  ;;  %v3984_v20 = vld [vmem:[%s5182_s3 + $0x68] sm:$0xff]  }
 0xe73   :  { %v1014_v29 = vmul.f32 1.442695, %v1000_v26  ;;  %v1012_v38 = vmul.f32 1.442695, %v999_v42 }
 0xe74   :  { %v4581_v30 = vpop.eup %4067  ;;  %v1069_v33 = vpop.permute.xlu1 %1068 }
 0xe75   :  { %v993_v34 = vpop.xlane.xlu0 %992  ;;  %4075 = vpow2.f32 %v1014_v29  ;;  %3676 = vmatprep.subr.bf16.mxu0 %v1069_v33  ;;  %v1024_v36 = vsel %vm261_vm3, %v4581_v30, 0.0 }
 0xe76   :  { %v1001_v35 = vsub.f32 %v969_v5, %v993_v34  ;;  %v4070_v37 = vpop.eup %4069  ;;  %1025 = vadd.xlane.f32.xlu1 %v1024_v36  ;;  %3677 = vmatpush3.bf16.msra.mxu0 %v1069_v33  ;;  %4077 = vpow2.f32 %v1010_v44 }
 0xe77   :  { %v1018_v40 = vsel %vm261_vm3, %v4070_v37, 0.0 }
 0xe78   :  { %v1016_v39 = vmul.f32 1.442695, %v1001_v35 }
 0xe7a   :  { %4079 = vpow2.f32 %v1016_v39  ;;  %1019 = vadd.xlane.f32.xlu1 %v1018_v40 }
 0xe7b   :  { %4081 = vpow2.f32 %v1012_v38 }
 0xe7e   :  { %v4072_v45 = vpop.eup %4071 }
 0xe7f   :  { %v1027_v46 = vsel %vm261_vm3, %v4072_v45, 0.0  ;;  %v4074_v47 = vpop.eup %4073 }
 0xe80   :  { %1028 = vadd.xlane.f32.xlu0 %v1027_v46  ;;  %v1021_v49 = vsel %vm261_vm3, %v4074_v47, 0.0 }
 0xe82   :  { %v4587_v48 = vpop.eup %4075 }
 0xe83   :  { %v1036_v31 = vsel %vm261_vm3, %v4587_v48, 0.0  ;;  %v4078_v50 = vpop.eup %4077 }
 0xe84   :  { %1037 = vadd.xlane.f32.xlu1 %v1036_v31  ;;  %1022 = vadd.xlane.f32.xlu0 %v1021_v49  ;;  %v1030_v51 = vsel %vm261_vm3, %v4078_v50, 0.0 }
 0xe87   :  { %v4080_v32 = vpop.eup %4079 }
 0xe88   :  { %v1039_v43 = vsel %vm261_vm3, %v4080_v32, 0.0  ;;  %v4082_v52 = vpop.eup %4081  ;;  %1031 = vadd.xlane.f32.xlu1 %v1030_v51 }
 0xe89   :  { %1040 = vadd.xlane.f32.xlu0 %v1039_v43  ;;  %v1033_v53 = vsel %vm261_vm3, %v4082_v52, 0.0 }
 0xe8d   :  { %1034 = vadd.xlane.f32.xlu0 %v1033_v53  ;;  %v3356_v53 = vld [vmem:[%s5183_s4 + $0x9] ss:$0 sm:$0xff] }
 0xe99   :  { %1064 = vrot.lane.b32.xlu1 %v4540_v41, %s4229_s25 }
 0xe9d   :  { %1062 = vrot.lane.b32.xlu1 %v4522_v27, %s4229_s25 }
 0xea3   :  { %1066 = vrot.lane.b32.xlu0 %v4532_v28, %s4229_s25 }
 0xeff   :  { %v1026_v55 = vpop.xlane.xlu1 %1025 }
 0xf03   :  { %v1020_v56 = vpop.xlane.xlu1 %1019 }
 0xf04   :  { %4083 = vrcp.f32 %v1020_v56 }
 0xf09   :  { %v1029_v54 = vpop.xlane.xlu0 %1028 }
 0xf0d   :  { %v1038_v58 = vpop.xlane.xlu1 %1037  ;;  %v1023_v59 = vpop.xlane.xlu0 %1022 }
 0xf0e   :  { %4085 = vrcp.f32 %v1023_v59 }
 0xf0f   :  { %4087 = vrcp.f32 %v1029_v54 }
 0xf10   :  { %4089 = vrcp.f32 %v1026_v55 }
 0xf11   :  { %v1032_v57 = vpop.xlane.xlu1 %1031  ;;  %v4084_v62 = vpop.eup %4083 }
 0xf12   :  { %v1041_v60 = vpop.xlane.xlu0 %1040  ;;  %4091 = vrcp.f32 %v1032_v57  ;;  %v1050_v0 = vmul.f32 %v4084_v62, %v4070_v37 }
 0xf15   :  { %v1065_v41 = vpop.permute.xlu1 %1064 }
 0xf16   :  { %v1035_v61 = vpop.xlane.xlu0 %1034 }
 0xf17   :  { %4093 = vrcp.f32 %v1035_v61 }
 0xf18   :  { %4095 = vrcp.f32 %v1041_v60 }
 0xf19   :  { %4097 = vrcp.f32 %v1038_v58  ;;  %v1063_v2 = vpop.permute.xlu1 %1062 }
 0xf1a   :  { %v1067_v27 = vpop.permute.xlu0 %1066 }
 0xf1b   :  { %3678 = vmatprep.subr.bf16.mxu0 %v1067_v27  ;;  %v4086_v28 = vpop.eup %4085 }
 0xf1c   :  { %3679 = vmatpush3.bf16.msra.mxu0 %v1067_v27  ;;  %v4088_v63 = vpop.eup %4087  ;;  %v1051_v1 = vmul.f32 %v4086_v28, %v4074_v47 }
 0xf1d   :  { %3680 = vmatprep.subr.bf16.mxu0 %v1065_v41  ;;  %v4090_v4 = vpop.eup %4089  ;;  %v1053_v5 = vmul.f32 %v4088_v63, %v4072_v45 }
 0xf1e   :  { %v1058_v3 = vpack.c.bf16 %v1051_v1, %v1050_v0  ;;  %v1052_v6 = vmul.f32 %v4090_v4, %v4581_v30 }
 0xf1f   :  { %v4092_v9 = vpop.eup %4091 }
 0xf20   :  { %3681 = vmatpush3.bf16.msra.mxu0 %v1065_v41  ;;  %3684 = vmatprep.mubr.msk.bf16.mxu0 %vm261_vm3, %v1058_v3  ;;  %v1059_v7 = vpack.c.bf16 %v1053_v5, %v1052_v6  ;;  %v1054_v8 = vmul.f32 %v4092_v9, %v4078_v50  ;;  %v3987_v9 = vld [vmem:[%s5182_s3 + $0x70] sm:$0xff]  }
 0xf21   :  { %3682 = vmatprep.subr.bf16.mxu0 %v1063_v2 }
 0xf24   :  { %v4094_v15 = vpop.eup %4093  ;;  %3683 = vmatpush3.bf16.msra.mxu0 %v1063_v2 }
 0xf25   :  { %v1055_v10 = vmul.f32 %v4094_v15, %v4082_v52  ;;  %3692 = vmatprep.subr.bf16.mxu0 %v4223_v14  ;;  %v4096_v19 = vpop.eup %4095 }
 0xf26   :  { %v4098_v12 = vpop.eup %4097  ;;  %v1057_v17 = vmul.f32 %v4096_v19, %v4080_v32 }
 0xf27   :  { %3685 = vmatmul.mubr.msk.bf16.vlgmr.msra.gmra.mxu0 %vm261_vm3, %v1059_v7  ;;  %v1060_v11 = vpack.c.bf16 %v1055_v10, %v1054_v8  ;;  %v1056_v24 = vmul.f32 %v4098_v12, %v4587_v48 }
 0xf28   :  { %3693 = vmatpush3.bf16.msra.mxu0 %v3984_v20 }
 0xf29   :  { %3688 = vmatprep.mubr.msk.bf16.mxu0 %vm261_vm3, %v1060_v11  ;;  %v1061_v18 = vpack.c.bf16 %v1057_v17, %v1056_v24  ;;  %3694 = vmatprep.subr.bf16.mxu0 %v4223_v14  ;;  %v3360_v17 = vld [vmem:[%s5183_s4 + $0xa] ss:$0 sm:$0xff] }
 0xf2c   :  { %3695 = vmatpush3.bf16.msra.mxu0 %v3985_v23 }
 0xf2d   :  { %3700 = vmatprep.subr.bf16.mxu0 %v4223_v14 }
 0xf2f   :  { %3689 = vmatmul.mubr.msk.bf16.gmra.mxu0 %vm261_vm3, %v1061_v18 }
 0xf30   :  { %3696 = vmatprep.mubr.msk.bf16.mxu0 %vm4224_vm1, %v4223_v14 }
 0xfe7   :  { %v3686_v21 = vpop.f32.mrf.mxu0 }
 0xfe9   :  { %v1120_v22 = vpop.f32.mrf.mxu0 }
 0xfeb   :  { %v3687_v25 = vpop.f32.mrf.mxu0 }
 0xfec   :  { %v3927_v26 = vpack.i.bf16 %v3687_v25, %v3686_v21  ;;  %v3361_v21 = vld [vmem:[%s5183_s4 + $0xb] ss:$0 sm:$0xff] }
 0xfed   :  { %v1123_v44 = vpop.f32.mrf.mxu0 }
 0xfee   :  { %3928 = vrot.lane.b32.xlu1 %v3927_v26, %s4230_s30 }
 0xfef   :  { %v3690_v29 = vpop.f32.mrf.mxu0 }
 0xff1   :  { %v1136_v42 = vpop.f32.mrf.mxu0 }
 0xff3   :  { %v3691_v30 = vpop.f32.mrf.mxu0 }
 0xff4   :  { %v3937_v33 = vpack.i.bf16 %v3691_v30, %v3690_v29  ;;  %v3989_v29 = vld [vmem:[%s5182_s3 + $0x90] sm:$0xff]   ;;  %v3991_v30 = vld [vmem:[%s5182_s3 + $0x80] sm:$0xff]  }
 0xff5   :  { %v1139_v34 = vpop.f32.mrf.mxu0 }
 0xff6   :  { %v3932_v35 = vpack.i.bf16 %v1139_v34, %v1136_v42  ;;  %3938 = vrot.lane.b32.xlu1 %v3937_v33, %s4231_s10  ;;  %v3990_v42 = vld [vmem:[%s5182_s3 + $0x88] sm:$0xff]  }
 0xff7   :  { %v3362_v33 = vld [vmem:[%s5183_s4 + $0xc] ss:$0 sm:$0xff] }
 0xff8   :  { %3933 = vrot.lane.b32.xlu0 %v3932_v35, %s4232_s11 }
0x1060   :  { %v3929_v36 = vpop.permute.xlu1 %3928 }
0x1061   :  { %v3931_v37 = vunpack.i.h.bf16 %v3929_v36  ;;  %v3930_v38 = vunpack.i.l.bf16 %v3929_v36 }
0x1063   :  { %v1175_v47 = vsel %vm155_vm2, %v1120_v22, %v3930_v38  ;;  %v1176_v48 = vsel %vm155_vm2, %v1123_v44, %v3931_v37  ;;  %v3988_v44 = vld [vmem:[%s5182_s3 + $0x98] sm:$0xff]  }
0x1064   :  { %3709 = vmatpush3.bf16.msra.mxu1 %v3988_v44 }
0x1065   :  { %3710 = vmatprep.subr.bf16.mxu1 %v4223_v14 }
0x1068   :  { %v3939_v39 = vpop.permute.xlu1 %3938  ;;  %3711 = vmatpush3.bf16.msra.mxu1 %v3989_v29 }
0x1069   :  { %v3941_v31 = vunpack.i.h.bf16 %v3939_v39  ;;  %v3940_v49 = vunpack.i.l.bf16 %v3939_v39  ;;  %3712 = vmatprep.subr.bf16.mxu1 %v4223_v14 }
0x106a   :  { %v3934_v40 = vpop.permute.xlu0 %3933 }
0x106b   :  { %v3936_v45 = vunpack.i.h.bf16 %v3934_v40  ;;  %v3935_v46 = vunpack.i.l.bf16 %v3934_v40 }
0x106c   :  { %3713 = vmatpush3.bf16.msra.mxu1 %v3990_v42  ;;  %v3994_v42 = vld [vmem:[%s5182_s3 + $0x150] sm:$0xff]  }
0x106d   :  { %v1178_v50 = vsel %vm469_vm4, %v1176_v48, %v3936_v45  ;;  %v1177_v32 = vsel %vm469_vm4, %v1175_v47, %v3935_v46  ;;  %3714 = vmatprep.subr.bf16.mxu1 %v4223_v14 }
0x106e   :  { %v1180_v51 = vsel %vm472_vm5, %v1178_v50, %v3941_v31  ;;  %v1179_v43 = vsel %vm472_vm5, %v1177_v32, %v3940_v49 }
0x106f   :  { %v1186_v52 = vpack.c.bf16 %v1180_v51, %v1179_v43 }
0x1070   :  { %3715 = vmatpush3.bf16.msra.mxu1 %v3991_v30  ;;  %v3374_v30 = vld [vmem:[%s5183_s4 + $0x24] ss:$0 sm:$0xff] }
0x1071   :  { %3697 = vmatmul.mubr.msk.bf16.vlgmr.msra.gmra.mxu0 %vm33_vm0, %v1186_v52  ;;  %3728 = vmatprep.subr.bf16.mxu1 %v4223_v14  ;;  %v3366_v52 = vld [vmem:[%s5183_s4 + $0xd] ss:$0 sm:$0xff] }
0x1072   :  { %3704 = vmatprep.mubr.msk.bf16.mxu0 %vm4224_vm1, %v4223_v14 }
0x1131   :  { %v1240_v55 = vpop.f32.mrf.mxu0 }
0x1132   :  { %v1241_v56 = vadd.f32 %v3356_v53, %v1240_v55 }
0x1133   :  { %v3698_v54 = vpop.f32.mrf.mxu0 }
0x1134   :  { %v1247_v58 = vadd.f32 %v1241_v56, %v4512_v13 }
0x1135   :  { %v1243_v59 = vpop.f32.mrf.mxu0 }
0x1136   :  { %v1244_v57 = vadd.f32 %v3356_v53, %v1243_v59  ;;  %v1251_v60 = vsel %vm33_vm0, %v1247_v58, 0.0 }
0x1137   :  { %1252 = vadd.xlane.f32.xlu0 %v1251_v60  ;;  %v3699_v61 = vpop.f32.mrf.mxu0 }
0x1138   :  { %v1248_v41 = vadd.f32 %v1244_v57, %v4514_v16  ;;  %v3986_v16 = vld [vmem:[%s5182_s3 + $0x78] sm:$0xff]  }
0x1139   :  { %3701 = vmatpush3.bf16.msra.mxu0 %v3986_v16  ;;  %v3993_v16 = vld [vmem:[%s5182_s3 + $0x140] sm:$0xff]  }
0x113a   :  { %v1254_v27 = vsel %vm33_vm0, %v1248_v41, 0.0  ;;  %3702 = vmatprep.subr.bf16.mxu0 %v4223_v14 }
0x113b   :  { %1255 = vadd.xlane.f32.xlu1 %v1254_v27 }
0x113d   :  { %3703 = vmatpush3.bf16.msra.mxu0 %v3987_v9  ;;  %v1574_v9 = vld [vmem:[%s5185_s2] sm:$0x3] }
0x113e   :  { %3720 = vmatprep.subr.bf16.mxu0 %v4223_v14 }
0x11c0   :  { %v1253_v62 = vpop.xlane.xlu0 %1252 }
0x11c1   :  { %v1257_v28 = vmul.f32 0.03125, %v1253_v62 }
0x11c3   :  { %v1259_v63 = vsub.f32 %v1247_v58, %v1257_v28 }
0x11c4   :  { %v1256_v0 = vpop.xlane.xlu1 %1255 }
0x11c5   :  { %v1258_v1 = vmul.f32 0.03125, %v1256_v0  ;;  %v1261_v4 = vmul.f32 %v1259_v63, %v1259_v63 }
0x11c7   :  { %v1260_v2 = vsub.f32 %v1248_v41, %v1258_v1  ;;  %v1263_v13 = vsel %vm33_vm0, %v1261_v4, 0.0 }
0x11c8   :  { %1264 = vadd.xlane.f32.xlu0 %v1263_v13 }
0x11c9   :  { %v1262_v3 = vmul.f32 %v1260_v2, %v1260_v2 }
0x11cb   :  { %v1266_v5 = vsel %vm33_vm0, %v1262_v3, 0.0 }
0x11cc   :  { %1267 = vadd.xlane.f32.xlu0 %v1266_v5  ;;  %v3992_v5 = vld [vmem:[%s5182_s3 + $0x148] sm:$0xff]  }
0x1251   :  { %v1265_v6 = vpop.xlane.xlu0 %1264 }
0x1252   :  { %v1269_v15 = vmul.f32 0.03125, %v1265_v6 }
0x1254   :  { %v1271_v7 = vadd.f32 1e-12, %v1269_v15 }
0x1255   :  { %v1268_v8 = vpop.xlane.xlu0 %1267 }
0x1256   :  { %4099 = vrsqrt.f32 %v1271_v7  ;;  %v1270_v10 = vmul.f32 0.03125, %v1268_v8 }
0x1258   :  { %v1272_v19 = vadd.f32 1e-12, %v1270_v10 }
0x125a   :  { %4101 = vrsqrt.f32 %v1272_v19 }
0x1263   :  { %v4100_v11 = vpop.eup %4099 }
0x1264   :  { %v1275_v12 = vmul.f32 %v4100_v11, %v1259_v63 }
0x1266   :  { %v1281_v20 = vmul.f32 %v3360_v17, %v1275_v12 }
0x1267   :  { %v4102_v24 = vpop.eup %4101 }
0x1268   :  { %v1276_v18 = vmul.f32 %v4102_v24, %v1260_v2  ;;  %v1287_v23 = vadd.f32 %v3361_v21, %v1281_v20  ;;  %v3372_v24 = vld [vmem:[%s5183_s4 + $0xe] ss:$0 sm:$0xff] }
0x126a   :  { %v1282_v22 = vmul.f32 %v3360_v17, %v1276_v18 }
0x126c   :  { %v1288_v25 = vadd.f32 %v3361_v21, %v1282_v22  ;;  %v3373_v22 = vld [vmem:[%s5183_s4 + $0xf] ss:$0 sm:$0xff] }
0x126e   :  { %v1294_v26 = vpack.c.bf16 %v1288_v25, %v1287_v23 }
0x1270   :  { %3705 = vmatmul.mubr.msk.bf16.vlgmr.msra.gmra.mxu0 %vm33_vm0, %v1294_v26 }
0x1271   :  { %3724 = vmatprep.mubr.msk.bf16.mxu0 %vm4224_vm1, %v4223_v14  ;;  %3721 = vmatpush3.bf16.msra.mxu0 %v3992_v5 }
0x1272   :  { %3722 = vmatprep.subr.bf16.mxu0 %v4223_v14 }
0x1275   :  { %3723 = vmatpush3.bf16.msra.mxu0 %v3993_v16 }
0x1276   :  { %3734 = vmatprep.subr.bf16.mxu0 %v4223_v14 }
0x1330   :  { %v1348_v34 = vpop.f32.mrf.mxu0 }
0x1331   :  { %v1349_v35 = vadd.f32 %v3362_v33, %v1348_v34 }
0x1332   :  { %v3706_v36 = vpop.f32.mrf.mxu0 }
0x1333   :  { %v1357_v37 = vmul.f32 0.70710677, %v1349_v35  ;;  %v1355_v31 = vmul.f32 0.5, %v1349_v35 }
0x1334   :  { %v1351_v38 = vpop.f32.mrf.mxu0 }
0x1335   :  { %4103 = verf.f32 %v1357_v37  ;;  %v1352_v39 = vadd.f32 %v3362_v33, %v1351_v38 }
0x1336   :  { %v3707_v40 = vpop.f32.mrf.mxu0 }
0x1337   :  { %v1358_v45 = vmul.f32 0.70710677, %v1352_v39  ;;  %v1356_v49 = vmul.f32 0.5, %v1352_v39 }
0x1339   :  { %4105 = verf.f32 %v1358_v45 }
0x1342   :  { %v4104_v46 = vpop.eup %4103 }
0x1343   :  { %v1361_v47 = vadd.f32 1.0, %v4104_v46 }
0x1345   :  { %v1363_v32 = vmul.f32 %v1361_v47, %v1355_v31 }
0x1346   :  { %v4106_v48 = vpop.eup %4105 }
0x1347   :  { %v1362_v50 = vadd.f32 1.0, %v4106_v48 }
0x1349   :  { %v1364_v51 = vmul.f32 %v1362_v50, %v1356_v49 }
0x134b   :  { %v1374_v43 = vpack.c.bf16 %v1364_v51, %v1363_v32 }
0x134d   :  { %3717 = vmatmul.mubr.msk.bf16.vlgmr.msra.gmra.mxu1 %vm261_vm3, %v1374_v43 }
0x134e   :  { %3730 = vmatprep.mubr.msk.bf16.mxu1 %vm4224_vm1, %v4223_v14  ;;  %3729 = vmatpush3.bf16.msra.mxu1 %v3994_v42 }
0x140d   :  { %v1440_v53 = vpop.f32.mrf.mxu1 }
0x140e   :  { %v1441_v55 = vadd.f32 %v3366_v52, %v1440_v53 }
0x140f   :  { %v3718_v56 = vpop.f32.mrf.mxu1 }
0x1410   :  { %v1447_v54 = vadd.f32 %v1441_v55, %v1287_v23 }
0x1411   :  { %v1443_v58 = vpop.f32.mrf.mxu1 }
0x1412   :  { %v1444_v59 = vadd.f32 %v3366_v52, %v1443_v58  ;;  %v1451_v57 = vsel %vm33_vm0, %v1447_v54, 0.0 }
0x1413   :  { %1452 = vadd.xlane.f32.xlu1 %v1451_v57  ;;  %v3719_v60 = vpop.f32.mrf.mxu1 }
0x1414   :  { %v1448_v61 = vadd.f32 %v1444_v59, %v1288_v25  ;;  %v1643_v60 = vlaneseq }
0x1416   :  { %v1454_v41 = vsel %vm33_vm0, %v1448_v61, 0.0 }
0x1417   :  { %1455 = vadd.xlane.f32.xlu0 %v1454_v41  ;;  %v3378_v41 = vld [vmem:[%s5183_s4 + $0x25] ss:$0 sm:$0xff] }
0x149c   :  { %v1453_v27 = vpop.xlane.xlu1 %1452 }
0x149d   :  { %v1457_v62 = vmul.f32 0.03125, %v1453_v27 }
0x149f   :  { %v1459_v28 = vsub.f32 %v1447_v54, %v1457_v62 }
0x14a0   :  { %v1456_v63 = vpop.xlane.xlu0 %1455 }
0x14a1   :  { %v1458_v0 = vmul.f32 0.03125, %v1456_v63  ;;  %v1461_v1 = vmul.f32 %v1459_v28, %v1459_v28 }
0x14a3   :  { %v1460_v4 = vsub.f32 %v1448_v61, %v1458_v0  ;;  %v1463_v2 = vsel %vm33_vm0, %v1461_v1, 0.0  ;;  %v1644_v61 = vshrl.u32 %v1643_v60, 7 }
0x14a4   :  { %1464 = vadd.xlane.f32.xlu1 %v1463_v2 }
0x14a5   :  { %v1462_v13 = vmul.f32 %v1460_v4, %v1460_v4  ;;  %v1645_v27 = vadd.s32 8, %v1644_v61  ;;  %v1654_v62 = vsub.s32 0, %v1644_v61  ;;  %vm1646_vm10 = vcmp.eq.s32.totalorder %v1644_v61, 0 }
0x14a7   :  { %v1466_v3 = vsel %vm33_vm0, %v1462_v13, 0.0  ;;  %vm1649_vm9 = vcmp.eq.s32.totalorder %v1645_v27, 8  ;;  %v1642_v13 = vld [vmem:[%s5183_s4 + $0x30] sm:$0xff] }
0x14a8   :  { %1467 = vadd.xlane.f32.xlu0 %v1466_v3 }
0x14be   :  { %1576 = vrot.lane.b32.xlu0 %v1574_v9, %s4232_s11 }
0x152d   :  { %v1465_v6 = vpop.xlane.xlu1 %1464 }
0x152e   :  { %v1469_v15 = vmul.f32 0.03125, %v1465_v6 }
0x1530   :  { %v1471_v7 = vadd.f32 1e-12, %v1469_v15 }
0x1531   :  { %v1468_v8 = vpop.xlane.xlu0 %1467 }
0x1532   :  { %4107 = vrsqrt.f32 %v1471_v7  ;;  %v1470_v10 = vmul.f32 0.03125, %v1468_v8 }
0x1534   :  { %v1472_v19 = vadd.f32 1e-12, %v1470_v10 }
0x1535   :  { %v1577_v53 = vpop.permute.xlu0 %1576 }
0x1536   :  { %4109 = vrsqrt.f32 %v1472_v19 }
0x153f   :  { %v4108_v11 = vpop.eup %4107 }
0x1540   :  { %v1475_v12 = vmul.f32 %v4108_v11, %v1459_v28  ;;  %v1658_v28 = vsub.s32 1, %v1644_v61 }
0x1542   :  { %v1481_v20 = vmul.f32 %v3372_v24, %v1475_v12 }
0x1543   :  { %v4110_v17 = vpop.eup %4109 }
0x1544   :  { %v1476_v18 = vmul.f32 %v4110_v17, %v1460_v4  ;;  %v1487_v25 = vadd.f32 %v3373_v22, %v1481_v20 }
0x1546   :  { %v1482_v21 = vmul.f32 %v3372_v24, %v1476_v18 }
0x1548   :  { %v1488_v23 = vadd.f32 %v3373_v22, %v1482_v21 }
0x154a   :  { %v1490_v26 = vrot.slane %v1488_v23, 7 }
0x154c   :  { %v1493_v44 = vsel %vm1492_vm6, %v1487_v25, %v1490_v26 }
0x154d   :  { %v1499_v29 = vpack.c.bf16 %v1493_v44, %v1493_v44 }
0x154f   :  { %3725 = vmatmul.mubr.msk.bf16.vlgmr.msra.gmra.mxu0 %vm33_vm0, %v1499_v29 }
0x1550   :  { %3738 = vmatprep.mubr.msk.bf16.mxu0 %vm4224_vm1, %v4223_v14 }
0x160f   :  { %v1553_v33 = vpop.f32.mrf.mxu0 }
0x1610   :  { %v1554_v34 = vadd.f32 %v3374_v30, %v1553_v33 }
0x1611   :  { %v3726_v35 = vpop.f32.mrf.mxu0 }
0x1612   :  { %v1560_v36 = vand.u32 2147483647, %v1554_v34  ;;  %v3304_v37 = vsel %vm33_vm0, %v1554_v34, 0.0  ;;  %v1559_v52 = vmax.f32 %v1554_v34, 0.0  ;;  %v3381_v35 = vld [vmem:[%s5183_s4 + $0x22] ss:$0 sm:$0xff] }
0x1613   :  { %v1556_v38 = vpop.f32.mrf.mxu0  ;;  %v3306_v39 = vsel %vm3305_vm7, %v3304_v37, 0.0 }
0x1614   :  { %v1561_v40 = vsub.f32 0.0, %v1560_v36  ;;  %3307 = vst [vmem:[%s5186_s5 + $0x10] sm:$0xff] %v3306_v39  ;;  %v3382_v39 = vld [vmem:[%s5183_s4 + $0x23] ss:$0 sm:$0xff] }
0x1615   :  { %v3727_v45 = vpop.f32.mrf.mxu0 }
0x1616   :  { %v1562_v46 = vmul.f32 1.442695, %v1561_v40 }
0x1618   :  { %4111 = vpow2.f32 %v1562_v46 }
0x1625   :  { %v4112_v47 = vpop.eup %4111 }
0x1626   :  { %v1564_v48 = vadd.f32 1.0, %v4112_v47  ;;  %v1567_v31 = vmul.f32 -0.5, %v4112_v47  ;;  %v1570_v50 = vand.u32 2147483647, %v4112_v47 }
0x1628   :  { %4113 = vlog2.f32 %v1564_v48  ;;  %v1568_v49 = vadd.f32 1.0, %v1567_v31  ;;  %vm1571_vm8 = vcmp.lt.f32.partialorder %v1570_v50, 0.0004427343 }
0x162a   :  { %v1569_v43 = vmul.f32 %v4112_v47, %v1568_v49  ;;  %v3383_v49 = vld [vmem:[%s5183_s4 + $0x10] ss:$0 sm:$0xff] }
0x1635   :  { %v4114_v32 = vpop.eup %4113 }
0x1636   :  { %v1566_v51 = vmul.f32 0.6931472, %v4114_v32 }
0x1638   :  { %v1572_v55 = vsel %vm1571_vm8, %v1569_v43, %v1566_v51 }
0x1639   :  { %v1573_v56 = vadd.f32 %v1572_v55, %v1559_v52 }
0x163b   :  { %v1579_v54 = vmul.f32 %v1577_v53, %v1573_v56 }
0x163d   :  { %1581 = vrot.lane.b32.xlu1 %v1579_v54, %s4225_s6 }
0x16af   :  { %v1582_v58 = vpop.permute.xlu1 %1581 }
0x16b0   :  { %v1584_v59 = vadd.f32 %v1582_v58, %v1554_v34 }
0x16b2   :  { %v1588_v57 = vpack.c.bf16 %v1584_v59, %v1584_v59 }
0x16b4   :  { %3731 = vmatmul.mubr.msk.bf16.vlgmr.msra.gmra.mxu1 %vm469_vm4, %v1588_v57 }
0x1774   :  { %v1636_v63 = vpop.f32.mrf.mxu1 }
0x1775   :  { %v1637_v0 = vadd.f32 %v3378_v41, %v1636_v63 }
0x1776   :  { %v3732_v1 = vpop.f32.mrf.mxu1 }
0x1777   :  { %v1655_v4 = vrot.slane %v1637_v0, %v1654_v62  ;;  %v1659_v2 = vrot.slane %v1637_v0, %v1658_v28 }
0x1778   :  { %v1639_v3 = vpop.f32.mrf.mxu1 }
0x1779   :  { %v1665_v5 = vsel %vm1649_vm9, %v1659_v2, %v1488_v23  ;;  %v1664_v16 = vsel %vm1646_vm10, %v1655_v4, %v1487_v25  ;;  %v3995_v23 = vld [vmem:[%s5182_s3 + $0xa8] sm:$0xff]   ;;  %v3996_v25 = vld [vmem:[%s5182_s3 + $0xa0] sm:$0xff]   ;;  %v4795_v4 = vld [vmem:[%s5184_s1 + $0x10] sm:$0xff] }
0x177a   :  { %v3733_v9 = vpop.f32.mrf.mxu1  ;;  %v1667_v6 = vadd.f32 %v1665_v5, %v1642_v13  ;;  %v1666_v15 = vadd.f32 %v1664_v16, %v1642_v13  ;;  %3735 = vmatpush3.bf16.msra.mxu0 %v3995_v23  ;;  %v4802_v5 = vld [vmem:[%s5184_s1] sm:$0xff] }
0x177b   :  { %3736 = vmatprep.subr.bf16.mxu0 %v4223_v14 }
0x177c   :  { %v1673_v7 = vsel %vm33_vm0, %v1667_v6, 0.0  ;;  %v1670_v8 = vsel %vm33_vm0, %v1666_v15, 0.0 }
0x177d   :  { %1674 = vadd.xlane.f32.xlu0 %v1673_v7  ;;  %1671 = vadd.xlane.f32.xlu1 %v1670_v8 }
0x177e   :  { %3737 = vmatpush3.bf16.msra.mxu0 %v3996_v25 }
0x1806   :  { %v1675_v10 = vpop.xlane.xlu0 %1674  ;;  %v1672_v19 = vpop.xlane.xlu1 %1671 }
0x1807   :  { %v1677_v11 = vmul.f32 0.03125, %v1675_v10  ;;  %v1676_v12 = vmul.f32 0.03125, %v1672_v19  ;;  %v4809_v10 = vld [vmem:[%s5184_s1 + $0x8] sm:$0xff] }
0x1809   :  { %v1679_v17 = vsub.f32 %v1667_v6, %v1677_v11  ;;  %v1678_v24 = vsub.f32 %v1666_v15, %v1676_v12  ;;  %v4815_v12 = vld [vmem:[%s5184_s1 + $0x18] sm:$0xff] }
0x180b   :  { %v1681_v18 = vmul.f32 %v1679_v17, %v1679_v17  ;;  %v1680_v20 = vmul.f32 %v1678_v24, %v1678_v24 }
0x180d   :  { %v1685_v21 = vsel %vm33_vm0, %v1681_v18, 0.0  ;;  %v1682_v22 = vsel %vm33_vm0, %v1680_v20, 0.0 }
0x180e   :  { %1686 = vadd.xlane.f32.xlu1 %v1685_v21  ;;  %1683 = vadd.xlane.f32.xlu0 %v1682_v22  ;;  %v4822_v22 = vld [vmem:[%s5184_s1 + $0x20] sm:$0xff] }
0x1897   :  { %v1684_v26 = vpop.xlane.xlu0 %1683  ;;  %v1687_v44 = vpop.xlane.xlu1 %1686 }
0x1898   :  { %v1688_v29 = vmul.f32 0.03125, %v1684_v26  ;;  %v1689_v42 = vmul.f32 0.03125, %v1687_v44  ;;  %v4829_v44 = vld [vmem:[%s5184_s1 + $0x30] sm:$0xff] }
0x189a   :  { %v1690_v30 = vadd.f32 1e-12, %v1688_v29  ;;  %v1691_v33 = vadd.f32 1e-12, %v1689_v42 }
0x189c   :  { %4115 = vrsqrt.f32 %v1690_v30 }
0x189d   :  { %4117 = vrsqrt.f32 %v1691_v33 }
0x18a9   :  { %v4116_v34 = vpop.eup %4115 }
0x18aa   :  { %v4118_v36 = vpop.eup %4117  ;;  %v1694_v37 = vmul.f32 %v4116_v34, %v1678_v24  ;;  %v4836_v34 = vld [vmem:[%s5184_s1 + $0x28] sm:$0xff] }
0x18ab   :  { %v1695_v38 = vmul.f32 %v4118_v36, %v1679_v17  ;;  %v4842_v36 = vld [vmem:[%s5184_s1 + $0x38] sm:$0xff] }
0x18ac   :  { %v1700_v40 = vmul.f32 %v3381_v35, %v1694_v37 }
0x18ad   :  { %v1701_v45 = vmul.f32 %v3381_v35, %v1695_v38 }
0x18ae   :  { %v4741_v46 = vadd.f32 %v3382_v39, %v1700_v40 }
0x18af   :  { %v4743_v47 = vadd.f32 %v3382_v39, %v1701_v45 }
0x18b1   :  { %v1713_v48 = vpack.c.bf16 %v4743_v47, %v4741_v46 }
0x18b3   :  { %3739 = vmatmul.mubr.msk.bf16.vlgmr.msra.gmra.mxu0 %vm33_vm0, %v1713_v48 }
0x1973   :  { %v1767_v31 = vpop.f32.mrf.mxu0 }
0x1974   :  { %v1768_v51 = vadd.f32 %v3383_v49, %v1767_v31 }
0x1975   :  { %v3740_v50 = vpop.f32.mrf.mxu0 }
0x1977   :  { %v1770_v32 = vpop.f32.mrf.mxu0 }
0x1978   :  { %v1771_v43 = vadd.f32 %v3383_v49, %v1770_v32 }
0x1979   :  { %v3741_v52 = vpop.f32.mrf.mxu0 }
0x197a   :  { %v4751_v53 = vpack.c.bf16 %v1771_v43, %v1768_v51 }
0x197c   :  { %1778 = vrot.lane.b32.xlu1 %v4751_v53, %s4225_s6  ;;  %1780 = vrot.lane.b32.xlu0 %v4751_v53, %s4226_s7 }
0x197d   :  { %3750 = vmatprep.mubr.msk.bf16.mxu1 %vm155_vm2, %v4751_v53 }
0x1980   :  { %1776 = vrot.lane.b32.xlu1 %v4751_v53, %s4227_s8 }
0x19ee   :  { %v4761_v55 = vpop.permute.xlu1 %1778  ;;  %v4763_v56 = vpop.permute.xlu0 %1780 }
0x19ef   :  { %1786 = vrot.lane.b32.xlu0 %v4761_v55, %s4228_s9  ;;  %1788 = vrot.lane.b32.xlu1 %v4763_v56, %s4228_s9 }
0x19f2   :  { %v4769_v54 = vpop.permute.xlu1 %1776 }
0x19f3   :  { %1782 = vrot.lane.b32.xlu0 %v4751_v53, %s4228_s9  ;;  %1784 = vrot.lane.b32.xlu1 %v4769_v54, %s4228_s9 }
0x1a61   :  { %v1789_v58 = vpop.permute.xlu1 %1788  ;;  %v1787_v57 = vpop.permute.xlu0 %1786 }
0x1a62   :  { %v1812_v59 = vsel %vm155_vm2, %v1789_v58, 0  ;;  %3894 = vmatprep.subr.msk.bf16.mxu1 %vm155_vm2, %v1789_v58  ;;  %v1809_v60 = vsel %vm155_vm2, %v1787_v57, 0 }
0x1a63   :  { %3743 = vmatpush3.bf16.xpose.msra.mxu1 %v1812_v59 }
0x1a64   :  { %3895 = vmatprep.subr.msk.bf16.mxu1 %vm155_vm2, %v1787_v57 }
0x1a65   :  { %v1785_v61 = vpop.permute.xlu1 %1784  ;;  %v1783_v27 = vpop.permute.xlu0 %1782 }
0x1a66   :  { %v1806_v41 = vsel %vm155_vm2, %v1785_v61, 0  ;;  %v1803_v62 = vsel %vm155_vm2, %v1783_v27, 0 }
0x1a6b   :  { %3745 = vmatpush3.bf16.xpose.msra.mxu1 %v1809_v60 }
0x1a6c   :  { %3896 = vmatprep.subr.msk.bf16.mxu1 %vm155_vm2, %v1785_v61 }
0x1a73   :  { %3747 = vmatpush3.bf16.xpose.msra.mxu1 %v1806_v41 }
0x1a74   :  { %3897 = vmatprep.subr.msk.bf16.mxu1 %vm155_vm2, %v1783_v27 }
0x1a7b   :  { %3749 = vmatpush3.bf16.xpose.msra.mxu1 %v1803_v62 }
0x1a7c   :  { %3790 = vmatprep.subr.bf16.mxu1 %v4223_v14 }
0x1a82   :  { %3751 = vmatmul.mubr.msk.bf16.vlgmr.msra.gmra.mxu1 %vm155_vm2, %v4769_v54 }
0x1a83   :  { %3754 = vmatprep.mubr.msk.bf16.mxu1 %vm155_vm2, %v4761_v55 }
0x1a8a   :  { %3755 = vmatmul.mubr.msk.bf16.gmra.mxu1 %vm155_vm2, %v4763_v56 }
0x1a8b   :  { %3798 = vmatprep.mubr.msk.bf16.mxu1 %vm4224_vm1, %v4223_v14 }
0x1b42   :  { %v3752_v28 = vpop.f32.mrf.mxu1 }
0x1b43   :  { %v1881_v63 = vmul.f32 0.35355338, %v3752_v28 }
0x1b44   :  { %v1848_v0 = vpop.f32.mrf.mxu1 }
0x1b45   :  { %v1879_v1 = vmul.f32 0.35355338, %v1848_v0  ;;  %v1889_v2 = vadd.f32 %v4795_v4, %v1881_v63 }
0x1b46   :  { %v3753_v13 = vpop.f32.mrf.mxu1 }
0x1b47   :  { %v1901_v3 = vsel %vm261_vm3, %v1889_v2, -inf  ;;  %v1887_v16 = vadd.f32 %v4802_v5, %v1879_v1  ;;  %v1882_v9 = vmul.f32 0.35355338, %v3753_v13 }
0x1b48   :  { %1902 = vmax.xlane.f32.xlu0 %v1901_v3  ;;  %v1851_v6 = vpop.f32.mrf.mxu1 }
0x1b49   :  { %v1880_v15 = vmul.f32 0.35355338, %v1851_v6  ;;  %v1895_v7 = vsel %vm261_vm3, %v1887_v16, -inf  ;;  %v1890_v17 = vadd.f32 %v4815_v12, %v1882_v9 }
0x1b4a   :  { %1896 = vmax.xlane.f32.xlu1 %v1895_v7  ;;  %v3756_v8 = vpop.f32.mrf.mxu1 }
0x1b4b   :  { %v1888_v19 = vadd.f32 %v4809_v10, %v1880_v15  ;;  %v1885_v24 = vmul.f32 0.35355338, %v3756_v8  ;;  %v1904_v26 = vsel %vm261_vm3, %v1890_v17, -inf }
0x1b4c   :  { %v1864_v11 = vpop.f32.mrf.mxu1 }
0x1b4d   :  { %v1883_v18 = vmul.f32 0.35355338, %v1864_v11  ;;  %v1898_v20 = vsel %vm261_vm3, %v1888_v19, -inf  ;;  %v1893_v29 = vadd.f32 %v4829_v44, %v1885_v24 }
0x1b4e   :  { %1899 = vmax.xlane.f32.xlu0 %v1898_v20  ;;  %v3757_v21 = vpop.f32.mrf.mxu1 }
0x1b4f   :  { %v1891_v23 = vadd.f32 %v4822_v22, %v1883_v18  ;;  %v1886_v42 = vmul.f32 0.35355338, %v3757_v21  ;;  %v1913_v38 = vsel %vm261_vm3, %v1893_v29, -inf }
0x1b50   :  { %v1867_v25 = vpop.f32.mrf.mxu1 }
0x1b51   :  { %v1884_v30 = vmul.f32 0.35355338, %v1867_v25  ;;  %v1907_v33 = vsel %vm261_vm3, %v1891_v23, -inf  ;;  %v1894_v37 = vadd.f32 %v4842_v36, %v1886_v42 }
0x1b52   :  { %1905 = vmax.xlane.f32.xlu0 %v1904_v26  ;;  %1908 = vmax.xlane.f32.xlu1 %v1907_v33 }
0x1b53   :  { %v1892_v35 = vadd.f32 %v4836_v34, %v1884_v30  ;;  %v1916_v40 = vsel %vm261_vm3, %v1894_v37, -inf }
0x1b55   :  { %v1910_v39 = vsel %vm261_vm3, %v1892_v35, -inf }
0x1b56   :  { %1914 = vmax.xlane.f32.xlu1 %v1913_v38  ;;  %1911 = vmax.xlane.f32.xlu0 %v1910_v39 }
0x1b5a   :  { %1917 = vmax.xlane.f32.xlu0 %v1916_v40 }
0x1b67   :  { %1993 = vrot.lane.b32.xlu1 %v4763_v56, %s4229_s25 }
0x1bd1   :  { %v1903_v45 = vpop.xlane.xlu0 %1902 }
0x1bd2   :  { %v1921_v48 = vsub.f32 %v1889_v2, %v1903_v45 }
0x1bd3   :  { %v1897_v31 = vpop.xlane.xlu1 %1896 }
0x1bd4   :  { %v1931_v49 = vmul.f32 1.442695, %v1921_v48  ;;  %v1919_v50 = vsub.f32 %v1887_v16, %v1897_v31 }
0x1bd6   :  { %4119 = vpow2.f32 %v1931_v49  ;;  %v1927_v32 = vmul.f32 1.442695, %v1919_v50 }
0x1bd7   :  { %v1900_v51 = vpop.xlane.xlu0 %1899 }
0x1bd8   :  { %4121 = vpow2.f32 %v1927_v32  ;;  %v1920_v43 = vsub.f32 %v1888_v19, %v1900_v51 }
0x1bda   :  { %v1929_v57 = vmul.f32 1.442695, %v1920_v43 }
0x1bdb   :  { %v1906_v52 = vpop.xlane.xlu0 %1905  ;;  %v1909_v58 = vpop.xlane.xlu1 %1908 }
0x1bdc   :  { %v1922_v59 = vsub.f32 %v1890_v17, %v1906_v52  ;;  %v1923_v61 = vsub.f32 %v1891_v23, %v1909_v58 }
0x1bde   :  { %v1933_v60 = vmul.f32 1.442695, %v1922_v59  ;;  %v1935_v62 = vmul.f32 1.442695, %v1923_v61 }
0x1bdf   :  { %v1915_v41 = vpop.xlane.xlu1 %1914  ;;  %v1912_v27 = vpop.xlane.xlu0 %1911 }
0x1be0   :  { %4123 = vpow2.f32 %v1933_v60  ;;  %v1925_v56 = vsub.f32 %v1893_v29, %v1915_v41  ;;  %v1924_v63 = vsub.f32 %v1892_v35, %v1912_v27 }
0x1be1   :  { %4125 = vpow2.f32 %v1929_v57 }
0x1be2   :  { %v1939_v28 = vmul.f32 1.442695, %v1925_v56  ;;  %v1937_v9 = vmul.f32 1.442695, %v1924_v63  ;;  %v3997_v63 = vld [vmem:[%s5182_s3 + $0xb8] sm:$0xff]  }
0x1be3   :  { %v4850_v0 = vpop.eup %4119  ;;  %v1994_v1 = vpop.permute.xlu1 %1993 }
0x1be4   :  { %v1918_v2 = vpop.xlane.xlu0 %1917  ;;  %4127 = vpow2.f32 %v1939_v28  ;;  %3758 = vmatprep.subr.bf16.mxu0 %v1994_v1  ;;  %v1949_v3 = vsel %vm261_vm3, %v4850_v0, 0.0 }
0x1be5   :  { %v1926_v13 = vsub.f32 %v1894_v37, %v1918_v2  ;;  %v4122_v16 = vpop.eup %4121  ;;  %1950 = vadd.xlane.f32.xlu1 %v1949_v3  ;;  %3759 = vmatpush3.bf16.msra.mxu0 %v1994_v1  ;;  %4129 = vpow2.f32 %v1935_v62  ;;  %v3998_v2 = vld [vmem:[%s5182_s3 + $0xb0] sm:$0xff]  }
0x1be6   :  { %v1943_v15 = vsel %vm261_vm3, %v4122_v16, 0.0 }
0x1be7   :  { %v1941_v6 = vmul.f32 1.442695, %v1926_v13 }
0x1be9   :  { %4131 = vpow2.f32 %v1941_v6  ;;  %1944 = vadd.xlane.f32.xlu1 %v1943_v15 }
0x1bea   :  { %4133 = vpow2.f32 %v1937_v9 }
0x1bed   :  { %v4124_v7 = vpop.eup %4123 }
0x1bee   :  { %v1952_v8 = vsel %vm261_vm3, %v4124_v7, 0.0  ;;  %v4126_v19 = vpop.eup %4125 }
0x1bef   :  { %1953 = vadd.xlane.f32.xlu0 %v1952_v8  ;;  %v1946_v24 = vsel %vm261_vm3, %v4126_v19, 0.0 }
0x1bf1   :  { %v4856_v11 = vpop.eup %4127 }
0x1bf2   :  { %v1961_v17 = vsel %vm261_vm3, %v4856_v11, 0.0  ;;  %v4130_v18 = vpop.eup %4129 }
0x1bf3   :  { %1962 = vadd.xlane.f32.xlu1 %v1961_v17  ;;  %1947 = vadd.xlane.f32.xlu0 %v1946_v24  ;;  %v1955_v21 = vsel %vm261_vm3, %v4130_v18, 0.0 }
0x1bf6   :  { %v4132_v20 = vpop.eup %4131 }
0x1bf7   :  { %v1964_v23 = vsel %vm261_vm3, %v4132_v20, 0.0  ;;  %v4134_v25 = vpop.eup %4133  ;;  %1956 = vadd.xlane.f32.xlu1 %v1955_v21 }
0x1bf8   :  { %1965 = vadd.xlane.f32.xlu0 %v1964_v23  ;;  %v1958_v26 = vsel %vm261_vm3, %v4134_v25, 0.0 }
0x1bfc   :  { %1959 = vadd.xlane.f32.xlu0 %v1958_v26 }
0x1c08   :  { %1989 = vrot.lane.b32.xlu1 %v4769_v54, %s4229_s25 }
0x1c0c   :  { %1987 = vrot.lane.b32.xlu1 %v4751_v53, %s4229_s25 }
0x1c12   :  { %1991 = vrot.lane.b32.xlu0 %v4761_v55, %s4229_s25 }
0x1c6e   :  { %v1951_v29 = vpop.xlane.xlu1 %1950 }
0x1c72   :  { %v1945_v42 = vpop.xlane.xlu1 %1944 }
0x1c73   :  { %4135 = vrcp.f32 %v1945_v42 }
0x1c78   :  { %v1954_v30 = vpop.xlane.xlu0 %1953 }
0x1c7c   :  { %v1963_v33 = vpop.xlane.xlu1 %1962  ;;  %v1948_v35 = vpop.xlane.xlu0 %1947 }
0x1c7d   :  { %4137 = vrcp.f32 %v1948_v35 }
0x1c7e   :  { %4139 = vrcp.f32 %v1954_v30 }
0x1c7f   :  { %4141 = vrcp.f32 %v1951_v29 }
0x1c80   :  { %v1957_v37 = vpop.xlane.xlu1 %1956  ;;  %v4136_v40 = vpop.eup %4135 }
0x1c81   :  { %v1966_v38 = vpop.xlane.xlu0 %1965  ;;  %4143 = vrcp.f32 %v1957_v37  ;;  %v1975_v48 = vmul.f32 %v4136_v40, %v4122_v16 }
0x1c84   :  { %v1990_v54 = vpop.permute.xlu1 %1989 }
0x1c85   :  { %v1960_v39 = vpop.xlane.xlu0 %1959 }
0x1c86   :  { %4145 = vrcp.f32 %v1960_v39  ;;  %v3395_v39 = vld [vmem:[%s5183_s4 + $0x11] ss:$0 sm:$0xff] }
0x1c87   :  { %4147 = vrcp.f32 %v1966_v38 }
0x1c88   :  { %4149 = vrcp.f32 %v1963_v33  ;;  %v1988_v50 = vpop.permute.xlu1 %1987 }
0x1c89   :  { %v1992_v53 = vpop.permute.xlu0 %1991 }
0x1c8a   :  { %3760 = vmatprep.subr.bf16.mxu0 %v1992_v53  ;;  %v4138_v55 = vpop.eup %4137 }
0x1c8b   :  { %3761 = vmatpush3.bf16.msra.mxu0 %v1992_v53  ;;  %v4140_v45 = vpop.eup %4139  ;;  %v1976_v31 = vmul.f32 %v4138_v55, %v4126_v19 }
0x1c8c   :  { %3762 = vmatprep.subr.bf16.mxu0 %v1990_v54  ;;  %v4142_v49 = vpop.eup %4141  ;;  %v1978_v51 = vmul.f32 %v4140_v45, %v4124_v7 }
0x1c8d   :  { %v1983_v32 = vpack.c.bf16 %v1976_v31, %v1975_v48  ;;  %v1977_v52 = vmul.f32 %v4142_v49, %v4850_v0 }
0x1c8e   :  { %v4144_v43 = vpop.eup %4143 }
0x1c8f   :  { %3763 = vmatpush3.bf16.msra.mxu0 %v1990_v54  ;;  %3766 = vmatprep.mubr.msk.bf16.mxu0 %vm261_vm3, %v1983_v32  ;;  %v1984_v59 = vpack.c.bf16 %v1978_v51, %v1977_v52  ;;  %v1979_v57 = vmul.f32 %v4144_v43, %v4130_v18 }
0x1c90   :  { %3764 = vmatprep.subr.bf16.mxu0 %v1988_v50 }
0x1c93   :  { %v4146_v58 = vpop.eup %4145  ;;  %3765 = vmatpush3.bf16.msra.mxu0 %v1988_v50 }
0x1c94   :  { %v1980_v60 = vmul.f32 %v4146_v58, %v4134_v25  ;;  %3774 = vmatprep.subr.bf16.mxu0 %v4223_v14  ;;  %v4148_v61 = vpop.eup %4147 }
0x1c95   :  { %v4150_v27 = vpop.eup %4149  ;;  %v1982_v56 = vmul.f32 %v4148_v61, %v4132_v20 }
0x1c96   :  { %3767 = vmatmul.mubr.msk.bf16.vlgmr.msra.gmra.mxu0 %vm261_vm3, %v1984_v59  ;;  %v1985_v41 = vpack.c.bf16 %v1980_v60, %v1979_v57  ;;  %v1981_v62 = vmul.f32 %v4150_v27, %v4856_v11  ;;  %v4000_v27 = vld [vmem:[%s5182_s3 + $0xc0] sm:$0xff]  }
0x1c97   :  { %3775 = vmatpush3.bf16.msra.mxu0 %v3997_v63 }
0x1c98   :  { %3770 = vmatprep.mubr.msk.bf16.mxu0 %vm261_vm3, %v1985_v41  ;;  %v1986_v28 = vpack.c.bf16 %v1982_v56, %v1981_v62  ;;  %3776 = vmatprep.subr.bf16.mxu0 %v4223_v14 }
0x1c9b   :  { %3777 = vmatpush3.bf16.msra.mxu0 %v3998_v2 }
0x1c9c   :  { %3782 = vmatprep.subr.bf16.mxu0 %v4223_v14 }
0x1c9e   :  { %3771 = vmatmul.mubr.msk.bf16.gmra.mxu0 %vm261_vm3, %v1986_v28 }
0x1c9f   :  { %3778 = vmatprep.mubr.msk.bf16.mxu0 %vm4224_vm1, %v4223_v14 }
0x1d56   :  { %v3768_v0 = vpop.f32.mrf.mxu0 }
0x1d58   :  { %v2045_v1 = vpop.f32.mrf.mxu0 }
0x1d5a   :  { %v3769_v13 = vpop.f32.mrf.mxu0 }
0x1d5b   :  { %v3942_v3 = vpack.i.bf16 %v3769_v13, %v3768_v0 }
0x1d5c   :  { %v2048_v16 = vpop.f32.mrf.mxu0 }
0x1d5d   :  { %3943 = vrot.lane.b32.xlu1 %v3942_v3, %s4230_s30  ;;  %v3399_v3 = vld [vmem:[%s5183_s4 + $0x12] ss:$0 sm:$0xff] }
0x1d5e   :  { %v3772_v9 = vpop.f32.mrf.mxu0 }
0x1d60   :  { %v2061_v6 = vpop.f32.mrf.mxu0 }
0x1d62   :  { %v3773_v15 = vpop.f32.mrf.mxu0 }
0x1d63   :  { %v3952_v7 = vpack.i.bf16 %v3773_v15, %v3772_v9  ;;  %v3400_v15 = vld [vmem:[%s5183_s4 + $0x13] ss:$0 sm:$0xff] }
0x1d64   :  { %v2064_v8 = vpop.f32.mrf.mxu0 }
0x1d65   :  { %v3947_v19 = vpack.i.bf16 %v2064_v8, %v2061_v6  ;;  %3953 = vrot.lane.b32.xlu1 %v3952_v7, %s4231_s10 }
0x1d67   :  { %3948 = vrot.lane.b32.xlu0 %v3947_v19, %s4232_s11 }
0x1dcf   :  { %v3944_v11 = vpop.permute.xlu1 %3943 }
0x1dd0   :  { %v3946_v17 = vunpack.i.h.bf16 %v3944_v11  ;;  %v3945_v24 = vunpack.i.l.bf16 %v3944_v11 }
0x1dd2   :  { %v2100_v25 = vsel %vm155_vm2, %v2045_v1, %v3945_v24  ;;  %v2101_v26 = vsel %vm155_vm2, %v2048_v16, %v3946_v17  ;;  %v4001_v17 = vld [vmem:[%s5182_s3 + $0xe8] sm:$0xff]   ;;  %v4002_v24 = vld [vmem:[%s5182_s3 + $0xe0] sm:$0xff]  }
0x1dd3   :  { %3791 = vmatpush3.bf16.msra.mxu1 %v4001_v17 }
0x1dd4   :  { %3792 = vmatprep.subr.bf16.mxu1 %v4223_v14 }
0x1dd7   :  { %v3954_v18 = vpop.permute.xlu1 %3953  ;;  %3793 = vmatpush3.bf16.msra.mxu1 %v4002_v24 }
0x1dd8   :  { %v3956_v29 = vunpack.i.h.bf16 %v3954_v18  ;;  %v3955_v42 = vunpack.i.l.bf16 %v3954_v18  ;;  %3794 = vmatprep.subr.bf16.mxu1 %v4223_v14  ;;  %v4003_v18 = vld [vmem:[%s5182_s3 + $0xd8] sm:$0xff]  }
0x1dd9   :  { %v3949_v20 = vpop.permute.xlu0 %3948 }
0x1dda   :  { %v3951_v21 = vunpack.i.h.bf16 %v3949_v20  ;;  %v3950_v23 = vunpack.i.l.bf16 %v3949_v20  ;;  %v4004_v20 = vld [vmem:[%s5182_s3 + $0xd0] sm:$0xff]  }
0x1ddb   :  { %3795 = vmatpush3.bf16.msra.mxu1 %v4003_v18  ;;  %v3412_v18 = vld [vmem:[%s5183_s4 + $0x17] ss:$0 sm:$0xff] }
0x1ddc   :  { %v2103_v30 = vsel %vm469_vm4, %v2101_v26, %v3951_v21  ;;  %v2102_v33 = vsel %vm469_vm4, %v2100_v25, %v3950_v23  ;;  %3796 = vmatprep.subr.bf16.mxu1 %v4223_v14  ;;  %v3401_v21 = vld [vmem:[%s5183_s4 + $0x14] ss:$0 sm:$0xff] }
0x1ddd   :  { %v2105_v35 = vsel %vm472_vm5, %v2103_v30, %v3956_v29  ;;  %v2104_v37 = vsel %vm472_vm5, %v2102_v33, %v3955_v42 }
0x1dde   :  { %v2111_v38 = vpack.c.bf16 %v2105_v35, %v2104_v37 }
0x1ddf   :  { %3797 = vmatpush3.bf16.msra.mxu1 %v4004_v20 }
0x1de0   :  { %3779 = vmatmul.mubr.msk.bf16.vlgmr.msra.gmra.mxu0 %vm33_vm0, %v2111_v38 }
0x1de1   :  { %3786 = vmatprep.mubr.msk.bf16.mxu0 %vm4224_vm1, %v4223_v14 }
0x1ea0   :  { %v2165_v54 = vpop.f32.mrf.mxu0 }
0x1ea1   :  { %v2166_v53 = vadd.f32 %v3395_v39, %v2165_v54 }
0x1ea2   :  { %v3780_v40 = vpop.f32.mrf.mxu0 }
0x1ea3   :  { %v2172_v55 = vadd.f32 %v2166_v53, %v4741_v46 }
0x1ea4   :  { %v2168_v45 = vpop.f32.mrf.mxu0 }
0x1ea5   :  { %v2169_v48 = vadd.f32 %v3395_v39, %v2168_v45  ;;  %v2176_v31 = vsel %vm33_vm0, %v2172_v55, 0.0 }
0x1ea6   :  { %2177 = vadd.xlane.f32.xlu0 %v2176_v31  ;;  %v3781_v49 = vpop.f32.mrf.mxu0  ;;  %v3405_v31 = vld [vmem:[%s5183_s4 + $0x15] ss:$0 sm:$0xff] }
0x1ea7   :  { %v2173_v50 = vadd.f32 %v2169_v48, %v4743_v47  ;;  %v3999_v47 = vld [vmem:[%s5182_s3 + $0xc8] sm:$0xff]  }
0x1ea8   :  { %3783 = vmatpush3.bf16.msra.mxu0 %v3999_v47 }
0x1ea9   :  { %v2179_v32 = vsel %vm33_vm0, %v2173_v50, 0.0  ;;  %3784 = vmatprep.subr.bf16.mxu0 %v4223_v14 }
0x1eaa   :  { %2180 = vadd.xlane.f32.xlu1 %v2179_v32 }
0x1eac   :  { %3785 = vmatpush3.bf16.msra.mxu0 %v4000_v27 }
0x1ead   :  { %3802 = vmatprep.subr.bf16.mxu0 %v4223_v14 }
0x1f2f   :  { %v2178_v51 = vpop.xlane.xlu0 %2177 }
0x1f30   :  { %v2182_v43 = vmul.f32 0.03125, %v2178_v51 }
0x1f32   :  { %v2184_v52 = vsub.f32 %v2172_v55, %v2182_v43 }
0x1f33   :  { %v2181_v58 = vpop.xlane.xlu1 %2180 }
0x1f34   :  { %v2183_v59 = vmul.f32 0.03125, %v2181_v58  ;;  %v2186_v57 = vmul.f32 %v2184_v52, %v2184_v52 }
0x1f36   :  { %v2185_v60 = vsub.f32 %v2173_v50, %v2183_v59  ;;  %v2188_v46 = vsel %vm33_vm0, %v2186_v57, 0.0 }
0x1f37   :  { %2189 = vadd.xlane.f32.xlu0 %v2188_v46 }
0x1f38   :  { %v2187_v61 = vmul.f32 %v2185_v60, %v2185_v60 }
0x1f3a   :  { %v2191_v41 = vsel %vm33_vm0, %v2187_v61, 0.0 }
0x1f3b   :  { %2192 = vadd.xlane.f32.xlu0 %v2191_v41 }
0x1fc0   :  { %v2190_v56 = vpop.xlane.xlu0 %2189 }
0x1fc1   :  { %v2194_v62 = vmul.f32 0.03125, %v2190_v56 }
0x1fc3   :  { %v2196_v28 = vadd.f32 1e-12, %v2194_v62 }
0x1fc4   :  { %v2193_v63 = vpop.xlane.xlu0 %2192 }
0x1fc5   :  { %4151 = vrsqrt.f32 %v2196_v28  ;;  %v2195_v0 = vmul.f32 0.03125, %v2193_v63 }
0x1fc7   :  { %v2197_v1 = vadd.f32 1e-12, %v2195_v0 }
0x1fc9   :  { %4153 = vrsqrt.f32 %v2197_v1  ;;  %v4005_v1 = vld [vmem:[%s5182_s3 + $0xf8] sm:$0xff]  }
0x1fd2   :  { %v4152_v2 = vpop.eup %4151 }
0x1fd3   :  { %v2200_v13 = vmul.f32 %v4152_v2, %v2184_v52  ;;  %v4006_v2 = vld [vmem:[%s5182_s3 + $0xf0] sm:$0xff]  }
0x1fd5   :  { %v2206_v6 = vmul.f32 %v3399_v3, %v2200_v13 }
0x1fd6   :  { %v4154_v16 = vpop.eup %4153 }
0x1fd7   :  { %v2201_v9 = vmul.f32 %v4154_v16, %v2185_v60  ;;  %v2212_v8 = vadd.f32 %v3400_v15, %v2206_v6 }
0x1fd9   :  { %v2207_v7 = vmul.f32 %v3399_v3, %v2201_v9 }
0x1fdb   :  { %v2213_v19 = vadd.f32 %v3400_v15, %v2207_v7 }
0x1fdd   :  { %v2219_v11 = vpack.c.bf16 %v2213_v19, %v2212_v8 }
0x1fdf   :  { %3787 = vmatmul.mubr.msk.bf16.vlgmr.msra.gmra.mxu0 %vm33_vm0, %v2219_v11 }
0x1fe0   :  { %3806 = vmatprep.mubr.msk.bf16.mxu0 %vm4224_vm1, %v4223_v14  ;;  %3803 = vmatpush3.bf16.msra.mxu0 %v4005_v1 }
0x1fe1   :  { %3804 = vmatprep.subr.bf16.mxu0 %v4223_v14 }
0x1fe4   :  { %3805 = vmatpush3.bf16.msra.mxu0 %v4006_v2 }
0x209f   :  { %v2273_v23 = vpop.f32.mrf.mxu0 }
0x20a0   :  { %v2274_v25 = vadd.f32 %v3401_v21, %v2273_v23 }
0x20a1   :  { %v3788_v26 = vpop.f32.mrf.mxu0 }
0x20a2   :  { %v2282_v29 = vmul.f32 0.70710677, %v2274_v25  ;;  %v2280_v54 = vmul.f32 0.5, %v2274_v25 }
0x20a3   :  { %v2276_v42 = vpop.f32.mrf.mxu0 }
0x20a4   :  { %4155 = verf.f32 %v2282_v29  ;;  %v2277_v30 = vadd.f32 %v3401_v21, %v2276_v42  ;;  %v3413_v29 = vld [vmem:[%s5183_s4 + $0x18] ss:$0 sm:$0xff] }
0x20a5   :  { %v3789_v33 = vpop.f32.mrf.mxu0 }
0x20a6   :  { %v2283_v35 = vmul.f32 0.70710677, %v2277_v30  ;;  %v2281_v53 = vmul.f32 0.5, %v2277_v30 }
0x20a8   :  { %4157 = verf.f32 %v2283_v35 }
0x20b1   :  { %v4156_v37 = vpop.eup %4155 }
0x20b2   :  { %v2286_v38 = vadd.f32 1.0, %v4156_v37 }
0x20b4   :  { %v2288_v55 = vmul.f32 %v2286_v38, %v2280_v54 }
0x20b5   :  { %v4158_v39 = vpop.eup %4157 }
0x20b6   :  { %v2287_v40 = vadd.f32 1.0, %v4158_v39 }
0x20b8   :  { %v2289_v45 = vmul.f32 %v2287_v40, %v2281_v53 }
0x20ba   :  { %v2299_v48 = vpack.c.bf16 %v2289_v45, %v2288_v55 }
0x20bc   :  { %3799 = vmatmul.mubr.msk.bf16.vlgmr.msra.gmra.mxu1 %vm261_vm3, %v2299_v48 }
0x217c   :  { %v2365_v49 = vpop.f32.mrf.mxu1 }
0x217d   :  { %v2366_v50 = vadd.f32 %v3405_v31, %v2365_v49 }
0x217e   :  { %v3800_v32 = vpop.f32.mrf.mxu1 }
0x217f   :  { %v2372_v51 = vadd.f32 %v2366_v50, %v2212_v8 }
0x2180   :  { %v2368_v43 = vpop.f32.mrf.mxu1 }
0x2181   :  { %v2369_v52 = vadd.f32 %v3405_v31, %v2368_v43  ;;  %v2376_v58 = vsel %vm33_vm0, %v2372_v51, 0.0 }
0x2182   :  { %2377 = vadd.xlane.f32.xlu0 %v2376_v58  ;;  %v3801_v59 = vpop.f32.mrf.mxu1 }
0x2183   :  { %v2373_v57 = vadd.f32 %v2369_v52, %v2213_v19  ;;  %v3411_v19 = vld [vmem:[%s5183_s4 + $0x16] ss:$0 sm:$0xff] }
0x2185   :  { %v2379_v60 = vsel %vm33_vm0, %v2373_v57, 0.0 }
0x2186   :  { %2380 = vadd.xlane.f32.xlu1 %v2379_v60 }
0x220b   :  { %v2378_v46 = vpop.xlane.xlu0 %2377 }
0x220c   :  { %v2382_v61 = vmul.f32 0.03125, %v2378_v46 }
0x220e   :  { %v2384_v41 = vsub.f32 %v2372_v51, %v2382_v61 }
0x220f   :  { %v2381_v47 = vpop.xlane.xlu1 %2380 }
0x2210   :  { %v2383_v27 = vmul.f32 0.03125, %v2381_v47  ;;  %v2386_v56 = vmul.f32 %v2384_v41, %v2384_v41 }
0x2212   :  { %v2385_v62 = vsub.f32 %v2373_v57, %v2383_v27  ;;  %v2388_v28 = vsel %vm33_vm0, %v2386_v56, 0.0 }
0x2213   :  { %2389 = vadd.xlane.f32.xlu0 %v2388_v28 }
0x2214   :  { %v2387_v63 = vmul.f32 %v2385_v62, %v2385_v62 }
0x2216   :  { %v2391_v0 = vsel %vm33_vm0, %v2387_v63, 0.0 }
0x2217   :  { %2392 = vadd.xlane.f32.xlu1 %v2391_v0 }
0x229c   :  { %v2390_v13 = vpop.xlane.xlu0 %2389 }
0x229d   :  { %v2394_v3 = vmul.f32 0.03125, %v2390_v13 }
0x229f   :  { %v2396_v16 = vadd.f32 1e-12, %v2394_v3 }
0x22a0   :  { %v2393_v9 = vpop.xlane.xlu1 %2392 }
0x22a1   :  { %4159 = vrsqrt.f32 %v2396_v16  ;;  %v2395_v6 = vmul.f32 0.03125, %v2393_v9 }
0x22a3   :  { %v2397_v15 = vadd.f32 1e-12, %v2395_v6 }
0x22a5   :  { %4161 = vrsqrt.f32 %v2397_v15 }
0x22ae   :  { %v4160_v7 = vpop.eup %4159 }
0x22af   :  { %v2400_v8 = vmul.f32 %v4160_v7, %v2384_v41 }
0x22b1   :  { %v2406_v24 = vmul.f32 %v3411_v19, %v2400_v8 }
0x22b2   :  { %v4162_v11 = vpop.eup %4161 }
0x22b3   :  { %v2401_v17 = vmul.f32 %v4162_v11, %v2385_v62  ;;  %v4964_v21 = vadd.f32 %v3412_v18, %v2406_v24 }
0x22b5   :  { %v2407_v20 = vmul.f32 %v3411_v19, %v2401_v17 }
0x22b7   :  { %v4966_v23 = vadd.f32 %v3412_v18, %v2407_v20 }
0x22b9   :  { %v2419_v25 = vpack.c.bf16 %v4966_v23, %v4964_v21 }
0x22bb   :  { %3807 = vmatmul.mubr.msk.bf16.vlgmr.msra.gmra.mxu0 %vm33_vm0, %v2419_v25 }
0x237b   :  { %v2473_v26 = vpop.f32.mrf.mxu0 }
0x237c   :  { %v2474_v33 = vadd.f32 %v3413_v29, %v2473_v26 }
0x237d   :  { %v3808_v42 = vpop.f32.mrf.mxu0 }
0x237f   :  { %v2476_v30 = vpop.f32.mrf.mxu0 }
0x2380   :  { %v2477_v35 = vadd.f32 %v3413_v29, %v2476_v30 }
0x2381   :  { %v3809_v37 = vpop.f32.mrf.mxu0 }
0x2382   :  { %v4974_v38 = vpack.c.bf16 %v2477_v35, %v2474_v33 }
0x2384   :  { %2484 = vrot.lane.b32.xlu1 %v4974_v38, %s4225_s6  ;;  %2486 = vrot.lane.b32.xlu0 %v4974_v38, %s4226_s7 }
0x2385   :  { %3818 = vmatprep.mubr.msk.bf16.mxu1 %vm155_vm2, %v4974_v38 }
0x2388   :  { %2482 = vrot.lane.b32.xlu1 %v4974_v38, %s4227_s8 }
0x23f6   :  { %v4984_v39 = vpop.permute.xlu1 %2484  ;;  %v4986_v54 = vpop.permute.xlu0 %2486 }
0x23f7   :  { %2492 = vrot.lane.b32.xlu0 %v4984_v39, %s4228_s9  ;;  %2494 = vrot.lane.b32.xlu1 %v4986_v54, %s4228_s9 }
0x23fa   :  { %v4992_v53 = vpop.permute.xlu1 %2482 }
0x23fb   :  { %2488 = vrot.lane.b32.xlu0 %v4974_v38, %s4228_s9  ;;  %2490 = vrot.lane.b32.xlu1 %v4992_v53, %s4228_s9 }
0x2469   :  { %v2495_v40 = vpop.permute.xlu1 %2494  ;;  %v2493_v45 = vpop.permute.xlu0 %2492 }
0x246a   :  { %v2518_v55 = vsel %vm155_vm2, %v2495_v40, 0  ;;  %3898 = vmatprep.subr.msk.bf16.mxu1 %vm155_vm2, %v2495_v40  ;;  %v2515_v48 = vsel %vm155_vm2, %v2493_v45, 0 }
0x246b   :  { %3811 = vmatpush3.bf16.xpose.msra.mxu1 %v2518_v55 }
0x246c   :  { %3899 = vmatprep.subr.msk.bf16.mxu1 %vm155_vm2, %v2493_v45 }
0x246d   :  { %v2491_v31 = vpop.permute.xlu1 %2490  ;;  %v2489_v50 = vpop.permute.xlu0 %2488 }
0x246e   :  { %v2512_v49 = vsel %vm155_vm2, %v2491_v31, 0  ;;  %v2509_v32 = vsel %vm155_vm2, %v2489_v50, 0 }
0x2473   :  { %3813 = vmatpush3.bf16.xpose.msra.mxu1 %v2515_v48 }
0x2474   :  { %3900 = vmatprep.subr.msk.bf16.mxu1 %vm155_vm2, %v2491_v31 }
0x247b   :  { %3815 = vmatpush3.bf16.xpose.msra.mxu1 %v2512_v49 }
0x247c   :  { %3901 = vmatprep.subr.msk.bf16.mxu1 %vm155_vm2, %v2489_v50 }
0x2483   :  { %3817 = vmatpush3.bf16.xpose.msra.mxu1 %v2509_v32 }
0x2484   :  { %3858 = vmatprep.subr.bf16.mxu1 %v4223_v14 }
0x248a   :  { %3819 = vmatmul.mubr.msk.bf16.vlgmr.msra.gmra.mxu1 %vm155_vm2, %v4992_v53 }
0x248b   :  { %3822 = vmatprep.mubr.msk.bf16.mxu1 %vm155_vm2, %v4984_v39 }
0x2492   :  { %3823 = vmatmul.mubr.msk.bf16.gmra.mxu1 %vm155_vm2, %v4986_v54 }
0x2493   :  { %3866 = vmatprep.mubr.msk.bf16.mxu1 %vm4224_vm1, %v4223_v14 }
0x254a   :  { %v3820_v51 = vpop.f32.mrf.mxu1 }
0x254b   :  { %v2587_v43 = vmul.f32 0.35355338, %v3820_v51 }
0x254c   :  { %v2554_v52 = vpop.f32.mrf.mxu1 }
0x254d   :  { %v2595_v58 = vadd.f32 %v4795_v4, %v2587_v43  ;;  %v2585_v59 = vmul.f32 0.35355338, %v2554_v52 }
0x254e   :  { %v3821_v57 = vpop.f32.mrf.mxu1 }
0x254f   :  { %v2593_v60 = vadd.f32 %v4802_v5, %v2585_v59  ;;  %v2607_v46 = vsel %vm261_vm3, %v2595_v58, -inf  ;;  %v2588_v61 = vmul.f32 0.35355338, %v3821_v57 }
0x2550   :  { %2608 = vmax.xlane.f32.xlu0 %v2607_v46  ;;  %v2557_v41 = vpop.f32.mrf.mxu1 }
0x2551   :  { %v2586_v47 = vmul.f32 0.35355338, %v2557_v41  ;;  %v2601_v27 = vsel %vm261_vm3, %v2593_v60, -inf  ;;  %v2596_v28 = vadd.f32 %v4815_v12, %v2588_v61 }
0x2552   :  { %2602 = vmax.xlane.f32.xlu1 %v2601_v27  ;;  %v3824_v56 = vpop.f32.mrf.mxu1 }
0x2553   :  { %v2594_v62 = vadd.f32 %v4809_v10, %v2586_v47  ;;  %v2591_v4 = vmul.f32 0.35355338, %v3824_v56  ;;  %v2610_v3 = vsel %vm261_vm3, %v2596_v28, -inf }
0x2554   :  { %v2570_v63 = vpop.f32.mrf.mxu1 }
0x2555   :  { %v2589_v0 = vmul.f32 0.35355338, %v2570_v63  ;;  %v2604_v1 = vsel %vm261_vm3, %v2594_v62, -inf  ;;  %v2599_v16 = vadd.f32 %v4829_v44, %v2591_v4 }
0x2556   :  { %2605 = vmax.xlane.f32.xlu0 %v2604_v1  ;;  %v3825_v5 = vpop.f32.mrf.mxu1 }
0x2557   :  { %v2597_v2 = vadd.f32 %v4822_v22, %v2589_v0  ;;  %v2592_v9 = vmul.f32 0.35355338, %v3825_v5  ;;  %v2619_v7 = vsel %vm261_vm3, %v2599_v16, -inf }
0x2558   :  { %v2573_v13 = vpop.f32.mrf.mxu1 }
0x2559   :  { %v2590_v6 = vmul.f32 0.35355338, %v2573_v13  ;;  %v2613_v10 = vsel %vm261_vm3, %v2597_v2, -inf  ;;  %v2600_v15 = vadd.f32 %v4842_v36, %v2592_v9 }
0x255a   :  { %2611 = vmax.xlane.f32.xlu0 %v2610_v3  ;;  %2614 = vmax.xlane.f32.xlu1 %v2613_v10 }
0x255b   :  { %v2598_v12 = vadd.f32 %v4836_v34, %v2590_v6  ;;  %v2622_v22 = vsel %vm261_vm3, %v2600_v15, -inf }
0x255d   :  { %v2616_v8 = vsel %vm261_vm3, %v2598_v12, -inf }
0x255e   :  { %2620 = vmax.xlane.f32.xlu1 %v2619_v7  ;;  %2617 = vmax.xlane.f32.xlu0 %v2616_v8 }
0x2562   :  { %2623 = vmax.xlane.f32.xlu0 %v2622_v22 }
0x256f   :  { %2699 = vrot.lane.b32.xlu1 %v4986_v54, %s4229_s25 }
0x25d9   :  { %v2609_v44 = vpop.xlane.xlu0 %2608 }
0x25da   :  { %v2627_v19 = vsub.f32 %v2595_v58, %v2609_v44 }
0x25db   :  { %v2603_v11 = vpop.xlane.xlu1 %2602 }
0x25dc   :  { %v2637_v17 = vmul.f32 1.442695, %v2627_v19  ;;  %v2625_v24 = vsub.f32 %v2593_v60, %v2603_v11 }
0x25de   :  { %4163 = vpow2.f32 %v2637_v17  ;;  %v2633_v34 = vmul.f32 1.442695, %v2625_v24 }
0x25df   :  { %v2606_v36 = vpop.xlane.xlu0 %2605 }
0x25e0   :  { %4165 = vpow2.f32 %v2633_v34  ;;  %v2626_v18 = vsub.f32 %v2594_v62, %v2606_v36 }
0x25e2   :  { %v2635_v29 = vmul.f32 1.442695, %v2626_v18 }
0x25e3   :  { %v2612_v20 = vpop.xlane.xlu0 %2611  ;;  %v2615_v25 = vpop.xlane.xlu1 %2614 }
0x25e4   :  { %v2628_v26 = vsub.f32 %v2596_v28, %v2612_v20  ;;  %v2629_v30 = vsub.f32 %v2597_v2, %v2615_v25 }
0x25e6   :  { %v2639_v42 = vmul.f32 1.442695, %v2628_v26  ;;  %v2641_v54 = vmul.f32 1.442695, %v2629_v30 }
0x25e7   :  { %v2621_v33 = vpop.xlane.xlu1 %2620  ;;  %v2618_v35 = vpop.xlane.xlu0 %2617 }
0x25e8   :  { %4167 = vpow2.f32 %v2639_v42  ;;  %v2631_v37 = vsub.f32 %v2599_v16, %v2621_v33  ;;  %v2630_v55 = vsub.f32 %v2598_v12, %v2618_v35  ;;  %v4008_v33 = vld [vmem:[%s5182_s3 + $0x100] sm:$0xff]  }
0x25e9   :  { %4169 = vpow2.f32 %v2635_v29  ;;  %v4007_v29 = vld [vmem:[%s5182_s3 + $0x108] sm:$0xff]  }
0x25ea   :  { %v2645_v40 = vmul.f32 1.442695, %v2631_v37  ;;  %v2643_v51 = vmul.f32 1.442695, %v2630_v55 }
0x25eb   :  { %v5033_v45 = vpop.eup %4163  ;;  %v2700_v48 = vpop.permute.xlu1 %2699 }
0x25ec   :  { %v2624_v31 = vpop.xlane.xlu0 %2623  ;;  %4171 = vpow2.f32 %v2645_v40  ;;  %3826 = vmatprep.subr.bf16.mxu0 %v2700_v48  ;;  %v2655_v50 = vsel %vm261_vm3, %v5033_v45, 0.0 }
0x25ed   :  { %v2632_v49 = vsub.f32 %v2600_v15, %v2624_v31  ;;  %v4166_v32 = vpop.eup %4165  ;;  %2656 = vadd.xlane.f32.xlu1 %v2655_v50  ;;  %3827 = vmatpush3.bf16.msra.mxu0 %v2700_v48  ;;  %4173 = vpow2.f32 %v2641_v54 }
0x25ee   :  { %v2649_v52 = vsel %vm261_vm3, %v4166_v32, 0.0 }
0x25ef   :  { %v2647_v43 = vmul.f32 1.442695, %v2632_v49 }
0x25f1   :  { %4175 = vpow2.f32 %v2647_v43  ;;  %2650 = vadd.xlane.f32.xlu1 %v2649_v52 }
0x25f2   :  { %4177 = vpow2.f32 %v2643_v51 }
0x25f5   :  { %v4168_v58 = vpop.eup %4167 }
0x25f6   :  { %v2658_v59 = vsel %vm261_vm3, %v4168_v58, 0.0  ;;  %v4170_v57 = vpop.eup %4169 }
0x25f7   :  { %2659 = vadd.xlane.f32.xlu0 %v2658_v59  ;;  %v2652_v61 = vsel %vm261_vm3, %v4170_v57, 0.0 }
0x25f9   :  { %v5039_v60 = vpop.eup %4171 }
0x25fa   :  { %v2667_v46 = vsel %vm261_vm3, %v5039_v60, 0.0  ;;  %v4174_v41 = vpop.eup %4173 }
0x25fb   :  { %2668 = vadd.xlane.f32.xlu1 %v2667_v46  ;;  %2653 = vadd.xlane.f32.xlu0 %v2652_v61  ;;  %v2661_v27 = vsel %vm261_vm3, %v4174_v41, 0.0 }
0x25fe   :  { %v4176_v47 = vpop.eup %4175 }
0x25ff   :  { %v2670_v56 = vsel %vm261_vm3, %v4176_v47, 0.0  ;;  %v4178_v62 = vpop.eup %4177  ;;  %2662 = vadd.xlane.f32.xlu1 %v2661_v27 }
0x2600   :  { %2671 = vadd.xlane.f32.xlu0 %v2670_v56  ;;  %v2664_v28 = vsel %vm261_vm3, %v4178_v62, 0.0 }
0x2604   :  { %2665 = vadd.xlane.f32.xlu0 %v2664_v28  ;;  %v3425_v28 = vld [vmem:[%s5183_s4 + $0x19] ss:$0 sm:$0xff] }
0x2610   :  { %2695 = vrot.lane.b32.xlu1 %v4992_v53, %s4229_s25 }
0x2614   :  { %2693 = vrot.lane.b32.xlu1 %v4974_v38, %s4229_s25 }
0x261a   :  { %2697 = vrot.lane.b32.xlu0 %v4984_v39, %s4229_s25 }
0x2676   :  { %v2657_v63 = vpop.xlane.xlu1 %2656 }
0x267a   :  { %v2651_v4 = vpop.xlane.xlu1 %2650 }
0x267b   :  { %4179 = vrcp.f32 %v2651_v4 }
0x2680   :  { %v2660_v0 = vpop.xlane.xlu0 %2659 }
0x2684   :  { %v2669_v1 = vpop.xlane.xlu1 %2668  ;;  %v2654_v5 = vpop.xlane.xlu0 %2653 }
0x2685   :  { %4181 = vrcp.f32 %v2654_v5 }
0x2686   :  { %4183 = vrcp.f32 %v2660_v0 }
0x2687   :  { %4185 = vrcp.f32 %v2657_v63 }
0x2688   :  { %v2663_v2 = vpop.xlane.xlu1 %2662  ;;  %v4180_v16 = vpop.eup %4179 }
0x2689   :  { %v2672_v13 = vpop.xlane.xlu0 %2671  ;;  %4187 = vrcp.f32 %v2663_v2  ;;  %v2681_v6 = vmul.f32 %v4180_v16, %v4166_v32 }
0x268c   :  { %v2696_v53 = vpop.permute.xlu1 %2695 }
0x268d   :  { %v2666_v3 = vpop.xlane.xlu0 %2665 }
0x268e   :  { %4189 = vrcp.f32 %v2666_v3 }
0x268f   :  { %4191 = vrcp.f32 %v2672_v13 }
0x2690   :  { %4193 = vrcp.f32 %v2669_v1  ;;  %v2694_v15 = vpop.permute.xlu1 %2693 }
0x2691   :  { %v2698_v38 = vpop.permute.xlu0 %2697 }
0x2692   :  { %3828 = vmatprep.subr.bf16.mxu0 %v2698_v38  ;;  %v4182_v39 = vpop.eup %4181 }
0x2693   :  { %3829 = vmatpush3.bf16.msra.mxu0 %v2698_v38  ;;  %v4184_v9 = vpop.eup %4183  ;;  %v2682_v10 = vmul.f32 %v4182_v39, %v4170_v57 }
0x2694   :  { %3830 = vmatprep.subr.bf16.mxu0 %v2696_v53  ;;  %v4186_v12 = vpop.eup %4185  ;;  %v2684_v8 = vmul.f32 %v4184_v9, %v4168_v58 }
0x2695   :  { %v2689_v7 = vpack.c.bf16 %v2682_v10, %v2681_v6  ;;  %v2683_v44 = vmul.f32 %v4186_v12, %v5033_v45 }
0x2696   :  { %v4188_v22 = vpop.eup %4187 }
0x2697   :  { %3831 = vmatpush3.bf16.msra.mxu0 %v2696_v53  ;;  %3834 = vmatprep.mubr.msk.bf16.mxu0 %vm261_vm3, %v2689_v7  ;;  %v2690_v11 = vpack.c.bf16 %v2684_v8, %v2683_v44  ;;  %v2685_v17 = vmul.f32 %v4188_v22, %v4174_v41  ;;  %v4010_v22 = vld [vmem:[%s5182_s3 + $0x110] sm:$0xff]  }
0x2698   :  { %3832 = vmatprep.subr.bf16.mxu0 %v2694_v15 }
0x269b   :  { %v4190_v19 = vpop.eup %4189  ;;  %3833 = vmatpush3.bf16.msra.mxu0 %v2694_v15 }
0x269c   :  { %v2686_v24 = vmul.f32 %v4190_v19, %v4178_v62  ;;  %3842 = vmatprep.subr.bf16.mxu0 %v4223_v14  ;;  %v4192_v34 = vpop.eup %4191 }
0x269d   :  { %v4194_v18 = vpop.eup %4193  ;;  %v2688_v20 = vmul.f32 %v4192_v34, %v4176_v47 }
0x269e   :  { %3835 = vmatmul.mubr.msk.bf16.vlgmr.msra.gmra.mxu0 %vm261_vm3, %v2690_v11  ;;  %v2691_v36 = vpack.c.bf16 %v2686_v24, %v2685_v17  ;;  %v2687_v25 = vmul.f32 %v4194_v18, %v5039_v60 }
0x269f   :  { %3843 = vmatpush3.bf16.msra.mxu0 %v4007_v29 }
0x26a0   :  { %3838 = vmatprep.mubr.msk.bf16.mxu0 %vm261_vm3, %v2691_v36  ;;  %v2692_v26 = vpack.c.bf16 %v2688_v20, %v2687_v25  ;;  %3844 = vmatprep.subr.bf16.mxu0 %v4223_v14  ;;  %v3429_v20 = vld [vmem:[%s5183_s4 + $0x1a] ss:$0 sm:$0xff] }
0x26a3   :  { %3845 = vmatpush3.bf16.msra.mxu0 %v4008_v33 }
0x26a4   :  { %3850 = vmatprep.subr.bf16.mxu0 %v4223_v14 }
0x26a6   :  { %3839 = vmatmul.mubr.msk.bf16.gmra.mxu0 %vm261_vm3, %v2692_v26 }
0x26a7   :  { %3846 = vmatprep.mubr.msk.bf16.mxu0 %vm4224_vm1, %v4223_v14 }
0x275e   :  { %v3836_v42 = vpop.f32.mrf.mxu0 }
0x2760   :  { %v2751_v30 = vpop.f32.mrf.mxu0 }
0x2762   :  { %v3837_v35 = vpop.f32.mrf.mxu0 }
0x2763   :  { %v3957_v37 = vpack.i.bf16 %v3837_v35, %v3836_v42  ;;  %v3430_v42 = vld [vmem:[%s5183_s4 + $0x1b] ss:$0 sm:$0xff] }
0x2764   :  { %v2754_v54 = vpop.f32.mrf.mxu0 }
0x2765   :  { %3958 = vrot.lane.b32.xlu1 %v3957_v37, %s4230_s30 }
0x2766   :  { %v3840_v40 = vpop.f32.mrf.mxu0 }
0x2768   :  { %v2767_v55 = vpop.f32.mrf.mxu0 }
0x276a   :  { %v3841_v45 = vpop.f32.mrf.mxu0 }
0x276b   :  { %v3967_v48 = vpack.i.bf16 %v3841_v45, %v3840_v40  ;;  %v4012_v40 = vld [vmem:[%s5182_s3 + $0x130] sm:$0xff]   ;;  %v4014_v45 = vld [vmem:[%s5182_s3 + $0x120] sm:$0xff]  }
0x276c   :  { %v2770_v31 = vpop.f32.mrf.mxu0 }
0x276d   :  { %v3962_v49 = vpack.i.bf16 %v2770_v31, %v2767_v55  ;;  %3968 = vrot.lane.b32.xlu1 %v3967_v48, %s4231_s10  ;;  %v4013_v55 = vld [vmem:[%s5182_s3 + $0x128] sm:$0xff]   ;;  %v3431_v48 = vld [vmem:[%s5183_s4 + $0x1c] ss:$0 sm:$0xff] }
0x276f   :  { %3963 = vrot.lane.b32.xlu0 %v3962_v49, %s4232_s11 }
0x27d7   :  { %v3959_v50 = vpop.permute.xlu1 %3958 }
0x27d8   :  { %v3961_v32 = vunpack.i.h.bf16 %v3959_v50  ;;  %v3960_v51 = vunpack.i.l.bf16 %v3959_v50 }
0x27da   :  { %v2806_v57 = vsel %vm155_vm2, %v2751_v30, %v3960_v51  ;;  %v2807_v60 = vsel %vm155_vm2, %v2754_v54, %v3961_v32  ;;  %v4011_v54 = vld [vmem:[%s5182_s3 + $0x138] sm:$0xff]  }
0x27db   :  { %3859 = vmatpush3.bf16.msra.mxu1 %v4011_v54 }
0x27dc   :  { %3860 = vmatprep.subr.bf16.mxu1 %v4223_v14 }
0x27df   :  { %v3969_v43 = vpop.permute.xlu1 %3968  ;;  %3861 = vmatpush3.bf16.msra.mxu1 %v4012_v40 }
0x27e0   :  { %v3971_v46 = vunpack.i.h.bf16 %v3969_v43  ;;  %v3970_v61 = vunpack.i.l.bf16 %v3969_v43  ;;  %3862 = vmatprep.subr.bf16.mxu1 %v4223_v14 }
0x27e1   :  { %v3964_v52 = vpop.permute.xlu0 %3963 }
0x27e2   :  { %v3966_v58 = vunpack.i.h.bf16 %v3964_v52  ;;  %v3965_v59 = vunpack.i.l.bf16 %v3964_v52 }
0x27e3   :  { %3863 = vmatpush3.bf16.msra.mxu1 %v4013_v55 }
0x27e4   :  { %v2809_v41 = vsel %vm469_vm4, %v2807_v60, %v3966_v58  ;;  %v2808_v47 = vsel %vm469_vm4, %v2806_v57, %v3965_v59  ;;  %3864 = vmatprep.subr.bf16.mxu1 %v4223_v14 }
0x27e5   :  { %v2811_v27 = vsel %vm472_vm5, %v2809_v41, %v3971_v46  ;;  %v2810_v56 = vsel %vm472_vm5, %v2808_v47, %v3970_v61 }
0x27e6   :  { %v2817_v62 = vpack.c.bf16 %v2811_v27, %v2810_v56 }
0x27e7   :  { %3865 = vmatpush3.bf16.msra.mxu1 %v4014_v45 }
0x27e8   :  { %3847 = vmatmul.mubr.msk.bf16.vlgmr.msra.gmra.mxu0 %vm33_vm0, %v2817_v62  ;;  %3878 = vmatprep.subr.bf16.mxu1 %v4223_v14  ;;  %v3435_v62 = vld [vmem:[%s5183_s4 + $0x1d] ss:$0 sm:$0xff] }
0x27e9   :  { %3854 = vmatprep.mubr.msk.bf16.mxu0 %vm4224_vm1, %v4223_v14 }
0x28a8   :  { %v2871_v63 = vpop.f32.mrf.mxu0 }
0x28a9   :  { %v2872_v4 = vadd.f32 %v3425_v28, %v2871_v63 }
0x28aa   :  { %v3848_v0 = vpop.f32.mrf.mxu0 }
0x28ab   :  { %v2878_v1 = vadd.f32 %v2872_v4, %v4964_v21 }
0x28ac   :  { %v2874_v5 = vpop.f32.mrf.mxu0 }
0x28ad   :  { %v2875_v2 = vadd.f32 %v3425_v28, %v2874_v5  ;;  %v2882_v13 = vsel %vm33_vm0, %v2878_v1, 0.0 }
0x28ae   :  { %2883 = vadd.xlane.f32.xlu0 %v2882_v13  ;;  %v3849_v3 = vpop.f32.mrf.mxu0 }
0x28af   :  { %v2879_v53 = vadd.f32 %v2875_v2, %v4966_v23  ;;  %v4009_v23 = vld [vmem:[%s5182_s3 + $0x118] sm:$0xff]  }
0x28b0   :  { %3851 = vmatpush3.bf16.msra.mxu0 %v4009_v23  ;;  %v4016_v23 = vld [vmem:[%s5182_s3 + $0x158] sm:$0xff]  }
0x28b1   :  { %v2885_v38 = vsel %vm33_vm0, %v2879_v53, 0.0  ;;  %3852 = vmatprep.subr.bf16.mxu0 %v4223_v14 }
0x28b2   :  { %2886 = vadd.xlane.f32.xlu1 %v2885_v38 }
0x28b4   :  { %3853 = vmatpush3.bf16.msra.mxu0 %v4010_v22 }
0x28b5   :  { %3870 = vmatprep.subr.bf16.mxu0 %v4223_v14 }
0x2937   :  { %v2884_v16 = vpop.xlane.xlu0 %2883 }
0x2938   :  { %v2888_v39 = vmul.f32 0.03125, %v2884_v16 }
0x293a   :  { %v2890_v9 = vsub.f32 %v2878_v1, %v2888_v39 }
0x293b   :  { %v2887_v6 = vpop.xlane.xlu1 %2886 }
0x293c   :  { %v2889_v10 = vmul.f32 0.03125, %v2887_v6  ;;  %v2892_v12 = vmul.f32 %v2890_v9, %v2890_v9 }
0x293e   :  { %v2891_v15 = vsub.f32 %v2879_v53, %v2889_v10  ;;  %v2894_v21 = vsel %vm33_vm0, %v2892_v12, 0.0 }
0x293f   :  { %2895 = vadd.xlane.f32.xlu0 %v2894_v21 }
0x2940   :  { %v2893_v7 = vmul.f32 %v2891_v15, %v2891_v15 }
0x2942   :  { %v2897_v8 = vsel %vm33_vm0, %v2893_v7, 0.0 }
0x2943   :  { %2898 = vadd.xlane.f32.xlu0 %v2897_v8  ;;  %v4015_v8 = vld [vmem:[%s5182_s3 + $0x160] sm:$0xff]  }
0x29c8   :  { %v2896_v44 = vpop.xlane.xlu0 %2895 }
0x29c9   :  { %v2900_v19 = vmul.f32 0.03125, %v2896_v44 }
0x29cb   :  { %v2902_v11 = vadd.f32 1e-12, %v2900_v19 }
0x29cc   :  { %v2899_v17 = vpop.xlane.xlu0 %2898 }
0x29cd   :  { %4195 = vrsqrt.f32 %v2902_v11  ;;  %v2901_v24 = vmul.f32 0.03125, %v2899_v17 }
0x29cf   :  { %v2903_v34 = vadd.f32 1e-12, %v2901_v24 }
0x29d1   :  { %4197 = vrsqrt.f32 %v2903_v34 }
0x29da   :  { %v4196_v36 = vpop.eup %4195 }
0x29db   :  { %v2906_v18 = vmul.f32 %v4196_v36, %v2890_v9 }
0x29dd   :  { %v2912_v29 = vmul.f32 %v3429_v20, %v2906_v18  ;;  %v3441_v18 = vld [vmem:[%s5183_s4 + $0x1e] ss:$0 sm:$0xff] }
0x29de   :  { %v4198_v25 = vpop.eup %4197 }
0x29df   :  { %v2907_v26 = vmul.f32 %v4198_v25, %v2891_v15  ;;  %v2918_v33 = vadd.f32 %v3430_v42, %v2912_v29  ;;  %v3442_v29 = vld [vmem:[%s5183_s4 + $0x1f] ss:$0 sm:$0xff] }
0x29e1   :  { %v2913_v30 = vmul.f32 %v3429_v20, %v2907_v26 }
0x29e3   :  { %v2919_v35 = vadd.f32 %v3430_v42, %v2913_v30 }
0x29e5   :  { %v2925_v37 = vpack.c.bf16 %v2919_v35, %v2918_v33 }
0x29e7   :  { %3855 = vmatmul.mubr.msk.bf16.vlgmr.msra.gmra.mxu0 %vm33_vm0, %v2925_v37  ;;  %v3443_v37 = vld [vmem:[%s5183_s4 + $0x26] ss:$0 sm:$0xff] }
0x29e8   :  { %3874 = vmatprep.mubr.msk.bf16.mxu0 %vm4224_vm1, %v4223_v14  ;;  %3871 = vmatpush3.bf16.msra.mxu0 %v4015_v8 }
0x29e9   :  { %3872 = vmatprep.subr.bf16.mxu0 %v4223_v14 }
0x29ec   :  { %3873 = vmatpush3.bf16.msra.mxu0 %v4016_v23 }
0x2aa7   :  { %v2979_v31 = vpop.f32.mrf.mxu0 }
0x2aa8   :  { %v2980_v49 = vadd.f32 %v3431_v48, %v2979_v31 }
0x2aa9   :  { %v3856_v50 = vpop.f32.mrf.mxu0 }
0x2aaa   :  { %v2988_v32 = vmul.f32 0.70710677, %v2980_v49  ;;  %v2986_v46 = vmul.f32 0.5, %v2980_v49 }
0x2aab   :  { %v2982_v51 = vpop.f32.mrf.mxu0 }
0x2aac   :  { %4199 = verf.f32 %v2988_v32  ;;  %v2983_v43 = vadd.f32 %v3431_v48, %v2982_v51 }
0x2aad   :  { %v3857_v52 = vpop.f32.mrf.mxu0 }
0x2aae   :  { %v2989_v58 = vmul.f32 0.70710677, %v2983_v43  ;;  %v2987_v61 = vmul.f32 0.5, %v2983_v43 }
0x2ab0   :  { %4201 = verf.f32 %v2989_v58 }
0x2ab9   :  { %v4200_v59 = vpop.eup %4199 }
0x2aba   :  { %v2992_v57 = vadd.f32 1.0, %v4200_v59 }
0x2abc   :  { %v2994_v47 = vmul.f32 %v2992_v57, %v2986_v46 }
0x2abd   :  { %v4202_v60 = vpop.eup %4201 }
0x2abe   :  { %v2993_v41 = vadd.f32 1.0, %v4202_v60 }
0x2ac0   :  { %v2995_v27 = vmul.f32 %v2993_v41, %v2987_v61 }
0x2ac2   :  { %v3005_v56 = vpack.c.bf16 %v2995_v27, %v2994_v47 }
0x2ac4   :  { %3867 = vmatmul.mubr.msk.bf16.vlgmr.msra.gmra.mxu1 %vm261_vm3, %v3005_v56 }
0x2ac5   :  { %3882 = vmatprep.mubr.msk.bf16.mxu1 %vm4224_vm1, %v4223_v14 }
0x2b84   :  { %v3071_v28 = vpop.f32.mrf.mxu1 }
0x2b85   :  { %v3072_v63 = vadd.f32 %v3435_v62, %v3071_v28 }
0x2b86   :  { %v3868_v4 = vpop.f32.mrf.mxu1 }
0x2b87   :  { %v3078_v0 = vadd.f32 %v3072_v63, %v2918_v33 }
0x2b88   :  { %v3074_v1 = vpop.f32.mrf.mxu1 }
0x2b89   :  { %v3075_v5 = vadd.f32 %v3435_v62, %v3074_v1  ;;  %v3082_v2 = vsel %vm33_vm0, %v3078_v0, 0.0 }
0x2b8a   :  { %3083 = vadd.xlane.f32.xlu0 %v3082_v2  ;;  %v3869_v13 = vpop.f32.mrf.mxu1  ;;  %v4018_v2 = vld [vmem:[%s5182_s3 + $0x168] sm:$0xff]  }
0x2b8b   :  { %v3079_v3 = vadd.f32 %v3075_v5, %v2919_v35  ;;  %v4017_v5 = vld [vmem:[%s5182_s3 + $0x170] sm:$0xff]  }
0x2b8c   :  { %3879 = vmatpush3.bf16.msra.mxu1 %v4017_v5 }
0x2b8d   :  { %v3085_v53 = vsel %vm33_vm0, %v3079_v3, 0.0  ;;  %3880 = vmatprep.subr.bf16.mxu1 %v4223_v14  ;;  %v3448_v14 = vld [vmem:[%s5183_s4 + $0x28] ss:$0 sm:$0xff] }
0x2b8e   :  { %3086 = vadd.xlane.f32.xlu1 %v3085_v53 }
0x2b90   :  { %3881 = vmatpush3.bf16.msra.mxu1 %v4018_v2 }
0x2c13   :  { %v3084_v38 = vpop.xlane.xlu0 %3083 }
0x2c14   :  { %v3088_v16 = vmul.f32 0.03125, %v3084_v38 }
0x2c16   :  { %v3090_v39 = vsub.f32 %v3078_v0, %v3088_v16 }
0x2c17   :  { %v3087_v9 = vpop.xlane.xlu1 %3086 }
0x2c18   :  { %v3089_v6 = vmul.f32 0.03125, %v3087_v9  ;;  %v3092_v10 = vmul.f32 %v3090_v39, %v3090_v39 }
0x2c1a   :  { %v3091_v12 = vsub.f32 %v3079_v3, %v3089_v6  ;;  %v3094_v15 = vsel %vm33_vm0, %v3092_v10, 0.0  ;;  %v3447_v10 = vld [vmem:[%s5183_s4 + $0x27] ss:$0 sm:$0xff] }
0x2c1b   :  { %3095 = vadd.xlane.f32.xlu0 %v3094_v15 }
0x2c1c   :  { %v3093_v21 = vmul.f32 %v3091_v12, %v3091_v12 }
0x2c1e   :  { %v3097_v7 = vsel %vm33_vm0, %v3093_v21, 0.0 }
0x2c1f   :  { %3098 = vadd.xlane.f32.xlu1 %v3097_v7 }
0x2ca4   :  { %v3096_v22 = vpop.xlane.xlu0 %3095 }
0x2ca5   :  { %v3100_v44 = vmul.f32 0.03125, %v3096_v22 }
0x2ca7   :  { %v3102_v19 = vadd.f32 1e-12, %v3100_v44  ;;  %v3449_v44 = vld [vmem:[%s5183_s4 + $0x29] ss:$0 sm:$0xff] }
0x2ca8   :  { %v3099_v11 = vpop.xlane.xlu1 %3098 }
0x2ca9   :  { %4203 = vrsqrt.f32 %v3102_v19  ;;  %v3101_v17 = vmul.f32 0.03125, %v3099_v11 }
0x2cab   :  { %v3103_v24 = vadd.f32 1e-12, %v3101_v17 }
0x2cad   :  { %4205 = vrsqrt.f32 %v3103_v24 }
0x2cb6   :  { %v4204_v34 = vpop.eup %4203 }
0x2cb7   :  { %v3106_v36 = vmul.f32 %v4204_v34, %v3090_v39 }
0x2cb9   :  { %v3112_v26 = vmul.f32 %v3441_v18, %v3106_v36 }
0x2cba   :  { %v4206_v20 = vpop.eup %4205 }
0x2cbb   :  { %v3107_v25 = vmul.f32 %v4206_v20, %v3091_v12  ;;  %v3118_v30 = vadd.f32 %v3442_v29, %v3112_v26 }
0x2cbd   :  { %v3113_v42 = vmul.f32 %v3441_v18, %v3107_v25 }
0x2cbf   :  { %v3119_v33 = vadd.f32 %v3442_v29, %v3113_v42 }
0x2cc1   :  { %v3125_v35 = vpack.c.bf16 %v3119_v33, %v3118_v30 }
0x2cc3   :  { %3875 = vmatmul.mubr.msk.bf16.vlgmr.msra.gmra.mxu0 %vm33_vm0, %v3125_v35 }
0x2d83   :  { %v3179_v54 = vpop.f32.mrf.mxu0 }
0x2d84   :  { %v3180_v40 = vadd.f32 %v3443_v37, %v3179_v54 }
0x2d85   :  { %v3876_v55 = vpop.f32.mrf.mxu0 }
0x2d86   :  { %v3188_v45 = vmul.f32 0.70710677, %v3180_v40  ;;  %v3186_v51 = vmul.f32 0.5, %v3180_v40 }
0x2d87   :  { %v3182_v48 = vpop.f32.mrf.mxu0 }
0x2d88   :  { %4207 = verf.f32 %v3188_v45  ;;  %v3183_v31 = vadd.f32 %v3443_v37, %v3182_v48 }
0x2d89   :  { %v3877_v49 = vpop.f32.mrf.mxu0 }
0x2d8a   :  { %v3189_v50 = vmul.f32 0.70710677, %v3183_v31  ;;  %v3187_v59 = vmul.f32 0.5, %v3183_v31 }
0x2d8c   :  { %4209 = verf.f32 %v3189_v50 }
0x2d95   :  { %v4208_v32 = vpop.eup %4207 }
0x2d96   :  { %v3192_v43 = vadd.f32 1.0, %v4208_v32 }
0x2d98   :  { %v3194_v52 = vmul.f32 %v3192_v43, %v3186_v51 }
0x2d99   :  { %v4210_v58 = vpop.eup %4209 }
0x2d9a   :  { %v3198_v57 = vsel %vm33_vm0, %v3194_v52, 0.0  ;;  %v3193_v60 = vadd.f32 1.0, %v4210_v58 }
0x2d9b   :  { %3199 = vadd.xlane.f32.xlu0 %v3198_v57 }
0x2d9c   :  { %v3195_v46 = vmul.f32 %v3193_v60, %v3187_v59 }
0x2d9e   :  { %v3201_v61 = vsel %vm33_vm0, %v3195_v46, 0.0 }
0x2d9f   :  { %3202 = vadd.xlane.f32.xlu1 %v3201_v61 }
0x2e24   :  { %v3200_v41 = vpop.xlane.xlu0 %3199 }
0x2e25   :  { %v3204_v47 = vmul.f32 0.03125, %v3200_v41 }
0x2e27   :  { %v3206_v27 = vsub.f32 %v3194_v52, %v3204_v47 }
0x2e28   :  { %v3203_v56 = vpop.xlane.xlu1 %3202 }
0x2e29   :  { %v3205_v62 = vmul.f32 0.03125, %v3203_v56  ;;  %v3208_v28 = vmul.f32 %v3206_v27, %v3206_v27 }
0x2e2b   :  { %v3207_v63 = vsub.f32 %v3195_v46, %v3205_v62  ;;  %v3210_v4 = vsel %vm33_vm0, %v3208_v28, 0.0 }
0x2e2c   :  { %3211 = vadd.xlane.f32.xlu0 %v3210_v4 }
0x2e2d   :  { %v3209_v0 = vmul.f32 %v3207_v63, %v3207_v63 }
0x2e2f   :  { %v3213_v1 = vsel %vm33_vm0, %v3209_v0, 0.0 }
0x2e30   :  { %3214 = vadd.xlane.f32.xlu1 %v3213_v1 }
0x2eb5   :  { %v3212_v13 = vpop.xlane.xlu0 %3211 }
0x2eb6   :  { %v3216_v3 = vmul.f32 0.03125, %v3212_v13 }
0x2eb8   :  { %v3218_v53 = vadd.f32 1e-12, %v3216_v3 }
0x2eb9   :  { %v3215_v38 = vpop.xlane.xlu1 %3214 }
0x2eba   :  { %4211 = vrsqrt.f32 %v3218_v53  ;;  %v3217_v16 = vmul.f32 0.03125, %v3215_v38 }
0x2ebc   :  { %v3219_v39 = vadd.f32 1e-12, %v3217_v16 }
0x2ebe   :  { %4213 = vrsqrt.f32 %v3219_v39 }
0x2ec7   :  { %v4212_v9 = vpop.eup %4211 }
0x2ec8   :  { %v3222_v6 = vmul.f32 %v4212_v9, %v3206_v27 }
0x2eca   :  { %v3228_v21 = vmul.f32 %v3447_v10, %v3222_v6 }
0x2ecb   :  { %v4214_v12 = vpop.eup %4213 }
0x2ecc   :  { %v3223_v15 = vmul.f32 %v4214_v12, %v3207_v63  ;;  %v3234_v8 = vadd.f32 %v3448_v14, %v3228_v21 }
0x2ece   :  { %v3229_v7 = vmul.f32 %v3447_v10, %v3223_v15 }
0x2ed0   :  { %v3235_v23 = vadd.f32 %v3448_v14, %v3229_v7 }
0x2ed2   :  { %v3241_v22 = vpack.c.bf16 %v3235_v23, %v3234_v8 }
0x2ed4   :  { %3883 = vmatmul.mubr.msk.bf16.vlgmr.msra.gmra.mxu1 %vm33_vm0, %v3241_v22 }
0x2f94   :  { %v3295_v19 = vpop.f32.mrf.mxu1 }
0x2f95   :  { %v3296_v11 = vadd.f32 %v3449_v44, %v3295_v19 }
0x2f96   :  { %v3884_v17 = vpop.f32.mrf.mxu1 }
0x2f97   :  { %3302 = vst [vmem:[%s5186_s5] sm:$0xff] %v3296_v11 }
0x2f98   :  { %v3298_v24 = vpop.f32.mrf.mxu1 }
0x2f99   :  { %v3299_v34 = vadd.f32 %v3449_v44, %v3298_v24 }
0x2f9a   :  { %v3885_v36 = vpop.f32.mrf.mxu1 }
0x2f9b   :  { %3303 = vst [vmem:[%s5186_s5 + $0x8] sm:$0xff] %v3299_v34 }

</bundles_post_ra>
